<compile_context>
chip_gen: v7x
topology: tpu7x:2x2x1
jax: 0.10.0
libtpu: 0.0.40
codegen_flags: <defaults>
</compile_context>

<pallas_src>
import functools
import numpy as np
import jax
import jax.numpy as jnp
from jax import lax
from jax.experimental import pallas as pl
from jax.experimental.pallas import tpu as pltpu

# ----------------------------- config ---------------------------------------
B = 2            # batch
LT = 8           # text sequence length
LI = 8           # image sequence length (e.g. number of patches)
D = 32           # hidden size (config1.hidden_size)
N_HEAD = 8
D_K = D          # MultiHeadAttention(8, hidden, hidden, hidden)
D_V = D
NUM_LABELS = 5   # text_num_labels
ALPHA = 0.6      # self.alpha
BETA_HP = 0.4    # self.beta
INV_TEMPERATURE = float(1.0 / np.power(D_K, 0.5))
OT_BETA = 0.5
OT_ITER = 50
OT_UNROLL = 5    # manual unroll factor for the IPOT loop (50 % 5 == 0)
LN_EPS = 1e-5
CLS_PAD = 128    # lane-dense classifier output slab width


# --------------------------- fused Pallas kernel ------------------------------
def fused_kernel(t_ref, im_ref, tpad_ref, ipad_ref,
                 wq_ref, wk_ref, wv_ref, wfc_ref, g_ref, bta_ref,
                 wcls_ref, bcls_ref,
                 logits_ref, dist_ref):
    """Whole-batch fused forward:
       MHA(text, image, image) + fc + residual + LayerNorm,
       classifier0 (on cross-attn out) + classifier1 (on text) as one matmul,
       batched cosine-cost IPOT optimal-transport distance."""
    wq = wq_ref[...]      # [H, D, Dk]
    wk = wk_ref[...]      # [H, D, Dk]
    wv = wv_ref[...]      # [H, D, Dv]
    wfc = wfc_ref[...]    # [H, Dv, D]
    gamma = g_ref[...]    # [1, D]
    beta = bta_ref[...]   # [1, D]
    wcls = wcls_ref[...]  # [D, 128]  cols 0..4 = classifier0, cols 5..9 = classifier1
    bcls = bcls_ref[...]  # [1, 128]

    # ---- cross attention + both classifiers (static loop over tiny batch) ----
    for b in range(B):
        t_b = t_ref[b]     # [LT, D]
        im_b = im_ref[b]   # [LI, D]

        th = jnp.broadcast_to(t_b[None], (N_HEAD, LT, D))
        ih = jnp.broadcast_to(im_b[None], (N_HEAD, LI, D))
        q = jnp.einsum('hld,hdk->hlk', th, wq, preferred_element_type=jnp.float32)
        k = jnp.einsum('hld,hdk->hlk', ih, wk, preferred_element_type=jnp.float32)
        v = jnp.einsum('hld,hdk->hlk', ih, wv, preferred_element_type=jnp.float32)

        s = jnp.einsum('hqd,hkd->hqk', q, k,
                       preferred_element_type=jnp.float32) * INV_TEMPERATURE
        m = jnp.max(s, axis=-1, keepdims=True)
        e = jnp.exp(s - m)
        attn = e * pl.reciprocal(jnp.sum(e, axis=-1, keepdims=True), approx=True)
        o = jnp.einsum('hqk,hkd->hqd', attn, v,
                       preferred_element_type=jnp.float32)        # [H, LT, Dv]

        # fc over concatenated heads == sum_h (o_h @ wfc_h)
        fc = jnp.sum(jnp.einsum('hqj,hjo->hqo', o, wfc,
                                preferred_element_type=jnp.float32), axis=0)  # [LT, D]
        x = fc + t_b                                     # residual (dropout == identity)
        mu = jnp.mean(x, axis=-1, keepdims=True)
        var = jnp.mean((x - mu) ** 2, axis=-1, keepdims=True)
        cross_b = (x - mu) * lax.rsqrt(var + LN_EPS) * gamma + beta   # [LT, D]

        # classifier0 on cross-attn out + classifier1 on text hidden: ONE matmul
        xcat = jnp.concatenate([cross_b, t_b], axis=0)   # [2*LT, D]
        logits_ref[b] = (jnp.dot(xcat, wcls, preferred_element_type=jnp.float32)
                         + bcls)                         # [2*LT, 128] lane-dense

    # ---- optimal transport distance, batched over B --------------------------
    x = t_ref[...]        # [B, LT, D]
    y = im_ref[...]       # [B, LI, D]
    tpad = tpad_ref[...]  # [B, 1, LT]  1.0 where attention_mask == 1 (reference convention)
    ipad = ipad_ref[...]  # [B, LI, 1]  all zeros

    eps = 1e-5
    xn = x / jnp.maximum(jnp.sqrt(jnp.sum(x * x, axis=-1, keepdims=True)), eps)
    yn = y / jnp.maximum(jnp.sqrt(jnp.sum(y * y, axis=-1, keepdims=True)), eps)
    # cost^T = 1 - cos(image, text) -> [B, LI, LT]
    cost_T = 1.0 - jnp.einsum('bnd,bmd->bnm', yn, xn,
                              preferred_element_type=jnp.float32)
    pad_mask = jnp.maximum(ipad, tpad) > 0.0            # [B, LI, LT]
    cost_T = jnp.where(pad_mask, 0.0, cost_T)

    txt_len = float(LT) - jnp.sum(tpad, axis=2, keepdims=True)   # [B, 1, 1]
    img_len = float(LI) - jnp.sum(ipad, axis=1, keepdims=True)   # [B, 1, 1]

    A = jnp.where(pad_mask, 0.0, jnp.exp(-cost_T * (1.0 / OT_BETA)))
    T0 = jnp.where(pad_mask, 0.0, jnp.ones((B, LI, LT), jnp.float32))
    sigma0 = jnp.where(tpad > 0.0, 0.0,
                       jnp.broadcast_to(1.0 / txt_len, (B, 1, LT)))
    x_mask = tpad * 10000.0     # [B, 1, LT]
    y_mask = ipad * 10000.0     # [B, LI, 1]

    def ipot_block(_, carry):
        T, sigma = carry
        for _ in range(OT_UNROLL):   # manual unroll -> ILP in the serial chain
            Q = A * T
            qs = jnp.sum(Q * sigma, axis=2, keepdims=True)                # Q @ sigma  [B,LI,1]
            delta = pl.reciprocal(img_len * qs + y_mask, approx=True)     # [B,LI,1]
            dq = jnp.sum(delta * Q, axis=1, keepdims=True)                # delta @ Q  [B,1,LT]
            sigma = pl.reciprocal(txt_len * dq + x_mask, approx=True)     # [B,1,LT]
            T = delta * Q * sigma
        return (T, sigma)

    T_fin, _ = lax.fori_loop(0, OT_ITER // OT_UNROLL, ipot_block, (T0, sigma0))
    T_fin = jnp.where(pad_mask, 0.0, T_fin)
    # trace(cost @ T) == sum(cost_T * T)
    dist = jnp.sum(jnp.sum(cost_T * T_fin, axis=2, keepdims=True),
                   axis=1, keepdims=True)               # [B, 1, 1]
    dist_ref[...] = jnp.broadcast_to(dist, (B, 1, CLS_PAD))


# ------------------------- pallas_call wrapper --------------------------------
def pack_kernel_params(p):
    """Host-side (constant-folded under jit) reshapes into kernel-friendly layouts."""
    wq_h = p["wq"].reshape(D, N_HEAD, D_K).transpose(1, 0, 2)    # [H, D, Dk]
    wk_h = p["wk"].reshape(D, N_HEAD, D_K).transpose(1, 0, 2)
    wv_h = p["wv"].reshape(D, N_HEAD, D_V).transpose(1, 0, 2)
    wfc_h = p["wfc"].reshape(N_HEAD, D_V, D)                     # [H, Dv, D]
    wcls = jnp.zeros((D, CLS_PAD), jnp.float32)
    wcls = wcls.at[:, 0:NUM_LABELS].set(p["w0"])
    wcls = wcls.at[:, NUM_LABELS:2 * NUM_LABELS].set(p["w1"])
    bcls = jnp.zeros((1, CLS_PAD), jnp.float32)
    bcls = bcls.at[:, 0:NUM_LABELS].set(p["b0"])
    bcls = bcls.at[:, NUM_LABELS:2 * NUM_LABELS].set(p["b1"])
    return wq_h, wk_h, wv_h, wfc_h, p["ln_g"], p["ln_b"], wcls, bcls


def fused_forward(text_h, image_h, text_pad_f, image_pad_f, kp):
    wq_h, wk_h, wv_h, wfc_h, ln_g, ln_b, wcls, bcls = kp

    def full(shape):
        return pl.BlockSpec(shape, lambda i: (0,) * len(shape))

    logits_slab, dist_slab = pl.pallas_call(
        fused_kernel,
        out_shape=(jax.ShapeDtypeStruct((B, 2 * LT, CLS_PAD), jnp.float32),
                   jax.ShapeDtypeStruct((B, 1, CLS_PAD), jnp.float32)),
        grid=(1,),
        in_specs=[full((B, LT, D)), full((B, LI, D)),
                  full((B, 1, LT)), full((B, LI, 1)),
                  full((N_HEAD, D, D_K)), full((N_HEAD, D, D_K)),
                  full((N_HEAD, D, D_V)), full((N_HEAD, D_V, D)),
                  full((1, D)), full((1, D)),
                  full((D, CLS_PAD)), full((1, CLS_PAD))],
        out_specs=(full((B, 2 * LT, CLS_PAD)), full((B, 1, CLS_PAD))),
        compiler_params=pltpu.CompilerParams(dimension_semantics=("arbitrary",)),
    )(text_h, image_h, text_pad_f, image_pad_f,
      wq_h, wk_h, wv_h, wfc_h, ln_g, ln_b, wcls, bcls)

    cross_logits = logits_slab[:, :LT, 0:NUM_LABELS]                       # [B, LT, 5]
    text_token_logits = logits_slab[:, LT:, NUM_LABELS:2 * NUM_LABELS]     # [B, LT, 5]
    ot_dist = dist_slab[:, 0, 0]                                           # [B]
    return cross_logits, text_token_logits, ot_dist


# ----------------------------- plain-JAX glue ---------------------------------
def crf_log_likelihood(emissions, tags, mask, start_t, end_t, trans):
    """torchcrf.CRF(batch_first=True) log-likelihood, reduction='sum'."""
    Bx, T, C = emissions.shape
    maskf = mask.astype(emissions.dtype)
    # numerator: score of the given tag path
    score = start_t[tags[:, 0]] + jnp.take_along_axis(
        emissions[:, 0], tags[:, 0:1], axis=1)[:, 0]
    for i in range(1, T):
        step = (trans[tags[:, i - 1], tags[:, i]]
                + jnp.take_along_axis(emissions[:, i], tags[:, i:i + 1], axis=1)[:, 0])
        score = score + step * maskf[:, i]
    seq_ends = jnp.sum(mask.astype(jnp.int32), axis=1) - 1
    last_tags = jnp.take_along_axis(tags, seq_ends[:, None], axis=1)[:, 0]
    score = score + end_t[last_tags]
    # denominator: forward algorithm
    alpha = start_t[None, :] + emissions[:, 0]
    for i in range(1, T):
        nxt = jax.scipy.special.logsumexp(
            alpha[:, :, None] + trans[None, :, :] + emissions[:, i][:, None, :], axis=1)
        alpha = jnp.where(mask[:, i][:, None], nxt, alpha)
    log_z = jax.scipy.special.logsumexp(alpha + end_t[None, :], axis=1)
    return jnp.sum(score - log_z)


def cross_entropy(logits, labels, ignore_index=-100):
    C = logits.shape[-1]
    lf = logits.reshape(-1, C)
    yf = labels.reshape(-1)
    valid = (yf != ignore_index)
    safe = jnp.where(valid, yf, 0)
    logp = jax.nn.log_softmax(lf, axis=-1)
    nll = -jnp.take_along_axis(logp, safe[:, None], axis=1)[:, 0]
    return jnp.sum(nll * valid.astype(lf.dtype)) / jnp.maximum(
        jnp.sum(valid.astype(lf.dtype)), 1.0)


def vlpca_forward(params, text_h, image_h, attention_mask, labels, cross_labels):
    p = params
    kp = pack_kernel_params(p)
    # Pad convention mirrors the reference PyTorch exactly:
    #   text_pad = (attention_mask == 1), image_pad = zeros.
    # (The test mask keeps some zeros so txt_len = LT - sum(mask==1) > 0.)
    text_pad_f = (attention_mask == 1).astype(jnp.float32).reshape(B, 1, LT)
    image_pad_f = jnp.zeros((B, LI, 1), jnp.float32)

    cross_logits, text_token_logits, ot_dist = fused_forward(
        text_h, image_h, text_pad_f, image_pad_f, kp)

    # CRF loss (plain-JAX DP over 5 tags)
    mask = (labels != -100)
    mask = mask.at[:, 0].set(True)
    cross_crf_loss = -crf_log_likelihood(cross_logits, cross_labels, mask,
                                         p["crf_start"], p["crf_end"],
                                         p["crf_trans"]) / 10.0
    word_region_align_loss = jnp.mean(ot_dist)
    text_loss = cross_entropy(text_token_logits, labels)
    loss = cross_crf_loss + BETA_HP * word_region_align_loss + ALPHA * text_loss
    return {"loss": loss, "logits": text_token_logits, "cross_logits": cross_logits}


# ----------------------------- params / inputs --------------------------------
def init_params(key):
    ks = jax.random.split(key, 10)
    std_qk = np.sqrt(2.0 / (D + D_K))
    std_v = np.sqrt(2.0 / (D + D_V))
    std_fc = np.sqrt(2.0 / (N_HEAD * D_V + D))  # xavier_normal
    return {
        "wq": jax.random.normal(ks[0], (D, N_HEAD * D_K), jnp.float32) * std_qk,
        "wk": jax.random.normal(ks[1], (D, N_HEAD * D_K), jnp.float32) * std_qk,
        "wv": jax.random.normal(ks[2], (D, N_HEAD * D_V), jnp.float32) * std_v,
        "wfc": jax.random.normal(ks[3], (N_HEAD * D_V, D), jnp.float32) * std_fc,
        "ln_g": jnp.ones((1, D), jnp.float32),
        "ln_b": jnp.zeros((1, D), jnp.float32),
        "w0": jax.random.normal(ks[4], (D, NUM_LABELS), jnp.float32) * 0.05,
        "b0": jnp.zeros((1, NUM_LABELS), jnp.float32),
        "w1": jax.random.normal(ks[5], (D, NUM_LABELS), jnp.float32) * 0.05,
        "b1": jnp.zeros((1, NUM_LABELS), jnp.float32),
        "crf_start": jax.random.uniform(ks[6], (NUM_LABELS,), jnp.float32, -0.1, 0.1),
        "crf_end": jax.random.uniform(ks[7], (NUM_LABELS,), jnp.float32, -0.1, 0.1),
        "crf_trans": jax.random.uniform(ks[8], (NUM_LABELS, NUM_LABELS),
                                        jnp.float32, -0.1, 0.1),
    }


if __name__ == "__main__":
    key = jax.random.PRNGKey(0)
    k_p, k_t, k_i, k_l, k_c = jax.random.split(key, 5)
    params = init_params(k_p)

    # backbone outputs (stand-ins for roberta / vit last_hidden_state)
    text_hidden = jax.random.normal(k_t, (B, LT, D), jnp.float32)
    image_hidden = jax.random.normal(k_i, (B, LI, D), jnp.float32)

    # attention mask with some padding so (LT - sum(mask==1)) > 0, matching the
    # reference's pad convention and avoiding its divide-by-zero corner case.
    attention_mask = jnp.array(
        [[1, 1, 1, 1, 1, 1, 0, 0],
         [1, 1, 1, 1, 1, 0, 0, 0]], dtype=jnp.int32)
    labels = jax.random.randint(k_l, (B, LT), 0, NUM_LABELS)
    labels = jnp.where(attention_mask == 1, labels, -100)
    cross_labels = jax.random.randint(k_c, (B, LT), 0, NUM_LABELS)

    fwd = jax.jit(functools.partial(vlpca_forward, params))
    out = fwd(text_hidden, image_hidden, attention_mask, labels, cross_labels)
    jax.block_until_ready(out)

    assert out["logits"].shape == (B, LT, NUM_LABELS)
    assert out["cross_logits"].shape == (B, LT, NUM_LABELS)
    assert np.isfinite(float(out["loss"]))
    print("KERNEL_OK")
</pallas_src>

<mosaic_0001>
module attributes {stable_mosaic.version = 11 : i64} {
  func.func @fused_kernel(%arg0: i32, %arg1: memref<2x8x32xf32, #tpu.memory_space<vmem>>, %arg2: memref<2x8x32xf32, #tpu.memory_space<vmem>>, %arg3: memref<2x1x8xf32, #tpu.memory_space<vmem>>, %arg4: memref<2x8x1xf32, #tpu.memory_space<vmem>>, %arg5: memref<8x32x32xf32, #tpu.memory_space<vmem>>, %arg6: memref<8x32x32xf32, #tpu.memory_space<vmem>>, %arg7: memref<8x32x32xf32, #tpu.memory_space<vmem>>, %arg8: memref<8x32x32xf32, #tpu.memory_space<vmem>>, %arg9: memref<1x32xf32, #tpu.memory_space<vmem>>, %arg10: memref<1x32xf32, #tpu.memory_space<vmem>>, %arg11: memref<32x128xf32, #tpu.memory_space<vmem>>, %arg12: memref<1x128xf32, #tpu.memory_space<vmem>>, %arg13: memref<2x16x128xf32, #tpu.memory_space<vmem>>, %arg14: memref<2x1x128xf32, #tpu.memory_space<vmem>>) attributes {dimension_semantics = [#tpu.dimension_semantics<arbitrary>], iteration_bounds = array<i64: 1>, scalar_prefetch = 0 : i64, scratch_operands = 0 : i64, tpu.core_type = #tpu.core_type<tc>, window_params = [{pipeline_mode = #tpu.pipeline_mode<synchronous>, transform_indices = @transform_0, window_bounds = array<i64: 2, 8, 32>}, {pipeline_mode = #tpu.pipeline_mode<synchronous>, transform_indices = @transform_1, window_bounds = array<i64: 2, 8, 32>}, {pipeline_mode = #tpu.pipeline_mode<synchronous>, transform_indices = @transform_2, window_bounds = array<i64: 2, 1, 8>}, {pipeline_mode = #tpu.pipeline_mode<synchronous>, transform_indices = @transform_3, window_bounds = array<i64: 2, 8, 1>}, {pipeline_mode = #tpu.pipeline_mode<synchronous>, transform_indices = @transform_4, window_bounds = array<i64: 8, 32, 32>}, {pipeline_mode = #tpu.pipeline_mode<synchronous>, transform_indices = @transform_5, window_bounds = array<i64: 8, 32, 32>}, {pipeline_mode = #tpu.pipeline_mode<synchronous>, transform_indices = @transform_6, window_bounds = array<i64: 8, 32, 32>}, {pipeline_mode = #tpu.pipeline_mode<synchronous>, transform_indices = @transform_7, window_bounds = array<i64: 8, 32, 32>}, {pipeline_mode = #tpu.pipeline_mode<synchronous>, transform_indices = @transform_8, window_bounds = array<i64: 1, 32>}, {pipeline_mode = #tpu.pipeline_mode<synchronous>, transform_indices = @transform_9, window_bounds = array<i64: 1, 32>}, {pipeline_mode = #tpu.pipeline_mode<synchronous>, transform_indices = @transform_10, window_bounds = array<i64: 32, 128>}, {pipeline_mode = #tpu.pipeline_mode<synchronous>, transform_indices = @transform_11, window_bounds = array<i64: 1, 128>}, {pipeline_mode = #tpu.pipeline_mode<synchronous>, transform_indices = @transform_12, window_bounds = array<i64: 2, 16, 128>}, {pipeline_mode = #tpu.pipeline_mode<synchronous>, transform_indices = @transform_13, window_bounds = array<i64: 2, 1, 128>}]} {
    %c0 = arith.constant 0 : index
    %c0_0 = arith.constant 0 : index
    %c0_1 = arith.constant 0 : index
    %0 = vector.load %arg5[%c0, %c0_0, %c0_1] : memref<8x32x32xf32, #tpu.memory_space<vmem>>, vector<8x32x32xf32>
    %c0_2 = arith.constant 0 : index
    %c0_3 = arith.constant 0 : index
    %c0_4 = arith.constant 0 : index
    %1 = vector.load %arg6[%c0_2, %c0_3, %c0_4] : memref<8x32x32xf32, #tpu.memory_space<vmem>>, vector<8x32x32xf32>
    %c0_5 = arith.constant 0 : index
    %c0_6 = arith.constant 0 : index
    %c0_7 = arith.constant 0 : index
    %2 = vector.load %arg7[%c0_5, %c0_6, %c0_7] : memref<8x32x32xf32, #tpu.memory_space<vmem>>, vector<8x32x32xf32>
    %c0_8 = arith.constant 0 : index
    %c0_9 = arith.constant 0 : index
    %c0_10 = arith.constant 0 : index
    %3 = vector.load %arg8[%c0_8, %c0_9, %c0_10] : memref<8x32x32xf32, #tpu.memory_space<vmem>>, vector<8x32x32xf32>
    %c0_11 = arith.constant 0 : index
    %c0_12 = arith.constant 0 : index
    %4 = vector.load %arg9[%c0_11, %c0_12] : memref<1x32xf32, #tpu.memory_space<vmem>>, vector<1x32xf32>
    %c0_13 = arith.constant 0 : index
    %c0_14 = arith.constant 0 : index
    %5 = vector.load %arg10[%c0_13, %c0_14] : memref<1x32xf32, #tpu.memory_space<vmem>>, vector<1x32xf32>
    %c0_15 = arith.constant 0 : index
    %c0_16 = arith.constant 0 : index
    %6 = vector.load %arg11[%c0_15, %c0_16] : memref<32x128xf32, #tpu.memory_space<vmem>>, vector<32x128xf32>
    %c0_17 = arith.constant 0 : index
    %c0_18 = arith.constant 0 : index
    %7 = vector.load %arg12[%c0_17, %c0_18] : memref<1x128xf32, #tpu.memory_space<vmem>>, vector<1x128xf32>
    %c0_19 = arith.constant 0 : index
    %c0_20 = arith.constant 0 : index
    %c0_21 = arith.constant 0 : index
    %8 = vector.load %arg1[%c0_19, %c0_20, %c0_21] : memref<2x8x32xf32, #tpu.memory_space<vmem>>, vector<1x8x32xf32>
    %9 = vector.shape_cast %8 : vector<1x8x32xf32> to vector<8x32xf32>
    %c0_22 = arith.constant 0 : index
    %c0_23 = arith.constant 0 : index
    %c0_24 = arith.constant 0 : index
    %10 = vector.load %arg2[%c0_22, %c0_23, %c0_24] : memref<2x8x32xf32, #tpu.memory_space<vmem>>, vector<1x8x32xf32>
    %11 = vector.shape_cast %10 : vector<1x8x32xf32> to vector<8x32xf32>
    %12 = vector.shape_cast %9 : vector<8x32xf32> to vector<1x8x32xf32>
    %13 = vector.shape_cast %12 : vector<1x8x32xf32> to vector<1x8x32xf32>
    %14 = vector.broadcast %13 : vector<1x8x32xf32> to vector<8x8x32xf32>
    %15 = vector.shape_cast %11 : vector<8x32xf32> to vector<1x8x32xf32>
    %16 = vector.shape_cast %15 : vector<1x8x32xf32> to vector<1x8x32xf32>
    %17 = vector.broadcast %16 : vector<1x8x32xf32> to vector<8x8x32xf32>
    "tpu.trace_start"() <{level = 10 : i32, message = "hld,hdk->hlk"}> : () -> ()
    %cst = arith.constant dense<0.000000e+00> : vector<8x8x32xf32>
    %18 = tpu.matmul %14, %0, %cst {dimension_numbers = #tpu.dot_dimension_numbers<[2], [1], [1], [2], [0, 0, 0, 1, 1, 2], [0], [0]>} : vector<8x8x32xf32>, vector<8x32x32xf32>, vector<8x8x32xf32> -> vector<8x8x32xf32>
    %cst_25 = arith.constant dense<0.000000e+00> : vector<8x8x32xf32>
    %19 = tpu.matmul %17, %1, %cst_25 {dimension_numbers = #tpu.dot_dimension_numbers<[2], [1], [1], [2], [0, 0, 0, 1, 1, 2], [0], [0]>} : vector<8x8x32xf32>, vector<8x32x32xf32>, vector<8x8x32xf32> -> vector<8x8x32xf32>
    %cst_26 = arith.constant dense<0.000000e+00> : vector<8x8x32xf32>
    %20 = tpu.matmul %17, %2, %cst_26 {dimension_numbers = #tpu.dot_dimension_numbers<[2], [1], [1], [2], [0, 0, 0, 1, 1, 2], [0], [0]>} : vector<8x8x32xf32>, vector<8x32x32xf32>, vector<8x8x32xf32> -> vector<8x8x32xf32>
    "tpu.trace_stop"() : () -> ()
    "tpu.trace_start"() <{level = 10 : i32, message = "hqd,hkd->hqk"}> : () -> ()
    %cst_27 = arith.constant dense<0.000000e+00> : vector<8x8x8xf32>
    %21 = tpu.matmul %18, %19, %cst_27 {dimension_numbers = #tpu.dot_dimension_numbers<[2], [2], [1], [1], [0, 0, 0, 1, 1, 1], [0], [0]>} : vector<8x8x32xf32>, vector<8x8x32xf32>, vector<8x8x8xf32> -> vector<8x8x8xf32>
    "tpu.trace_stop"() : () -> ()
    %cst_28 = arith.constant 0.176776692 : f32
    %22 = vector.broadcast %cst_28 : f32 to vector<8x8x8xf32>
    %23 = arith.mulf %21, %22 : vector<8x8x8xf32>
    %cst_29 = arith.constant dense<0xFF800000> : vector<8x8xf32>
    %24 = vector.multi_reduction <maximumf>, %23, %cst_29 [2] : vector<8x8x8xf32> to vector<8x8xf32>
    %25 = vector.shape_cast %24 : vector<8x8xf32> to vector<8x8x1xf32>
    %26 = vector.broadcast %25 : vector<8x8x1xf32> to vector<8x8x8xf32>
    %27 = arith.subf %23, %26 : vector<8x8x8xf32>
    %28 = math.exp %27 : vector<8x8x8xf32>
    %cst_30 = arith.constant dense<0.000000e+00> : vector<8x8xf32>
    %29 = vector.multi_reduction <add>, %28, %cst_30 [2] : vector<8x8x8xf32> to vector<8x8xf32>
    %30 = vector.shape_cast %29 : vector<8x8xf32> to vector<8x8x1xf32>
    %31 = tpu.reciprocal %30 {approx = true} : vector<8x8x1xf32> -> vector<8x8x1xf32>
    %32 = vector.broadcast %31 : vector<8x8x1xf32> to vector<8x8x8xf32>
    %33 = arith.mulf %28, %32 : vector<8x8x8xf32>
    "tpu.trace_start"() <{level = 10 : i32, message = "hqk,hkd->hqd"}> : () -> ()
    %cst_31 = arith.constant dense<0.000000e+00> : vector<8x8x32xf32>
    %34 = tpu.matmul %33, %20, %cst_31 {dimension_numbers = #tpu.dot_dimension_numbers<[2], [1], [1], [2], [0, 0, 0, 1, 1, 2], [0], [0]>} : vector<8x8x8xf32>, vector<8x8x32xf32>, vector<8x8x32xf32> -> vector<8x8x32xf32>
    "tpu.trace_stop"() : () -> ()
    "tpu.trace_start"() <{level = 10 : i32, message = "hqj,hjo->hqo"}> : () -> ()
    %cst_32 = arith.constant dense<0.000000e+00> : vector<8x8x32xf32>
    %35 = tpu.matmul %34, %3, %cst_32 {dimension_numbers = #tpu.dot_dimension_numbers<[2], [1], [1], [2], [0, 0, 0, 1, 1, 2], [0], [0]>} : vector<8x8x32xf32>, vector<8x32x32xf32>, vector<8x8x32xf32> -> vector<8x8x32xf32>
    "tpu.trace_stop"() : () -> ()
    %cst_33 = arith.constant dense<0.000000e+00> : vector<8x32xf32>
    %36 = vector.multi_reduction <add>, %35, %cst_33 [0] : vector<8x8x32xf32> to vector<8x32xf32>
    %37 = arith.addf %36, %9 : vector<8x32xf32>
    %cst_34 = arith.constant dense<0.000000e+00> : vector<8xf32>
    %38 = vector.multi_reduction <add>, %37, %cst_34 [1] : vector<8x32xf32> to vector<8xf32>
    %39 = vector.shape_cast %38 : vector<8xf32> to vector<8x1xf32>
    %cst_35 = arith.constant 3.200000e+01 : f32
    %40 = vector.broadcast %cst_35 : f32 to vector<8x1xf32>
    %41 = arith.divf %39, %40 : vector<8x1xf32>
    %42 = vector.broadcast %41 : vector<8x1xf32> to vector<8x32xf32>
    %43 = arith.subf %37, %42 : vector<8x32xf32>
    %44 = arith.mulf %43, %43 : vector<8x32xf32>
    %cst_36 = arith.constant dense<0.000000e+00> : vector<8xf32>
    %45 = vector.multi_reduction <add>, %44, %cst_36 [1] : vector<8x32xf32> to vector<8xf32>
    %46 = vector.shape_cast %45 : vector<8xf32> to vector<8x1xf32>
    %cst_37 = arith.constant 3.200000e+01 : f32
    %47 = vector.broadcast %cst_37 : f32 to vector<8x1xf32>
    %48 = arith.divf %46, %47 : vector<8x1xf32>
    %49 = vector.broadcast %41 : vector<8x1xf32> to vector<8x32xf32>
    %50 = arith.subf %37, %49 : vector<8x32xf32>
    %cst_38 = arith.constant 9.99999974E-6 : f32
    %51 = vector.broadcast %cst_38 : f32 to vector<8x1xf32>
    %52 = arith.addf %48, %51 : vector<8x1xf32>
    %53 = math.rsqrt %52 : vector<8x1xf32>
    %54 = vector.broadcast %53 : vector<8x1xf32> to vector<8x32xf32>
    %55 = arith.mulf %50, %54 : vector<8x32xf32>
    %56 = vector.broadcast %4 : vector<1x32xf32> to vector<8x32xf32>
    %57 = arith.mulf %55, %56 : vector<8x32xf32>
    %58 = vector.broadcast %5 : vector<1x32xf32> to vector<8x32xf32>
    %59 = arith.addf %57, %58 : vector<8x32xf32>
    %60 = tpu.concatenate %59, %9 in 0 : vector<8x32xf32>, vector<8x32xf32> -> vector<16x32xf32>
    %cst_39 = arith.constant dense<0.000000e+00> : vector<16x128xf32>
    %61 = tpu.matmul %60, %6, %cst_39 {dimension_numbers = #tpu.dot_dimension_numbers<[1], [0], [0], [1], [0, 0, 1, 1], [], []>} : vector<16x32xf32>, vector<32x128xf32>, vector<16x128xf32> -> vector<16x128xf32>
    %62 = vector.broadcast %7 : vector<1x128xf32> to vector<16x128xf32>
    %63 = arith.addf %61, %62 : vector<16x128xf32>
    %c0_40 = arith.constant 0 : index
    %c0_41 = arith.constant 0 : index
    %c0_42 = arith.constant 0 : index
    %64 = vector.load %arg13[%c0_40, %c0_41, %c0_42] : memref<2x16x128xf32, #tpu.memory_space<vmem>>, vector<1x16x128xf32>
    %65 = vector.shape_cast %64 : vector<1x16x128xf32> to vector<16x128xf32>
    %66 = vector.shape_cast %63 : vector<16x128xf32> to vector<1x16x128xf32>
    tpu.vector_store %arg13[%c0_40, %c0_41, %c0_42], %66 {strides = array<i32>} : memref<2x16x128xf32, #tpu.memory_space<vmem>>, vector<1x16x128xf32>,
    %c1 = arith.constant 1 : index
    %c0_43 = arith.constant 0 : index
    %c0_44 = arith.constant 0 : index
    %67 = vector.load %arg1[%c1, %c0_43, %c0_44] : memref<2x8x32xf32, #tpu.memory_space<vmem>>, vector<1x8x32xf32>
    %68 = vector.shape_cast %67 : vector<1x8x32xf32> to vector<8x32xf32>
    %c1_45 = arith.constant 1 : index
    %c0_46 = arith.constant 0 : index
    %c0_47 = arith.constant 0 : index
    %69 = vector.load %arg2[%c1_45, %c0_46, %c0_47] : memref<2x8x32xf32, #tpu.memory_space<vmem>>, vector<1x8x32xf32>
    %70 = vector.shape_cast %69 : vector<1x8x32xf32> to vector<8x32xf32>
    %71 = vector.shape_cast %68 : vector<8x32xf32> to vector<1x8x32xf32>
    %72 = vector.shape_cast %71 : vector<1x8x32xf32> to vector<1x8x32xf32>
    %73 = vector.broadcast %72 : vector<1x8x32xf32> to vector<8x8x32xf32>
    %74 = vector.shape_cast %70 : vector<8x32xf32> to vector<1x8x32xf32>
    %75 = vector.shape_cast %74 : vector<1x8x32xf32> to vector<1x8x32xf32>
    %76 = vector.broadcast %75 : vector<1x8x32xf32> to vector<8x8x32xf32>
    "tpu.trace_start"() <{level = 10 : i32, message = "hld,hdk->hlk"}> : () -> ()
    %cst_48 = arith.constant dense<0.000000e+00> : vector<8x8x32xf32>
    %77 = tpu.matmul %73, %0, %cst_48 {dimension_numbers = #tpu.dot_dimension_numbers<[2], [1], [1], [2], [0, 0, 0, 1, 1, 2], [0], [0]>} : vector<8x8x32xf32>, vector<8x32x32xf32>, vector<8x8x32xf32> -> vector<8x8x32xf32>
    %cst_49 = arith.constant dense<0.000000e+00> : vector<8x8x32xf32>
    %78 = tpu.matmul %76, %1, %cst_49 {dimension_numbers = #tpu.dot_dimension_numbers<[2], [1], [1], [2], [0, 0, 0, 1, 1, 2], [0], [0]>} : vector<8x8x32xf32>, vector<8x32x32xf32>, vector<8x8x32xf32> -> vector<8x8x32xf32>
    %cst_50 = arith.constant dense<0.000000e+00> : vector<8x8x32xf32>
    %79 = tpu.matmul %76, %2, %cst_50 {dimension_numbers = #tpu.dot_dimension_numbers<[2], [1], [1], [2], [0, 0, 0, 1, 1, 2], [0], [0]>} : vector<8x8x32xf32>, vector<8x32x32xf32>, vector<8x8x32xf32> -> vector<8x8x32xf32>
    "tpu.trace_stop"() : () -> ()
    "tpu.trace_start"() <{level = 10 : i32, message = "hqd,hkd->hqk"}> : () -> ()
    %cst_51 = arith.constant dense<0.000000e+00> : vector<8x8x8xf32>
    %80 = tpu.matmul %77, %78, %cst_51 {dimension_numbers = #tpu.dot_dimension_numbers<[2], [2], [1], [1], [0, 0, 0, 1, 1, 1], [0], [0]>} : vector<8x8x32xf32>, vector<8x8x32xf32>, vector<8x8x8xf32> -> vector<8x8x8xf32>
    "tpu.trace_stop"() : () -> ()
    %cst_52 = arith.constant 0.176776692 : f32
    %81 = vector.broadcast %cst_52 : f32 to vector<8x8x8xf32>
    %82 = arith.mulf %80, %81 : vector<8x8x8xf32>
    %cst_53 = arith.constant dense<0xFF800000> : vector<8x8xf32>
    %83 = vector.multi_reduction <maximumf>, %82, %cst_53 [2] : vector<8x8x8xf32> to vector<8x8xf32>
    %84 = vector.shape_cast %83 : vector<8x8xf32> to vector<8x8x1xf32>
    %85 = vector.broadcast %84 : vector<8x8x1xf32> to vector<8x8x8xf32>
    %86 = arith.subf %82, %85 : vector<8x8x8xf32>
    %87 = math.exp %86 : vector<8x8x8xf32>
    %cst_54 = arith.constant dense<0.000000e+00> : vector<8x8xf32>
    %88 = vector.multi_reduction <add>, %87, %cst_54 [2] : vector<8x8x8xf32> to vector<8x8xf32>
    %89 = vector.shape_cast %88 : vector<8x8xf32> to vector<8x8x1xf32>
    %90 = tpu.reciprocal %89 {approx = true} : vector<8x8x1xf32> -> vector<8x8x1xf32>
    %91 = vector.broadcast %90 : vector<8x8x1xf32> to vector<8x8x8xf32>
    %92 = arith.mulf %87, %91 : vector<8x8x8xf32>
    "tpu.trace_start"() <{level = 10 : i32, message = "hqk,hkd->hqd"}> : () -> ()
    %cst_55 = arith.constant dense<0.000000e+00> : vector<8x8x32xf32>
    %93 = tpu.matmul %92, %79, %cst_55 {dimension_numbers = #tpu.dot_dimension_numbers<[2], [1], [1], [2], [0, 0, 0, 1, 1, 2], [0], [0]>} : vector<8x8x8xf32>, vector<8x8x32xf32>, vector<8x8x32xf32> -> vector<8x8x32xf32>
    "tpu.trace_stop"() : () -> ()
    "tpu.trace_start"() <{level = 10 : i32, message = "hqj,hjo->hqo"}> : () -> ()
    %cst_56 = arith.constant dense<0.000000e+00> : vector<8x8x32xf32>
    %94 = tpu.matmul %93, %3, %cst_56 {dimension_numbers = #tpu.dot_dimension_numbers<[2], [1], [1], [2], [0, 0, 0, 1, 1, 2], [0], [0]>} : vector<8x8x32xf32>, vector<8x32x32xf32>, vector<8x8x32xf32> -> vector<8x8x32xf32>
    "tpu.trace_stop"() : () -> ()
    %cst_57 = arith.constant dense<0.000000e+00> : vector<8x32xf32>
    %95 = vector.multi_reduction <add>, %94, %cst_57 [0] : vector<8x8x32xf32> to vector<8x32xf32>
    %96 = arith.addf %95, %68 : vector<8x32xf32>
    %cst_58 = arith.constant dense<0.000000e+00> : vector<8xf32>
    %97 = vector.multi_reduction <add>, %96, %cst_58 [1] : vector<8x32xf32> to vector<8xf32>
    %98 = vector.shape_cast %97 : vector<8xf32> to vector<8x1xf32>
    %cst_59 = arith.constant 3.200000e+01 : f32
    %99 = vector.broadcast %cst_59 : f32 to vector<8x1xf32>
    %100 = arith.divf %98, %99 : vector<8x1xf32>
    %101 = vector.broadcast %100 : vector<8x1xf32> to vector<8x32xf32>
    %102 = arith.subf %96, %101 : vector<8x32xf32>
    %103 = arith.mulf %102, %102 : vector<8x32xf32>
    %cst_60 = arith.constant dense<0.000000e+00> : vector<8xf32>
    %104 = vector.multi_reduction <add>, %103, %cst_60 [1] : vector<8x32xf32> to vector<8xf32>
    %105 = vector.shape_cast %104 : vector<8xf32> to vector<8x1xf32>
    %cst_61 = arith.constant 3.200000e+01 : f32
    %106 = vector.broadcast %cst_61 : f32 to vector<8x1xf32>
    %107 = arith.divf %105, %106 : vector<8x1xf32>
    %108 = vector.broadcast %100 : vector<8x1xf32> to vector<8x32xf32>
    %109 = arith.subf %96, %108 : vector<8x32xf32>
    %cst_62 = arith.constant 9.99999974E-6 : f32
    %110 = vector.broadcast %cst_62 : f32 to vector<8x1xf32>
    %111 = arith.addf %107, %110 : vector<8x1xf32>
    %112 = math.rsqrt %111 : vector<8x1xf32>
    %113 = vector.broadcast %112 : vector<8x1xf32> to vector<8x32xf32>
    %114 = arith.mulf %109, %113 : vector<8x32xf32>
    %115 = vector.broadcast %4 : vector<1x32xf32> to vector<8x32xf32>
    %116 = arith.mulf %114, %115 : vector<8x32xf32>
    %117 = vector.broadcast %5 : vector<1x32xf32> to vector<8x32xf32>
    %118 = arith.addf %116, %117 : vector<8x32xf32>
    %119 = tpu.concatenate %118, %68 in 0 : vector<8x32xf32>, vector<8x32xf32> -> vector<16x32xf32>
    %cst_63 = arith.constant dense<0.000000e+00> : vector<16x128xf32>
    %120 = tpu.matmul %119, %6, %cst_63 {dimension_numbers = #tpu.dot_dimension_numbers<[1], [0], [0], [1], [0, 0, 1, 1], [], []>} : vector<16x32xf32>, vector<32x128xf32>, vector<16x128xf32> -> vector<16x128xf32>
    %121 = vector.broadcast %7 : vector<1x128xf32> to vector<16x128xf32>
    %122 = arith.addf %120, %121 : vector<16x128xf32>
    %c1_64 = arith.constant 1 : index
    %c0_65 = arith.constant 0 : index
    %c0_66 = arith.constant 0 : index
    %123 = vector.load %arg13[%c1_64, %c0_65, %c0_66] : memref<2x16x128xf32, #tpu.memory_space<vmem>>, vector<1x16x128xf32>
    %124 = vector.shape_cast %123 : vector<1x16x128xf32> to vector<16x128xf32>
    %125 = vector.shape_cast %122 : vector<16x128xf32> to vector<1x16x128xf32>
    tpu.vector_store %arg13[%c1_64, %c0_65, %c0_66], %125 {strides = array<i32>} : memref<2x16x128xf32, #tpu.memory_space<vmem>>, vector<1x16x128xf32>,
    %c0_67 = arith.constant 0 : index
    %c0_68 = arith.constant 0 : index
    %c0_69 = arith.constant 0 : index
    %126 = vector.load %arg1[%c0_67, %c0_68, %c0_69] : memref<2x8x32xf32, #tpu.memory_space<vmem>>, vector<2x8x32xf32>
    %c0_70 = arith.constant 0 : index
    %c0_71 = arith.constant 0 : index
    %c0_72 = arith.constant 0 : index
    %127 = vector.load %arg2[%c0_70, %c0_71, %c0_72] : memref<2x8x32xf32, #tpu.memory_space<vmem>>, vector<2x8x32xf32>
    %c0_73 = arith.constant 0 : index
    %c0_74 = arith.constant 0 : index
    %c0_75 = arith.constant 0 : index
    %128 = vector.load %arg3[%c0_73, %c0_74, %c0_75] : memref<2x1x8xf32, #tpu.memory_space<vmem>>, vector<2x1x8xf32>
    %c0_76 = arith.constant 0 : index
    %c0_77 = arith.constant 0 : index
    %c0_78 = arith.constant 0 : index
    %129 = vector.load %arg4[%c0_76, %c0_77, %c0_78] : memref<2x8x1xf32, #tpu.memory_space<vmem>>, vector<2x8x1xf32>
    %130 = arith.mulf %126, %126 : vector<2x8x32xf32>
    %cst_79 = arith.constant dense<0.000000e+00> : vector<2x8xf32>
    %131 = vector.multi_reduction <add>, %130, %cst_79 [2] : vector<2x8x32xf32> to vector<2x8xf32>
    %132 = vector.shape_cast %131 : vector<2x8xf32> to vector<2x8x1xf32>
    %133 = math.sqrt %132 : vector<2x8x1xf32>
    %cst_80 = arith.constant 9.99999974E-6 : f32
    %134 = vector.broadcast %cst_80 : f32 to vector<2x8x1xf32>
    %135 = arith.maximumf %133, %134 : vector<2x8x1xf32>
    %136 = vector.broadcast %135 : vector<2x8x1xf32> to vector<2x8x32xf32>
    %137 = arith.divf %126, %136 : vector<2x8x32xf32>
    %138 = arith.mulf %127, %127 : vector<2x8x32xf32>
    %cst_81 = arith.constant dense<0.000000e+00> : vector<2x8xf32>
    %139 = vector.multi_reduction <add>, %138, %cst_81 [2] : vector<2x8x32xf32> to vector<2x8xf32>
    %140 = vector.shape_cast %139 : vector<2x8xf32> to vector<2x8x1xf32>
    %141 = math.sqrt %140 : vector<2x8x1xf32>
    %cst_82 = arith.constant 9.99999974E-6 : f32
    %142 = vector.broadcast %cst_82 : f32 to vector<2x8x1xf32>
    %143 = arith.maximumf %141, %142 : vector<2x8x1xf32>
    %144 = vector.broadcast %143 : vector<2x8x1xf32> to vector<2x8x32xf32>
    %145 = arith.divf %127, %144 : vector<2x8x32xf32>
    "tpu.trace_start"() <{level = 10 : i32, message = "bnd,bmd->bnm"}> : () -> ()
    %cst_83 = arith.constant dense<0.000000e+00> : vector<2x8x8xf32>
    %146 = tpu.matmul %145, %137, %cst_83 {dimension_numbers = #tpu.dot_dimension_numbers<[2], [2], [1], [1], [0, 0, 0, 1, 1, 1], [0], [0]>} : vector<2x8x32xf32>, vector<2x8x32xf32>, vector<2x8x8xf32> -> vector<2x8x8xf32>
    "tpu.trace_stop"() : () -> ()
    %cst_84 = arith.constant 1.000000e+00 : f32
    %147 = vector.broadcast %cst_84 : f32 to vector<2x8x8xf32>
    %148 = arith.subf %147, %146 : vector<2x8x8xf32>
    %149 = vector.broadcast %129 : vector<2x8x1xf32> to vector<2x8x8xf32>
    %150 = vector.broadcast %128 : vector<2x1x8xf32> to vector<2x8x8xf32>
    %151 = arith.maximumf %149, %150 : vector<2x8x8xf32>
    %cst_85 = arith.constant 0.000000e+00 : f32
    %152 = vector.broadcast %cst_85 : f32 to vector<2x8x8xf32>
    %153 = arith.cmpf ogt, %151, %152 : vector<2x8x8xf32>
    %cst_86 = arith.constant 0.000000e+00 : f32
    %154 = vector.broadcast %cst_86 : f32 to vector<2x8x8xf32>
    %155 = arith.select %153, %154, %148 : vector<2x8x8xi1>, vector<2x8x8xf32>
    %cst_87 = arith.constant dense<0.000000e+00> : vector<2x1xf32>
    %156 = vector.multi_reduction <add>, %128, %cst_87 [2] : vector<2x1x8xf32> to vector<2x1xf32>
    %157 = vector.shape_cast %156 : vector<2x1xf32> to vector<2x1x1xf32>
    %cst_88 = arith.constant 8.000000e+00 : f32
    %158 = vector.broadcast %cst_88 : f32 to vector<2x1x1xf32>
    %159 = arith.subf %158, %157 : vector<2x1x1xf32>
    %cst_89 = arith.constant dense<0.000000e+00> : vector<2x1xf32>
    %160 = vector.multi_reduction <add>, %129, %cst_89 [1] : vector<2x8x1xf32> to vector<2x1xf32>
    %161 = vector.shape_cast %160 : vector<2x1xf32> to vector<2x1x1xf32>
    %cst_90 = arith.constant 8.000000e+00 : f32
    %162 = vector.broadcast %cst_90 : f32 to vector<2x1x1xf32>
    %163 = arith.subf %162, %161 : vector<2x1x1xf32>
    %cst_91 = arith.constant 0.000000e+00 : f32
    %164 = vector.broadcast %cst_91 : f32 to vector<2x8x8xf32>
    %165 = arith.subf %164, %155 : vector<2x8x8xf32>
    %cst_92 = arith.constant 2.000000e+00 : f32
    %166 = vector.broadcast %cst_92 : f32 to vector<2x8x8xf32>
    %167 = arith.mulf %165, %166 : vector<2x8x8xf32>
    %168 = math.exp %167 : vector<2x8x8xf32>
    %cst_93 = arith.constant 0.000000e+00 : f32
    %169 = vector.broadcast %cst_93 : f32 to vector<2x8x8xf32>
    %170 = arith.select %153, %169, %168 : vector<2x8x8xi1>, vector<2x8x8xf32>
    %cst_94 = arith.constant 1.000000e+00 : f32
    %171 = vector.broadcast %cst_94 : f32 to vector<2x8x8xf32>
    %cst_95 = arith.constant 0.000000e+00 : f32
    %172 = vector.broadcast %cst_95 : f32 to vector<2x8x8xf32>
    %173 = arith.select %153, %172, %171 : vector<2x8x8xi1>, vector<2x8x8xf32>
    %cst_96 = arith.constant 0.000000e+00 : f32
    %174 = vector.broadcast %cst_96 : f32 to vector<2x1x8xf32>
    %175 = arith.cmpf ogt, %128, %174 : vector<2x1x8xf32>
    %cst_97 = arith.constant 1.000000e+00 : f32
    %176 = vector.broadcast %cst_97 : f32 to vector<2x1x1xf32>
    %177 = arith.divf %176, %159 : vector<2x1x1xf32>
    %178 = vector.shape_cast %177 : vector<2x1x1xf32> to vector<2x1x1xf32>
    %179 = vector.broadcast %178 : vector<2x1x1xf32> to vector<2x1x8xf32>
    %cst_98 = arith.constant 0.000000e+00 : f32
    %180 = vector.broadcast %cst_98 : f32 to vector<2x1x8xf32>
    %181 = arith.select %175, %180, %179 : vector<2x1x8xi1>, vector<2x1x8xf32>
    %cst_99 = arith.constant 1.000000e+04 : f32
    %182 = vector.broadcast %cst_99 : f32 to vector<2x1x8xf32>
    %183 = arith.mulf %128, %182 : vector<2x1x8xf32>
    %cst_100 = arith.constant 1.000000e+04 : f32
    %184 = vector.broadcast %cst_100 : f32 to vector<2x8x1xf32>
    %185 = arith.mulf %129, %184 : vector<2x8x1xf32>
    %c0_i32 = arith.constant 0 : i32
    %c10_i32 = arith.constant 10 : i32
    %186 = arith.addi %c0_i32, %c10_i32 : i32
    %c1_i32 = arith.constant 1 : i32
    %187:2 = scf.for %arg15 = %c0_i32 to %186 step %c1_i32 iter_args(%arg16 = %173, %arg17 = %181) -> (vector<2x8x8xf32>, vector<2x1x8xf32>)  : i32 {
      %198 = arith.mulf %170, %arg16 : vector<2x8x8xf32>
      %199 = vector.broadcast %arg17 : vector<2x1x8xf32> to vector<2x8x8xf32>
      %200 = arith.mulf %198, %199 : vector<2x8x8xf32>
      %cst_107 = arith.constant dense<0.000000e+00> : vector<2x8xf32>
      %201 = vector.multi_reduction <add>, %200, %cst_107 [2] : vector<2x8x8xf32> to vector<2x8xf32>
      %202 = vector.shape_cast %201 : vector<2x8xf32> to vector<2x8x1xf32>
      %203 = vector.broadcast %163 : vector<2x1x1xf32> to vector<2x8x1xf32>
      %204 = arith.mulf %203, %202 : vector<2x8x1xf32>
      %205 = arith.addf %204, %185 : vector<2x8x1xf32>
      %206 = tpu.reciprocal %205 {approx = true} : vector<2x8x1xf32> -> vector<2x8x1xf32>
      %207 = vector.broadcast %206 : vector<2x8x1xf32> to vector<2x8x8xf32>
      %208 = arith.mulf %207, %198 : vector<2x8x8xf32>
      %cst_108 = arith.constant dense<0.000000e+00> : vector<2x8xf32>
      %209 = vector.multi_reduction <add>, %208, %cst_108 [1] : vector<2x8x8xf32> to vector<2x8xf32>
      %210 = vector.shape_cast %209 : vector<2x8xf32> to vector<2x1x8xf32>
      %211 = vector.broadcast %159 : vector<2x1x1xf32> to vector<2x1x8xf32>
      %212 = arith.mulf %211, %210 : vector<2x1x8xf32>
      %213 = arith.addf %212, %183 : vector<2x1x8xf32>
      %214 = tpu.reciprocal %213 {approx = true} : vector<2x1x8xf32> -> vector<2x1x8xf32>
      %215 = vector.broadcast %206 : vector<2x8x1xf32> to vector<2x8x8xf32>
      %216 = arith.mulf %215, %198 : vector<2x8x8xf32>
      %217 = vector.broadcast %214 : vector<2x1x8xf32> to vector<2x8x8xf32>
      %218 = arith.mulf %216, %217 : vector<2x8x8xf32>
      %219 = arith.mulf %170, %218 : vector<2x8x8xf32>
      %220 = vector.broadcast %214 : vector<2x1x8xf32> to vector<2x8x8xf32>
      %221 = arith.mulf %219, %220 : vector<2x8x8xf32>
      %cst_109 = arith.constant dense<0.000000e+00> : vector<2x8xf32>
      %222 = vector.multi_reduction <add>, %221, %cst_109 [2] : vector<2x8x8xf32> to vector<2x8xf32>
      %223 = vector.shape_cast %222 : vector<2x8xf32> to vector<2x8x1xf32>
      %224 = vector.broadcast %163 : vector<2x1x1xf32> to vector<2x8x1xf32>
      %225 = arith.mulf %224, %223 : vector<2x8x1xf32>
      %226 = arith.addf %225, %185 : vector<2x8x1xf32>
      %227 = tpu.reciprocal %226 {approx = true} : vector<2x8x1xf32> -> vector<2x8x1xf32>
      %228 = vector.broadcast %227 : vector<2x8x1xf32> to vector<2x8x8xf32>
      %229 = arith.mulf %228, %219 : vector<2x8x8xf32>
      %cst_110 = arith.constant dense<0.000000e+00> : vector<2x8xf32>
      %230 = vector.multi_reduction <add>, %229, %cst_110 [1] : vector<2x8x8xf32> to vector<2x8xf32>
      %231 = vector.shape_cast %230 : vector<2x8xf32> to vector<2x1x8xf32>
      %232 = vector.broadcast %159 : vector<2x1x1xf32> to vector<2x1x8xf32>
      %233 = arith.mulf %232, %231 : vector<2x1x8xf32>
      %234 = arith.addf %233, %183 : vector<2x1x8xf32>
      %235 = tpu.reciprocal %234 {approx = true} : vector<2x1x8xf32> -> vector<2x1x8xf32>
      %236 = vector.broadcast %227 : vector<2x8x1xf32> to vector<2x8x8xf32>
      %237 = arith.mulf %236, %219 : vector<2x8x8xf32>
      %238 = vector.broadcast %235 : vector<2x1x8xf32> to vector<2x8x8xf32>
      %239 = arith.mulf %237, %238 : vector<2x8x8xf32>
      %240 = arith.mulf %170, %239 : vector<2x8x8xf32>
      %241 = vector.broadcast %235 : vector<2x1x8xf32> to vector<2x8x8xf32>
      %242 = arith.mulf %240, %241 : vector<2x8x8xf32>
      %cst_111 = arith.constant dense<0.000000e+00> : vector<2x8xf32>
      %243 = vector.multi_reduction <add>, %242, %cst_111 [2] : vector<2x8x8xf32> to vector<2x8xf32>
      %244 = vector.shape_cast %243 : vector<2x8xf32> to vector<2x8x1xf32>
      %245 = vector.broadcast %163 : vector<2x1x1xf32> to vector<2x8x1xf32>
      %246 = arith.mulf %245, %244 : vector<2x8x1xf32>
      %247 = arith.addf %246, %185 : vector<2x8x1xf32>
      %248 = tpu.reciprocal %247 {approx = true} : vector<2x8x1xf32> -> vector<2x8x1xf32>
      %249 = vector.broadcast %248 : vector<2x8x1xf32> to vector<2x8x8xf32>
      %250 = arith.mulf %249, %240 : vector<2x8x8xf32>
      %cst_112 = arith.constant dense<0.000000e+00> : vector<2x8xf32>
      %251 = vector.multi_reduction <add>, %250, %cst_112 [1] : vector<2x8x8xf32> to vector<2x8xf32>
      %252 = vector.shape_cast %251 : vector<2x8xf32> to vector<2x1x8xf32>
      %253 = vector.broadcast %159 : vector<2x1x1xf32> to vector<2x1x8xf32>
      %254 = arith.mulf %253, %252 : vector<2x1x8xf32>
      %255 = arith.addf %254, %183 : vector<2x1x8xf32>
      %256 = tpu.reciprocal %255 {approx = true} : vector<2x1x8xf32> -> vector<2x1x8xf32>
      %257 = vector.broadcast %248 : vector<2x8x1xf32> to vector<2x8x8xf32>
      %258 = arith.mulf %257, %240 : vector<2x8x8xf32>
      %259 = vector.broadcast %256 : vector<2x1x8xf32> to vector<2x8x8xf32>
      %260 = arith.mulf %258, %259 : vector<2x8x8xf32>
      %261 = arith.mulf %170, %260 : vector<2x8x8xf32>
      %262 = vector.broadcast %256 : vector<2x1x8xf32> to vector<2x8x8xf32>
      %263 = arith.mulf %261, %262 : vector<2x8x8xf32>
      %cst_113 = arith.constant dense<0.000000e+00> : vector<2x8xf32>
      %264 = vector.multi_reduction <add>, %263, %cst_113 [2] : vector<2x8x8xf32> to vector<2x8xf32>
      %265 = vector.shape_cast %264 : vector<2x8xf32> to vector<2x8x1xf32>
      %266 = vector.broadcast %163 : vector<2x1x1xf32> to vector<2x8x1xf32>
      %267 = arith.mulf %266, %265 : vector<2x8x1xf32>
      %268 = arith.addf %267, %185 : vector<2x8x1xf32>
      %269 = tpu.reciprocal %268 {approx = true} : vector<2x8x1xf32> -> vector<2x8x1xf32>
      %270 = vector.broadcast %269 : vector<2x8x1xf32> to vector<2x8x8xf32>
      %271 = arith.mulf %270, %261 : vector<2x8x8xf32>
      %cst_114 = arith.constant dense<0.000000e+00> : vector<2x8xf32>
      %272 = vector.multi_reduction <add>, %271, %cst_114 [1] : vector<2x8x8xf32> to vector<2x8xf32>
      %273 = vector.shape_cast %272 : vector<2x8xf32> to vector<2x1x8xf32>
      %274 = vector.broadcast %159 : vector<2x1x1xf32> to vector<2x1x8xf32>
      %275 = arith.mulf %274, %273 : vector<2x1x8xf32>
      %276 = arith.addf %275, %183 : vector<2x1x8xf32>
      %277 = tpu.reciprocal %276 {approx = true} : vector<2x1x8xf32> -> vector<2x1x8xf32>
      %278 = vector.broadcast %269 : vector<2x8x1xf32> to vector<2x8x8xf32>
      %279 = arith.mulf %278, %261 : vector<2x8x8xf32>
      %280 = vector.broadcast %277 : vector<2x1x8xf32> to vector<2x8x8xf32>
      %281 = arith.mulf %279, %280 : vector<2x8x8xf32>
      %282 = arith.mulf %170, %281 : vector<2x8x8xf32>
      %283 = vector.broadcast %277 : vector<2x1x8xf32> to vector<2x8x8xf32>
      %284 = arith.mulf %282, %283 : vector<2x8x8xf32>
      %cst_115 = arith.constant dense<0.000000e+00> : vector<2x8xf32>
      %285 = vector.multi_reduction <add>, %284, %cst_115 [2] : vector<2x8x8xf32> to vector<2x8xf32>
      %286 = vector.shape_cast %285 : vector<2x8xf32> to vector<2x8x1xf32>
      %287 = vector.broadcast %163 : vector<2x1x1xf32> to vector<2x8x1xf32>
      %288 = arith.mulf %287, %286 : vector<2x8x1xf32>
      %289 = arith.addf %288, %185 : vector<2x8x1xf32>
      %290 = tpu.reciprocal %289 {approx = true} : vector<2x8x1xf32> -> vector<2x8x1xf32>
      %291 = vector.broadcast %290 : vector<2x8x1xf32> to vector<2x8x8xf32>
      %292 = arith.mulf %291, %282 : vector<2x8x8xf32>
      %cst_116 = arith.constant dense<0.000000e+00> : vector<2x8xf32>
      %293 = vector.multi_reduction <add>, %292, %cst_116 [1] : vector<2x8x8xf32> to vector<2x8xf32>
      %294 = vector.shape_cast %293 : vector<2x8xf32> to vector<2x1x8xf32>
      %295 = vector.broadcast %159 : vector<2x1x1xf32> to vector<2x1x8xf32>
      %296 = arith.mulf %295, %294 : vector<2x1x8xf32>
      %297 = arith.addf %296, %183 : vector<2x1x8xf32>
      %298 = tpu.reciprocal %297 {approx = true} : vector<2x1x8xf32> -> vector<2x1x8xf32>
      %299 = vector.broadcast %290 : vector<2x8x1xf32> to vector<2x8x8xf32>
      %300 = arith.mulf %299, %282 : vector<2x8x8xf32>
      %301 = vector.broadcast %298 : vector<2x1x8xf32> to vector<2x8x8xf32>
      %302 = arith.mulf %300, %301 : vector<2x8x8xf32>
      scf.yield %302, %298 : vector<2x8x8xf32>, vector<2x1x8xf32>
    }
    %cst_101 = arith.constant 0.000000e+00 : f32
    %188 = vector.broadcast %cst_101 : f32 to vector<2x8x8xf32>
    %189 = arith.select %153, %188, %187#0 : vector<2x8x8xi1>, vector<2x8x8xf32>
    %190 = arith.mulf %155, %189 : vector<2x8x8xf32>
    %cst_102 = arith.constant dense<0.000000e+00> : vector<2x8xf32>
    %191 = vector.multi_reduction <add>, %190, %cst_102 [2] : vector<2x8x8xf32> to vector<2x8xf32>
    %192 = vector.shape_cast %191 : vector<2x8xf32> to vector<2x8x1xf32>
    %cst_103 = arith.constant dense<0.000000e+00> : vector<2x1xf32>
    %193 = vector.multi_reduction <add>, %192, %cst_103 [1] : vector<2x8x1xf32> to vector<2x1xf32>
    %194 = vector.shape_cast %193 : vector<2x1xf32> to vector<2x1x1xf32>
    %195 = vector.shape_cast %194 : vector<2x1x1xf32> to vector<2x1x1xf32>
    %196 = vector.broadcast %195 : vector<2x1x1xf32> to vector<2x1x128xf32>
    %c0_104 = arith.constant 0 : index
    %c0_105 = arith.constant 0 : index
    %c0_106 = arith.constant 0 : index
    %197 = vector.load %arg14[%c0_104, %c0_105, %c0_106] : memref<2x1x128xf32, #tpu.memory_space<vmem>>, vector<2x1x128xf32>
    tpu.vector_store %arg14[%c0_104, %c0_105, %c0_106], %196 {strides = array<i32>} : memref<2x1x128xf32, #tpu.memory_space<vmem>>, vector<2x1x128xf32>,
    return
  }
  func.func @transform_0(%arg0: i32) -> (i32, i32, i32) {
    %c0_i32 = arith.constant 0 : i32
    %c0_i32_0 = arith.constant 0 : i32
    %c0_i32_1 = arith.constant 0 : i32
    %c0_i32_2 = arith.constant 0 : i32
    return %c0_i32, %c0_i32_0, %c0_i32_1 : i32, i32, i32
  }
  func.func @transform_1(%arg0: i32) -> (i32, i32, i32) {
    %c0_i32 = arith.constant 0 : i32
    %c0_i32_0 = arith.constant 0 : i32
    %c0_i32_1 = arith.constant 0 : i32
    %c0_i32_2 = arith.constant 0 : i32
    return %c0_i32, %c0_i32_0, %c0_i32_1 : i32, i32, i32
  }
  func.func @transform_2(%arg0: i32) -> (i32, i32, i32) {
    %c0_i32 = arith.constant 0 : i32
    %c0_i32_0 = arith.constant 0 : i32
    %c0_i32_1 = arith.constant 0 : i32
    %c0_i32_2 = arith.constant 0 : i32
    return %c0_i32, %c0_i32_0, %c0_i32_1 : i32, i32, i32
  }
  func.func @transform_3(%arg0: i32) -> (i32, i32, i32) {
    %c0_i32 = arith.constant 0 : i32
    %c0_i32_0 = arith.constant 0 : i32
    %c0_i32_1 = arith.constant 0 : i32
    %c0_i32_2 = arith.constant 0 : i32
    return %c0_i32, %c0_i32_0, %c0_i32_1 : i32, i32, i32
  }
  func.func @transform_4(%arg0: i32) -> (i32, i32, i32) {
    %c0_i32 = arith.constant 0 : i32
    %c0_i32_0 = arith.constant 0 : i32
    %c0_i32_1 = arith.constant 0 : i32
    %c0_i32_2 = arith.constant 0 : i32
    return %c0_i32, %c0_i32_0, %c0_i32_1 : i32, i32, i32
  }
  func.func @transform_5(%arg0: i32) -> (i32, i32, i32) {
    %c0_i32 = arith.constant 0 : i32
    %c0_i32_0 = arith.constant 0 : i32
    %c0_i32_1 = arith.constant 0 : i32
    %c0_i32_2 = arith.constant 0 : i32
    return %c0_i32, %c0_i32_0, %c0_i32_1 : i32, i32, i32
  }
  func.func @transform_6(%arg0: i32) -> (i32, i32, i32) {
    %c0_i32 = arith.constant 0 : i32
    %c0_i32_0 = arith.constant 0 : i32
    %c0_i32_1 = arith.constant 0 : i32
    %c0_i32_2 = arith.constant 0 : i32
    return %c0_i32, %c0_i32_0, %c0_i32_1 : i32, i32, i32
  }
  func.func @transform_7(%arg0: i32) -> (i32, i32, i32) {
    %c0_i32 = arith.constant 0 : i32
    %c0_i32_0 = arith.constant 0 : i32
    %c0_i32_1 = arith.constant 0 : i32
    %c0_i32_2 = arith.constant 0 : i32
    return %c0_i32, %c0_i32_0, %c0_i32_1 : i32, i32, i32
  }
  func.func @transform_8(%arg0: i32) -> (i32, i32) {
    %c0_i32 = arith.constant 0 : i32
    %c0_i32_0 = arith.constant 0 : i32
    %c0_i32_1 = arith.constant 0 : i32
    return %c0_i32, %c0_i32_0 : i32, i32
  }
  func.func @transform_9(%arg0: i32) -> (i32, i32) {
    %c0_i32 = arith.constant 0 : i32
    %c0_i32_0 = arith.constant 0 : i32
    %c0_i32_1 = arith.constant 0 : i32
    return %c0_i32, %c0_i32_0 : i32, i32
  }
  func.func @transform_10(%arg0: i32) -> (i32, i32) {
    %c0_i32 = arith.constant 0 : i32
    %c0_i32_0 = arith.constant 0 : i32
    %c0_i32_1 = arith.constant 0 : i32
    return %c0_i32, %c0_i32_0 : i32, i32
  }
  func.func @transform_11(%arg0: i32) -> (i32, i32) {
    %c0_i32 = arith.constant 0 : i32
    %c0_i32_0 = arith.constant 0 : i32
    %c0_i32_1 = arith.constant 0 : i32
    return %c0_i32, %c0_i32_0 : i32, i32
  }
  func.func @transform_12(%arg0: i32) -> (i32, i32, i32) {
    %c0_i32 = arith.constant 0 : i32
    %c0_i32_0 = arith.constant 0 : i32
    %c0_i32_1 = arith.constant 0 : i32
    %c0_i32_2 = arith.constant 0 : i32
    return %c0_i32, %c0_i32_0, %c0_i32_1 : i32, i32, i32
  }
  func.func @transform_13(%arg0: i32) -> (i32, i32, i32) {
    %c0_i32 = arith.constant 0 : i32
    %c0_i32_0 = arith.constant 0 : i32
    %c0_i32_1 = arith.constant 0 : i32
    %c0_i32_2 = arith.constant 0 : i32
    return %c0_i32, %c0_i32_0, %c0_i32_1 : i32, i32, i32
  }
}

</mosaic_0001>

<bundles_post_ra>
// kernel: vlpca_forward.1
= control target key start
LH: loop header
LB: loop body
LE: loop exit
PB: predicated region body
PF: predicated region fallthrough
CT: control target
= control target key end

     0   :  { %19 = vsyncpa [#allocation3], 0  ;;  %s11801_s0 = inlined_call_operand.vmem [shape: f32[2,8,32], index: 0, kind: input, shape index: {}]   ;;  %s11802_s1 = inlined_call_operand.vmem [shape: f32[2,8,32], index: 1, kind: input, shape index: {}]   ;;  %s11803_s2 = inlined_call_operand.vmem [shape: f32[2,1,8], index: 2, kind: input, shape index: {}]   ;;  %s11804_s3 = inlined_call_operand.vmem [shape: f32[2,8,1], index: 3, kind: input, shape index: {}]   ;;  %s11805_s4 = inlined_call_operand.vmem [shape: f32[8,32,32], index: 4, kind: input, shape index: {}]   ;;  %s11806_s5 = inlined_call_operand.hbm [shape: f32[8,32,32], index: 5, kind: input, shape index: {}]   ;;  %s11807_s6 = inlined_call_operand.hbm [shape: f32[8,32,32], index: 6, kind: input, shape index: {}]   ;;  %s11808_s7 = inlined_call_operand.hbm [shape: f32[8,32,32], index: 7, kind: input, shape index: {}]   ;;  %s11809_s8 = inlined_call_operand.vmem [shape: f32[1,32], index: 8, kind: input, shape index: {}]   ;;  %s11810_s9 = inlined_call_operand.vmem [shape: f32[1,32], index: 9, kind: input, shape index: {}]   ;;  %s11811_s10 = inlined_call_operand.vmem [shape: f32[32,128], index: 10, kind: input, shape index: {}]   ;;  %s11812_s11 = inlined_call_operand.vmem [shape: f32[1,128], index: 11, kind: input, shape index: {}]   ;;  %s11813_s12 = inlined_call_operand.vmem [shape: f32[2,16,128], index: 12, kind: output, shape index: {0}]   ;;  %s11814_s13 = inlined_call_operand.vmem [shape: f32[2,1,128], index: 13, kind: output, shape index: {1}]  }
   0x1   :  { %20 = vsyncpa [#allocation5], 0  ;;  %s10365_s25 = smov [#allocation4]   ;;  %s10366_s27 = smov [#allocation2]  }
   0x2   :  { %s48_s26 = sshll.u32 %s10365_s25, 4  ;;  %s36_s28 = sshll.u32 %s10366_s27, 4  ;;  %s49_s26 = int_to_ptr.vmem [resolvable:$true] %s48_s26  ;;  %s10446_s28 = int_to_ptr.vmem [resolvable:$true] %s36_s28 }
   0x3   :  { %s10255_s14 = scalar_lea.hbm %s11807_s6, 4096 }
   0x4   :  { %p10256_p0 = scmp.ne.s32.totalorder %s11807_s6, %s10255_s14  ;;  %p10259_p1 = scmp.lt.u32.totalorder %s10255_s14, %s11807_s6 }
   0x6   :  { %p10261_p2 = pnand %p10259_p1, %p10256_p0 }
   0x8   :  { %10264 = shalt.err (!%p10261_p2)
}
   0x9   :  { %s10265_s19 = scalar_lea.vmem %s49_s26, 4096  ;;  %p10270_p4 = scmp.lt.s32.totalorder %s49_s26, %s49_s26 }
   0xa   :  { %p10266_p3 = scmp.ne.s32.totalorder %s49_s26, %s10265_s19  ;;  %p10271_p5 = scmp.lt.s32.totalorder %s10265_s19, %s10265_s19 }
   0xc   :  { %p10272_p6 = por %p10271_p5, %p10270_p4 }
   0xe   :  { %p10273_p7 = pnand %p10272_p6, %p10266_p3 }
  0x10   :  { %10276 = shalt.err (!%p10273_p7)
}
  0x11   :  { %s10367_s20 = smov 128   ;;  %s10368_s21 = smov 8  }
  0x12   :  { %54 = dma.hbm_to_vmem [thread:$0]  %s11807_s6, 4096, %s49_s26, [#allocation5], %s10367_s20, %s10367_s20, %s10368_s21  }
  0x13   :  { %s10277_s27 = scalar_lea.hbm %s11806_s5, 4096 }
  0x14   :  { %p10278_p8 = scmp.ne.s32.totalorder %s11806_s5, %s10277_s27  ;;  %p10281_p9 = scmp.lt.u32.totalorder %s10277_s27, %s11806_s5 }
  0x16   :  { %p10283_p10 = pnand %p10281_p9, %p10278_p8 }
  0x18   :  { %10286 = shalt.err (!%p10283_p10)
}
  0x19   :  { %s10287_s16 = scalar_lea.vmem %s10446_s28, 4096  ;;  %p10292_p12 = scmp.lt.s32.totalorder %s10446_s28, %s10446_s28 }
  0x1a   :  { %p10288_p11 = scmp.ne.s32.totalorder %s10446_s28, %s10287_s16  ;;  %p10293_p13 = scmp.lt.s32.totalorder %s10287_s16, %s10287_s16 }
  0x1c   :  { %p10294_p0 = por %p10293_p13, %p10292_p12 }
  0x1e   :  { %p10295_p1 = pnand %p10294_p0, %p10288_p11 }
  0x20   :  { %10298 = shalt.err (!%p10295_p1)
}
  0x21   :  { %42 = dma.hbm_to_vmem [thread:$0]  %s11806_s5, 4096, %s10446_s28, [#allocation3], %s10367_s20, %s10367_s20, %s10368_s21  }
  0x22   :  { %s10369_s17 = smov [#allocation6]   ;;  %s10299_s23 = scalar_lea.hbm %s11808_s7, 4096 }
  0x23   :  { %s60_s18 = sshll.u32 %s10369_s17, 4  ;;  %p10300_p2 = scmp.ne.s32.totalorder %s11808_s7, %s10299_s23  ;;  %s61_s18 = int_to_ptr.vmem [resolvable:$true] %s60_s18 }
  0x24   :  { %p10303_p3 = scmp.lt.u32.totalorder %s10299_s23, %s11808_s7 }
  0x26   :  { %p10305_p4 = pnand %p10303_p3, %p10300_p2 }
  0x28   :  { %10308 = shalt.err (!%p10305_p4)
}
  0x29   :  { %s10309_s30 = scalar_lea.vmem %s61_s18, 4096  ;;  %p10314_p6 = scmp.lt.s32.totalorder %s61_s18, %s61_s18 }
  0x2a   :  { %p10310_p5 = scmp.ne.s32.totalorder %s61_s18, %s10309_s30  ;;  %p10315_p7 = scmp.lt.s32.totalorder %s10309_s30, %s10309_s30 }
  0x2c   :  { %p10316_p8 = por %p10315_p7, %p10314_p6 }
  0x2e   :  { %p10317_p9 = pnand %p10316_p8, %p10310_p5 }
  0x30   :  { %10320 = shalt.err (!%p10317_p9)
}
  0x31   :  { %66 = dma.hbm_to_vmem [thread:$0]  %s11808_s7, 4096, %s61_s18, [#allocation5], %s10367_s20, %s10367_s20, %s10368_s21  }
  0x32   :  { %10341 = dma.done.wait [#allocation3], 4096  }
  0x33   :  { %10342 = vsyncadd [#allocation3], 4294963200 }
  0x34   :  { %10343 = dma.done.wait [#allocation5], 8192  }
  0x35   :  { %10344 = vsyncadd [#allocation5], 4294959104  ;;  %v11815_v0 = vmov 0.0|0.0   ;;  %vm10371_vm0 = vmmov 0   ;;  %v11821_v1 = vmov 0.0   ;;  %v84_v2 = vld [vmem:[%s11805_s4] sm:$0xff] }
  0x36   :  { %9663 = vmatprep.subr.bf16.mxu0 %v11815_v0  ;;  %9669 = vmatprep.subr.bf16.mxu1 %v11815_v0  ;;  %v85_v3 = vld [vmem:[%s11805_s4 + $0x8] sm:$0xff]  ;;  %v88_v4 = vld [vmem:[%s11805_s4 + $0x20] sm:$0xff]  ;;  %v86_v7 = vld [vmem:[%s11805_s4 + $0x10] sm:$0xff]  ;;  %vm221_vm1 = vcmask 261120   ;;  %vm2524_vm2 = vcmask 64512   ;;  %vm7840_vm11 = vcmask 7168  }
  0x37   :  { %8775 = vmatprep.mubr.msk.f32.mxu0 %vm10371_vm0, %v11821_v1  ;;  %8786 = vmatprep.mubr.msk.f32.mxu1 %vm10371_vm0, %v11821_v1  ;;  %v10513_v5 = vpack.c.bf16 %v85_v3, %v84_v2  ;;  %v89_v6 = vld [vmem:[%s11805_s4 + $0x28] sm:$0xff]  ;;  %v87_v8 = vld [vmem:[%s11805_s4 + $0x18] sm:$0xff]  ;;  %v90_v10 = vld [vmem:[%s11805_s4 + $0x30] sm:$0xff]  ;;  %vm7831_vm12 = vcmask 57344   ;;  %s11685_s16 = smov 0  }
  0x38   :  { %v10524_v9 = vpack.c.bf16 %v89_v6, %v88_v4  ;;  %v91_v11 = vld [vmem:[%s11805_s4 + $0x38] sm:$0xff]  ;;  %v10533_v12 = vpack.c.bf16 %v87_v8, %v86_v7  ;;  %v92_v14 = vld [vmem:[%s11805_s4 + $0x40] sm:$0xff]  ;;  %v93_v15 = vld [vmem:[%s11805_s4 + $0x48] sm:$0xff] }
  0x39   :  { %9665 = vmatpush3.bf16.msra.mxu0 %v10513_v5  ;;  %v10537_v13 = vpack.c.bf16 %v91_v11, %v90_v10  ;;  %v96_v16 = vld [vmem:[%s11805_s4 + $0x60] sm:$0xff]  ;;  %v97_v17 = vld [vmem:[%s11805_s4 + $0x68] sm:$0xff]  ;;  %v10558_v19 = vpack.c.bf16 %v93_v15, %v92_v14  ;;  %v94_v21 = vld [vmem:[%s11805_s4 + $0x50] sm:$0xff] }
  0x3a   :  { %9671 = vmatpush3.bf16.msra.mxu1 %v10524_v9  ;;  %9666 = vmatprep.subr.bf16.mxu0 %v11815_v0  ;;  %v10556_v18 = vld [vmem:[%s11801_s0] sm:$0xff]  ;;  %v10562_v20 = vpack.c.bf16 %v97_v17, %v96_v16  ;;  %v95_v22 = vld [vmem:[%s11805_s4 + $0x58] sm:$0xff]  ;;  %v98_v23 = vld [vmem:[%s11805_s4 + $0x70] sm:$0xff] }
  0x3b   :  { %9672 = vmatprep.subr.bf16.mxu1 %v11815_v0  ;;  %v99_v24 = vld [vmem:[%s11805_s4 + $0x78] sm:$0xff]  ;;  %v10582_v25 = vpack.c.bf16 %v95_v22, %v94_v21  ;;  %v100_v27 = vld [vmem:[%s11805_s4 + $0x80] sm:$0xff]  ;;  %v101_v28 = vld [vmem:[%s11805_s4 + $0x88] sm:$0xff] }
  0x3c   :  { %v10586_v26 = vpack.c.bf16 %v99_v24, %v98_v23  ;;  %v104_v29 = vld [vmem:[%s11805_s4 + $0xa0] sm:$0xff]  ;;  %v105_v30 = vld [vmem:[%s11805_s4 + $0xa8] sm:$0xff]  ;;  %v10606_v31 = vpack.c.bf16 %v101_v28, %v100_v27  ;;  %v102_v33 = vld [vmem:[%s11805_s4 + $0x90] sm:$0xff] }
  0x3d   :  { %9668 = vmatpush3.bf16.msra.mxu0 %v10533_v12  ;;  %v10610_v32 = vpack.c.bf16 %v105_v30, %v104_v29  ;;  %v103_v34 = vld [vmem:[%s11805_s4 + $0x98] sm:$0xff]  ;;  %v106_v35 = vld [vmem:[%s11805_s4 + $0xb0] sm:$0xff]  ;;  %v108_v39 = vld [vmem:[%s11805_s4 + $0xc0] sm:$0xff] }
  0x3e   :  { %9674 = vmatpush3.bf16.msra.mxu1 %v10537_v13  ;;  %9675 = vmatprep.subr.bf16.mxu0 %v11815_v0  ;;  %v107_v36 = vld [vmem:[%s11805_s4 + $0xb8] sm:$0xff]  ;;  %v10630_v37 = vpack.c.bf16 %v103_v34, %v102_v33  ;;  %v109_v40 = vld [vmem:[%s11805_s4 + $0xc8] sm:$0xff]  ;;  %v112_v41 = vld [vmem:[%s11805_s4 + $0xe0] sm:$0xff] }
  0x3f   :  { %9681 = vmatprep.subr.bf16.mxu1 %v11815_v0  ;;  %v10634_v38 = vpack.c.bf16 %v107_v36, %v106_v35  ;;  %v113_v42 = vld [vmem:[%s11805_s4 + $0xe8] sm:$0xff]  ;;  %v10654_v43 = vpack.c.bf16 %v109_v40, %v108_v39  ;;  %v110_v45 = vld [vmem:[%s11805_s4 + $0xd0] sm:$0xff]  ;;  %v111_v46 = vld [vmem:[%s11805_s4 + $0xd8] sm:$0xff] }
  0x40   :  { %8776 = vmatmul.mubr.msk.f32.vlgmr.msra.gmra.mrb[0].mxu0 %vm221_vm1, %v10556_v18  ;;  %v10658_v44 = vpack.c.bf16 %v113_v42, %v112_v41  ;;  %v114_v47 = vld [vmem:[%s11805_s4 + $0xf0] sm:$0xff]  ;;  %v115_v48 = vld [vmem:[%s11805_s4 + $0xf8] sm:$0xff]  ;;  %v10678_v49 = vpack.c.bf16 %v111_v46, %v110_v45  ;;  %v116_v51 = vld [vmem:[#allocation2] sm:$0xff] }
  0x41   :  { %8787 = vmatmul.mubr.msk.f32.vlgmr.msra.gmra.mrb[0].mxu1 %vm221_vm1, %v10556_v18  ;;  %9677 = vmatpush3.bf16.msra.mxu0 %v10558_v19  ;;  %v10682_v50 = vpack.c.bf16 %v115_v48, %v114_v47  ;;  %v117_v52 = vld [vmem:[#allocation2 + $0x8] sm:$0xff]  ;;  %v120_v53 = vld [vmem:[#allocation2 + $0x20] sm:$0xff]  ;;  %v118_v57 = vld [vmem:[#allocation2 + $0x10] sm:$0xff] }
  0x42   :  { %9683 = vmatpush3.bf16.msra.mxu1 %v10562_v20  ;;  %9678 = vmatprep.subr.bf16.mxu0 %v11815_v0  ;;  %v121_v54 = vld [vmem:[#allocation2 + $0x28] sm:$0xff]  ;;  %v10690_v55 = vpack.c.bf16 %v117_v52, %v116_v51  ;;  %v119_v58 = vld [vmem:[#allocation2 + $0x18] sm:$0xff]  ;;  %v122_v59 = vld [vmem:[#allocation2 + $0x30] sm:$0xff] }
  0x43   :  { %9684 = vmatprep.subr.bf16.mxu1 %v11815_v0  ;;  %8797 = vmatprep.mubr.msk.f32.mxu0 %vm10371_vm0, %v11821_v1  ;;  %v10694_v56 = vpack.c.bf16 %v121_v54, %v120_v53  ;;  %v123_v60 = vld [vmem:[#allocation2 + $0x38] sm:$0xff]  ;;  %v10702_v61 = vpack.c.bf16 %v119_v58, %v118_v57  ;;  %v124_v63 = vld [vmem:[#allocation2 + $0x40] sm:$0xff]  ;;  %v125_v2 = vld [vmem:[#allocation2 + $0x48] sm:$0xff] }
  0x44   :  { %8808 = vmatprep.mubr.msk.f32.mxu1 %vm10371_vm0, %v11821_v1  ;;  %v10706_v62 = vpack.c.bf16 %v123_v60, %v122_v59  ;;  %v128_v3 = vld [vmem:[#allocation2 + $0x60] sm:$0xff]  ;;  %v129_v4 = vld [vmem:[#allocation2 + $0x68] sm:$0xff]  ;;  %v10719_v7 = vpack.c.bf16 %v125_v2, %v124_v63  ;;  %v126_v10 = vld [vmem:[#allocation2 + $0x50] sm:$0xff] }
  0x45   :  { %9680 = vmatpush3.bf16.msra.mxu0 %v10582_v25  ;;  %v10717_v6 = vld [vmem:[%s11802_s1] sm:$0xff]  ;;  %v10723_v8 = vpack.c.bf16 %v129_v4, %v128_v3  ;;  %v127_v11 = vld [vmem:[#allocation2 + $0x58] sm:$0xff]  ;;  %v130_v14 = vld [vmem:[#allocation2 + $0x70] sm:$0xff] }
  0x46   :  { %9686 = vmatpush3.bf16.msra.mxu1 %v10586_v26  ;;  %9687 = vmatprep.subr.bf16.mxu0 %v11815_v0  ;;  %v131_v15 = vld [vmem:[#allocation2 + $0x78] sm:$0xff]  ;;  %v10731_v16 = vpack.c.bf16 %v127_v11, %v126_v10  ;;  %v133_v21 = vld [vmem:[#allocation2 + $0x88] sm:$0xff]  ;;  %v136_v22 = vld [vmem:[#allocation2 + $0xa0] sm:$0xff] }
  0x47   :  { %9693 = vmatprep.subr.bf16.mxu1 %v11815_v0  ;;  %11833 = vst [vmem:[#allocation9_spill] sm:$0xff] %v10723_v8  ;;  %v10735_v17 = vpack.c.bf16 %v131_v15, %v130_v14  ;;  %v137_v23 = vld [vmem:[#allocation2 + $0xa8] sm:$0xff]  ;;  %v134_v28 = vld [vmem:[#allocation2 + $0x90] sm:$0xff]  ;;  %v135_v29 = vld [vmem:[#allocation2 + $0x98] sm:$0xff] }
  0x48   :  { %8798 = vmatmul.mubr.msk.f32.vlgmr.msra.gmra.mrb[2].mxu0 %vm221_vm1, %v10556_v18  ;;  %v10747_v27 = vpack.c.bf16 %v137_v23, %v136_v22  ;;  %v138_v30 = vld [vmem:[#allocation2 + $0xb0] sm:$0xff]  ;;  %v139_v33 = vld [vmem:[#allocation2 + $0xb8] sm:$0xff]  ;;  %v10755_v34 = vpack.c.bf16 %v135_v29, %v134_v28  ;;  %v140_v36 = vld [vmem:[#allocation2 + $0xc0] sm:$0xff] }
  0x49   :  { %8809 = vmatmul.mubr.msk.f32.vlgmr.msra.gmra.mrb[2].mxu1 %vm221_vm1, %v10556_v18  ;;  %9689 = vmatpush3.bf16.msra.mxu0 %v10606_v31  ;;  %11834 = vst [vmem:[#allocation10_spill] sm:$0xff] %v10735_v17  ;;  %v10759_v35 = vpack.c.bf16 %v139_v33, %v138_v30  ;;  %v141_v39 = vld [vmem:[#allocation2 + $0xc8] sm:$0xff]  ;;  %v144_v40 = vld [vmem:[#allocation2 + $0xe0] sm:$0xff]  ;;  %v142_v46 = vld [vmem:[#allocation2 + $0xd0] sm:$0xff] }
  0x4a   :  { %9695 = vmatpush3.bf16.msra.mxu1 %v10610_v32  ;;  %9690 = vmatprep.subr.bf16.mxu0 %v11815_v0  ;;  %11835 = vst [vmem:[#allocation11_spill] sm:$0xff] %v10747_v27  ;;  %v145_v41 = vld [vmem:[#allocation2 + $0xe8] sm:$0xff]  ;;  %v10767_v42 = vpack.c.bf16 %v141_v39, %v140_v36  ;;  %v143_v47 = vld [vmem:[#allocation2 + $0xd8] sm:$0xff]  ;;  %v146_v48 = vld [vmem:[#allocation2 + $0xf0] sm:$0xff] }
  0x4b   :  { %9696 = vmatprep.subr.bf16.mxu1 %v11815_v0  ;;  %8819 = vmatprep.mubr.msk.f32.mxu0 %vm10371_vm0, %v11821_v1  ;;  %11836 = vst [vmem:[#allocation12_spill] sm:$0xff] %v10759_v35  ;;  %v10771_v45 = vpack.c.bf16 %v145_v41, %v144_v40  ;;  %v147_v51 = vld [vmem:[#allocation2 + $0xf8] sm:$0xff]  ;;  %v10779_v52 = vpack.c.bf16 %v143_v47, %v142_v46  ;;  %v148_v54 = vld [vmem:[#allocation4] sm:$0xff]  ;;  %v149_v57 = vld [vmem:[#allocation4 + $0x8] sm:$0xff] }
  0x4c   :  { %8830 = vmatprep.mubr.msk.f32.mxu1 %vm10371_vm0, %v11821_v1  ;;  %v10783_v53 = vpack.c.bf16 %v147_v51, %v146_v48  ;;  %v152_v58 = vld [vmem:[#allocation4 + $0x20] sm:$0xff]  ;;  %v153_v59 = vld [vmem:[#allocation4 + $0x28] sm:$0xff]  ;;  %v10791_v60 = vpack.c.bf16 %v149_v57, %v148_v54  ;;  %v150_v2 = vld [vmem:[#allocation4 + $0x10] sm:$0xff] }
  0x4d   :  { %9692 = vmatpush3.bf16.msra.mxu0 %v10630_v37  ;;  %11837 = vst [vmem:[#allocation13_spill] sm:$0xff] %v10771_v45  ;;  %v10795_v63 = vpack.c.bf16 %v153_v59, %v152_v58  ;;  %v151_v3 = vld [vmem:[#allocation4 + $0x18] sm:$0xff]  ;;  %v154_v4 = vld [vmem:[#allocation4 + $0x30] sm:$0xff]  ;;  %v156_v15 = vld [vmem:[#allocation4 + $0x40] sm:$0xff] }
  0x4e   :  { %9698 = vmatpush3.bf16.msra.mxu1 %v10634_v38  ;;  %9699 = vmatprep.subr.bf16.mxu0 %v11815_v0  ;;  %11838 = vst [vmem:[#allocation14_spill] sm:$0xff] %v10783_v53  ;;  %v10810_v10 = vpack.c.bf16 %v151_v3, %v150_v2  ;;  %v155_v11 = vld [vmem:[#allocation4 + $0x38] sm:$0xff]  ;;  %v161_v23 = vld [vmem:[#allocation4 + $0x68] sm:$0xff]  ;;  %v158_v29 = vld [vmem:[#allocation4 + $0x50] sm:$0xff] }
  0x4f   :  { %9705 = vmatprep.subr.bf16.mxu1 %v11815_v0  ;;  %11839 = vst [vmem:[#allocation15_spill] sm:$0xff] %v10795_v63  ;;  %v10812_v14 = vpack.c.bf16 %v155_v11, %v154_v4  ;;  %v159_v30 = vld [vmem:[#allocation4 + $0x58] sm:$0xff]  ;;  %v162_v33 = vld [vmem:[#allocation4 + $0x70] sm:$0xff]  ;;  %v164_v41 = vld [vmem:[#allocation4 + $0x80] sm:$0xff] }
  0x50   :  { %8820 = vmatmul.mubr.msk.f32.vlgmr.msra.gmra.mrb[4].mxu0 %vm221_vm1, %v10556_v18  ;;  %v10830_v36 = vpack.c.bf16 %v159_v30, %v158_v29  ;;  %v163_v39 = vld [vmem:[#allocation4 + $0x78] sm:$0xff]  ;;  %v165_v46 = vld [vmem:[#allocation4 + $0x88] sm:$0xff]  ;;  %v168_v47 = vld [vmem:[#allocation4 + $0xa0] sm:$0xff] }
  0x51   :  { %8831 = vmatmul.mubr.msk.f32.vlgmr.msra.gmra.mrb[4].mxu1 %vm221_vm1, %v10556_v18  ;;  %9701 = vmatpush3.bf16.msra.mxu0 %v10654_v43  ;;  %11840 = vst [vmem:[#allocation16_spill] sm:$0xff] %v10812_v14  ;;  %v10834_v40 = vpack.c.bf16 %v163_v39, %v162_v33  ;;  %v10842_v48 = vpack.c.bf16 %v165_v46, %v164_v41  ;;  %v169_v51 = vld [vmem:[#allocation4 + $0xa8] sm:$0xff]  ;;  %v166_v57 = vld [vmem:[#allocation4 + $0x90] sm:$0xff]  ;;  %v167_v58 = vld [vmem:[#allocation4 + $0x98] sm:$0xff] }
  0x52   :  { %9707 = vmatpush3.bf16.msra.mxu1 %v10658_v44  ;;  %9702 = vmatprep.subr.bf16.mxu0 %v11815_v0  ;;  %v10846_v54 = vpack.c.bf16 %v169_v51, %v168_v47  ;;  %v170_v59 = vld [vmem:[#allocation4 + $0xb0] sm:$0xff]  ;;  %v10854_v2 = vpack.c.bf16 %v167_v58, %v166_v57  ;;  %v171_v3 = vld [vmem:[#allocation4 + $0xb8] sm:$0xff]  ;;  %v172_v11 = vld [vmem:[#allocation4 + $0xc0] sm:$0xff] }
  0x53   :  { %9708 = vmatprep.subr.bf16.mxu1 %v11815_v0  ;;  %8841 = vmatprep.mubr.msk.f32.mxu0 %vm10371_vm0, %v11821_v1  ;;  %11842 = vst [vmem:[#allocation18_spill] sm:$0xff] %v10834_v40  ;;  %v10858_v4 = vpack.c.bf16 %v171_v3, %v170_v59  ;;  %v174_v30 = vld [vmem:[#allocation4 + $0xd0] sm:$0xff]  ;;  %v175_v33 = vld [vmem:[#allocation4 + $0xd8] sm:$0xff] }
  0x54   :  { %8852 = vmatprep.mubr.msk.f32.mxu1 %vm10371_vm0, %v11821_v1  ;;  %11843 = vst [vmem:[#allocation19_spill] sm:$0xff] %v10846_v54  ;;  %v178_v39 = vld [vmem:[#allocation4 + $0xf0] sm:$0xff]  ;;  %v10878_v41 = vpack.c.bf16 %v175_v33, %v174_v30  ;;  %v179_v46 = vld [vmem:[#allocation4 + $0xf8] sm:$0xff] }
  0x55   :  { %9704 = vmatpush3.bf16.msra.mxu0 %v10678_v49  ;;  %11844 = vst [vmem:[#allocation20_spill] sm:$0xff] %v10858_v4  ;;  %v10882_v47 = vpack.c.bf16 %v179_v46, %v178_v39 }
  0x56   :  { %9710 = vmatpush3.bf16.msra.mxu1 %v10682_v50  ;;  %9711 = vmatprep.subr.bf16.mxu0 %v11815_v0 }
  0x57   :  { %9717 = vmatprep.subr.bf16.mxu1 %v11815_v0  ;;  %11846 = vst [vmem:[#allocation22_spill] sm:$0xff] %v10882_v47 }
  0x58   :  { %8842 = vmatmul.mubr.msk.f32.vlgmr.msra.gmra.mrb[6].mxu0 %vm221_vm1, %v10556_v18 }
  0x59   :  { %8853 = vmatmul.mubr.msk.f32.vlgmr.msra.gmra.mrb[6].mxu1 %vm221_vm1, %v10556_v18  ;;  %9713 = vmatpush3.bf16.msra.mxu0 %v10690_v55  ;;  %v132_v18 = vld [vmem:[#allocation2 + $0x80] sm:$0xff] }
  0x5a   :  { %9719 = vmatpush3.bf16.msra.mxu1 %v10694_v56  ;;  %9714 = vmatprep.subr.bf16.mxu0 %v11815_v0  ;;  %v10743_v24 = vpack.c.bf16 %v133_v21, %v132_v18  ;;  %v157_v18 = vld [vmem:[#allocation4 + $0x48] sm:$0xff]  ;;  %v160_v21 = vld [vmem:[#allocation4 + $0x60] sm:$0xff] }
  0x5b   :  { %9720 = vmatprep.subr.bf16.mxu1 %v11815_v0  ;;  %8863 = vmatprep.mubr.msk.f32.mxu0 %vm10371_vm0, %v11821_v1  ;;  %v10818_v22 = vpack.c.bf16 %v157_v18, %v156_v15  ;;  %v10822_v28 = vpack.c.bf16 %v161_v23, %v160_v21  ;;  %v173_v15 = vld [vmem:[#allocation4 + $0xc8] sm:$0xff]  ;;  %v176_v18 = vld [vmem:[#allocation4 + $0xe0] sm:$0xff] }
  0x5c   :  { %8874 = vmatprep.mubr.msk.f32.mxu1 %vm10371_vm0, %v11821_v1  ;;  %v10866_v21 = vpack.c.bf16 %v173_v15, %v172_v11  ;;  %v177_v23 = vld [vmem:[#allocation4 + $0xe8] sm:$0xff] }
  0x5d   :  { %9716 = vmatpush3.bf16.msra.mxu0 %v10702_v61  ;;  %11841 = vst [vmem:[#allocation17_spill] sm:$0xff] %v10822_v28  ;;  %v10870_v29 = vpack.c.bf16 %v177_v23, %v176_v18 }
  0x5e   :  { %9722 = vmatpush3.bf16.msra.mxu1 %v10706_v62  ;;  %9723 = vmatprep.subr.bf16.mxu0 %v11815_v0 }
  0x5f   :  { %9729 = vmatprep.subr.bf16.mxu1 %v11815_v0  ;;  %11845 = vst [vmem:[#allocation21_spill] sm:$0xff] %v10870_v29 }
  0x60   :  { %8864 = vmatmul.mubr.msk.f32.vlgmr.msra.gmra.mrb[8].mxu0 %vm221_vm1, %v10717_v6 }
  0x61   :  { %8875 = vmatmul.mubr.msk.f32.vlgmr.msra.gmra.mrb[8].mxu1 %vm221_vm1, %v10717_v6  ;;  %9725 = vmatpush3.bf16.msra.mxu0 %v10719_v7 }
  0x62   :  { %9731 = vmatpush3.bf16.msra.mxu1 %v10723_v8  ;;  %9726 = vmatprep.subr.bf16.mxu0 %v11815_v0 }
  0x63   :  { %9732 = vmatprep.subr.bf16.mxu1 %v11815_v0  ;;  %8885 = vmatprep.mubr.msk.f32.mxu0 %vm10371_vm0, %v11821_v1 }
  0x64   :  { %8896 = vmatprep.mubr.msk.f32.mxu1 %vm10371_vm0, %v11821_v1 }
  0x65   :  { %9728 = vmatpush3.bf16.msra.mxu0 %v10731_v16 }
  0x66   :  { %9734 = vmatpush3.bf16.msra.mxu1 %v10735_v17  ;;  %9735 = vmatprep.subr.bf16.mxu0 %v11815_v0 }
  0x67   :  { %9741 = vmatprep.subr.bf16.mxu1 %v11815_v0 }
  0x68   :  { %8886 = vmatmul.mubr.msk.f32.vlgmr.msra.gmra.mrb[10].mxu0 %vm221_vm1, %v10717_v6 }
  0x69   :  { %8897 = vmatmul.mubr.msk.f32.vlgmr.msra.gmra.mrb[10].mxu1 %vm221_vm1, %v10717_v6  ;;  %9737 = vmatpush3.bf16.msra.mxu0 %v10743_v24 }
  0x6a   :  { %9743 = vmatpush3.bf16.msra.mxu1 %v10747_v27  ;;  %9738 = vmatprep.subr.bf16.mxu0 %v11815_v0 }
  0x6b   :  { %9744 = vmatprep.subr.bf16.mxu1 %v11815_v0  ;;  %8907 = vmatprep.mubr.msk.f32.mxu0 %vm10371_vm0, %v11821_v1 }
  0x6c   :  { %8918 = vmatprep.mubr.msk.f32.mxu1 %vm10371_vm0, %v11821_v1 }
  0x6d   :  { %9740 = vmatpush3.bf16.msra.mxu0 %v10755_v34 }
  0x6e   :  { %9746 = vmatpush3.bf16.msra.mxu1 %v10759_v35  ;;  %9747 = vmatprep.subr.bf16.mxu0 %v11815_v0 }
  0x6f   :  { %9753 = vmatprep.subr.bf16.mxu1 %v11815_v0 }
  0x70   :  { %8908 = vmatmul.mubr.msk.f32.vlgmr.msra.gmra.mrb[12].mxu0 %vm221_vm1, %v10717_v6 }
  0x71   :  { %8919 = vmatmul.mubr.msk.f32.vlgmr.msra.gmra.mrb[12].mxu1 %vm221_vm1, %v10717_v6  ;;  %9749 = vmatpush3.bf16.msra.mxu0 %v10767_v42 }
  0x72   :  { %9755 = vmatpush3.bf16.msra.mxu1 %v10771_v45  ;;  %9750 = vmatprep.subr.bf16.mxu0 %v11815_v0 }
  0x73   :  { %9756 = vmatprep.subr.bf16.mxu1 %v11815_v0  ;;  %8929 = vmatprep.mubr.msk.f32.mxu0 %vm10371_vm0, %v11821_v1 }
  0x74   :  { %8940 = vmatprep.mubr.msk.f32.mxu1 %vm10371_vm0, %v11821_v1 }
  0x75   :  { %9752 = vmatpush3.bf16.msra.mxu0 %v10779_v52 }
  0x76   :  { %9758 = vmatpush3.bf16.msra.mxu1 %v10783_v53  ;;  %9759 = vmatprep.subr.bf16.mxu0 %v11815_v0 }
  0x77   :  { %9765 = vmatprep.subr.bf16.mxu1 %v11815_v0 }
  0x78   :  { %8930 = vmatmul.mubr.msk.f32.vlgmr.msra.gmra.mrb[14].mxu0 %vm221_vm1, %v10717_v6 }
  0x79   :  { %8941 = vmatmul.mubr.msk.f32.vlgmr.msra.gmra.mrb[14].mxu1 %vm221_vm1, %v10717_v6  ;;  %9761 = vmatpush3.bf16.msra.mxu0 %v10791_v60 }
  0x7a   :  { %9767 = vmatpush3.bf16.msra.mxu1 %v10795_v63  ;;  %9762 = vmatprep.subr.bf16.mxu0 %v11815_v0 }
  0x7b   :  { %9768 = vmatprep.subr.bf16.mxu1 %v11815_v0  ;;  %8951 = vmatprep.mubr.msk.f32.mxu0 %vm10371_vm0, %v11821_v1 }
  0x7c   :  { %8962 = vmatprep.mubr.msk.f32.mxu1 %vm10371_vm0, %v11821_v1 }
  0x7d   :  { %9764 = vmatpush3.bf16.msra.mxu0 %v10810_v10 }
  0x7e   :  { %9770 = vmatpush3.bf16.msra.mxu1 %v10812_v14  ;;  %9771 = vmatprep.subr.bf16.mxu0 %v11815_v0 }
  0x7f   :  { %9777 = vmatprep.subr.bf16.mxu1 %v11815_v0 }
  0x80   :  { %8952 = vmatmul.mubr.msk.f32.vlgmr.msra.gmra.mrb[16].mxu0 %vm221_vm1, %v10717_v6 }
  0x81   :  { %8963 = vmatmul.mubr.msk.f32.vlgmr.msra.gmra.mrb[16].mxu1 %vm221_vm1, %v10717_v6  ;;  %9773 = vmatpush3.bf16.msra.mxu0 %v10818_v22 }
  0x82   :  { %9779 = vmatpush3.bf16.msra.mxu1 %v10822_v28  ;;  %9774 = vmatprep.subr.bf16.mxu0 %v11815_v0 }
  0x83   :  { %9780 = vmatprep.subr.bf16.mxu1 %v11815_v0  ;;  %8973 = vmatprep.mubr.msk.f32.mxu0 %vm10371_vm0, %v11821_v1 }
  0x84   :  { %8984 = vmatprep.mubr.msk.f32.mxu1 %vm10371_vm0, %v11821_v1 }
  0x85   :  { %9776 = vmatpush3.bf16.msra.mxu0 %v10830_v36 }
  0x86   :  { %9782 = vmatpush3.bf16.msra.mxu1 %v10834_v40  ;;  %9783 = vmatprep.subr.bf16.mxu0 %v11815_v0 }
  0x87   :  { %9789 = vmatprep.subr.bf16.mxu1 %v11815_v0 }
  0x88   :  { %8974 = vmatmul.mubr.msk.f32.vlgmr.msra.gmra.mrb[18].mxu0 %vm221_vm1, %v10717_v6 }
  0x89   :  { %8985 = vmatmul.mubr.msk.f32.vlgmr.msra.gmra.mrb[18].mxu1 %vm221_vm1, %v10717_v6  ;;  %9785 = vmatpush3.bf16.msra.mxu0 %v10842_v48 }
  0x8a   :  { %9791 = vmatpush3.bf16.msra.mxu1 %v10846_v54  ;;  %9786 = vmatprep.subr.bf16.mxu0 %v11815_v0 }
  0x8b   :  { %9792 = vmatprep.subr.bf16.mxu1 %v11815_v0  ;;  %8995 = vmatprep.mubr.msk.f32.mxu0 %vm10371_vm0, %v11821_v1 }
  0x8c   :  { %9006 = vmatprep.mubr.msk.f32.mxu1 %vm10371_vm0, %v11821_v1 }
  0x8d   :  { %9788 = vmatpush3.bf16.msra.mxu0 %v10854_v2 }
  0x8e   :  { %9794 = vmatpush3.bf16.msra.mxu1 %v10858_v4  ;;  %9795 = vmatprep.subr.bf16.mxu0 %v11815_v0 }
  0x8f   :  { %9801 = vmatprep.subr.bf16.mxu1 %v11815_v0 }
  0x90   :  { %8996 = vmatmul.mubr.msk.f32.vlgmr.msra.gmra.mrb[20].mxu0 %vm221_vm1, %v10717_v6 }
  0x91   :  { %9007 = vmatmul.mubr.msk.f32.vlgmr.msra.gmra.mrb[20].mxu1 %vm221_vm1, %v10717_v6  ;;  %9797 = vmatpush3.bf16.msra.mxu0 %v10866_v21 }
  0x92   :  { %9803 = vmatpush3.bf16.msra.mxu1 %v10870_v29  ;;  %9798 = vmatprep.subr.bf16.mxu0 %v11815_v0 }
  0x93   :  { %9804 = vmatprep.subr.bf16.mxu1 %v11815_v0  ;;  %9017 = vmatprep.mubr.msk.f32.mxu0 %vm10371_vm0, %v11821_v1 }
  0x94   :  { %9028 = vmatprep.mubr.msk.f32.mxu1 %vm10371_vm0, %v11821_v1 }
  0x95   :  { %9800 = vmatpush3.bf16.msra.mxu0 %v10878_v41 }
  0x96   :  { %9806 = vmatpush3.bf16.msra.mxu1 %v10882_v47  ;;  %9031 = vmatprep.subr.mxu0 %v11821_v1 }
  0x97   :  { %9036 = vmatprep.subr.mxu1 %v11821_v1 }
  0x98   :  { %9018 = vmatmul.mubr.msk.f32.vlgmr.msra.gmra.mrb[22].mxu0 %vm221_vm1, %v10717_v6 }
  0x99   :  { %9029 = vmatmul.mubr.msk.f32.vlgmr.msra.gmra.mrb[22].mxu1 %vm221_vm1, %v10717_v6  ;;  %9033 = vmatprep.mubr.msk.f32.mxu0 %vm10371_vm0, %v11821_v1 }
  0x9a   :  { %9038 = vmatprep.mubr.msk.f32.mxu1 %vm10371_vm0, %v11821_v1 }
 0x113   :  { %v291_v51 = vpop.f32.mrb[0].mxu0 }
 0x114   :  { %v8777_v57 = vpop.f32.mrb[1].mxu0  ;;  %v361_v58 = vpop.f32.mrb[0].mxu1 }
 0x115   :  { %v8788_v59 = vpop.f32.mrb[1].mxu1 }
 0x11b   :  { %v431_v3 = vpop.f32.mrb[2].mxu0 }
 0x11c   :  { %v8799_v11 = vpop.f32.mrb[3].mxu0  ;;  %v501_v15 = vpop.f32.mrb[2].mxu1 }
 0x11d   :  { %v8810_v18 = vpop.f32.mrb[3].mxu1 }
 0x123   :  { %v571_v23 = vpop.f32.mrb[4].mxu0 }
 0x124   :  { %v8821_v30 = vpop.f32.mrb[5].mxu0  ;;  %v641_v33 = vpop.f32.mrb[4].mxu1 }
 0x125   :  { %v8832_v39 = vpop.f32.mrb[5].mxu1 }
 0x12b   :  { %v711_v46 = vpop.f32.mrb[6].mxu0 }
 0x12c   :  { %v8843_v6 = vpop.f32.mrb[7].mxu0  ;;  %v781_v0 = vpop.f32.mrb[6].mxu1 }
 0x12d   :  { %v8854_v47 = vpop.f32.mrb[7].mxu1 }
 0x133   :  { %v854_v29 = vpop.f32.mrb[8].mxu0 }
 0x134   :  { %v924_v4 = vpop.f32.mrb[8].mxu1  ;;  %v8865_v54 = vpop.f32.mrb[9].mxu0  ;;  %9032 = vmatpush3.xpose.msk.msra.mxu0 %vm221_vm1, %v854_v29 }
 0x135   :  { %9037 = vmatpush3.xpose.msk.msra.mxu1 %vm221_vm1, %v924_v4  ;;  %v8876_v57 = vpop.f32.mrb[9].mxu1  ;;  %9041 = vmatprep.subr.mxu0 %v11821_v1 }
 0x136   :  { %9046 = vmatprep.subr.mxu1 %v11821_v1 }
 0x137   :  { %9034 = vmatmul.mubr.msk.f32.vlgmr.msra.gmra.mrb[24].mxu0 %vm221_vm1, %v291_v51 }
 0x138   :  { %9039 = vmatmul.mubr.msk.f32.vlgmr.msra.gmra.mrb[24].mxu1 %vm221_vm1, %v361_v58  ;;  %9043 = vmatprep.mubr.msk.f32.mxu0 %vm10371_vm0, %v11821_v1 }
 0x139   :  { %9048 = vmatprep.mubr.msk.f32.mxu1 %vm10371_vm0, %v11821_v1 }
 0x13b   :  { %v994_v54 = vpop.f32.mrb[10].mxu0 }
 0x13c   :  { %v1064_v47 = vpop.f32.mrb[10].mxu1  ;;  %v8887_v29 = vpop.f32.mrb[11].mxu0  ;;  %9042 = vmatpush3.xpose.msk.msra.mxu0 %vm221_vm1, %v994_v54 }
 0x13d   :  { %9047 = vmatpush3.xpose.msk.msra.mxu1 %vm221_vm1, %v1064_v47  ;;  %v8898_v4 = vpop.f32.mrb[11].mxu1  ;;  %9051 = vmatprep.subr.mxu0 %v11821_v1 }
 0x13e   :  { %9056 = vmatprep.subr.mxu1 %v11821_v1 }
 0x13f   :  { %9044 = vmatmul.mubr.msk.f32.vlgmr.msra.gmra.mrb[26].mxu0 %vm221_vm1, %v431_v3 }
 0x140   :  { %9049 = vmatmul.mubr.msk.f32.vlgmr.msra.gmra.mrb[26].mxu1 %vm221_vm1, %v501_v15  ;;  %9053 = vmatprep.mubr.msk.f32.mxu0 %vm10371_vm0, %v11821_v1 }
 0x141   :  { %9058 = vmatprep.mubr.msk.f32.mxu1 %vm10371_vm0, %v11821_v1 }
 0x143   :  { %v1134_v51 = vpop.f32.mrb[12].mxu0 }
 0x144   :  { %v1204_v58 = vpop.f32.mrb[12].mxu1  ;;  %9052 = vmatpush3.xpose.msk.msra.mxu0 %vm221_vm1, %v1134_v51  ;;  %v8909_v59 = vpop.f32.mrb[13].mxu0 }
 0x145   :  { %9057 = vmatpush3.xpose.msk.msra.mxu1 %vm221_vm1, %v1204_v58  ;;  %v8920_v11 = vpop.f32.mrb[13].mxu1  ;;  %9061 = vmatprep.subr.mxu0 %v11821_v1 }
 0x146   :  { %9066 = vmatprep.subr.mxu1 %v11821_v1 }
 0x147   :  { %9054 = vmatmul.mubr.msk.f32.vlgmr.msra.gmra.mrb[28].mxu0 %vm221_vm1, %v571_v23 }
 0x148   :  { %9059 = vmatmul.mubr.msk.f32.vlgmr.msra.gmra.mrb[28].mxu1 %vm221_vm1, %v641_v33  ;;  %9063 = vmatprep.mubr.msk.f32.mxu0 %vm10371_vm0, %v11821_v1 }
 0x149   :  { %9068 = vmatprep.mubr.msk.f32.mxu1 %vm10371_vm0, %v11821_v1 }
 0x14b   :  { %v1274_v3 = vpop.f32.mrb[14].mxu0 }
 0x14c   :  { %v1344_v15 = vpop.f32.mrb[14].mxu1  ;;  %v8931_v18 = vpop.f32.mrb[15].mxu0  ;;  %9062 = vmatpush3.xpose.msk.msra.mxu0 %vm221_vm1, %v1274_v3 }
 0x14d   :  { %9067 = vmatpush3.xpose.msk.msra.mxu1 %vm221_vm1, %v1344_v15  ;;  %v8942_v30 = vpop.f32.mrb[15].mxu1  ;;  %9071 = vmatprep.subr.mxu0 %v11821_v1 }
 0x14e   :  { %9076 = vmatprep.subr.mxu1 %v11821_v1 }
 0x14f   :  { %9064 = vmatmul.mubr.msk.f32.vlgmr.msra.gmra.mrb[30].mxu0 %vm221_vm1, %v711_v46 }
 0x150   :  { %9069 = vmatmul.mubr.msk.f32.vlgmr.msra.gmra.mrb[30].mxu1 %vm221_vm1, %v781_v0  ;;  %9073 = vmatprep.mubr.msk.f32.mxu0 %vm10371_vm0, %v11821_v1 }
 0x151   :  { %9078 = vmatprep.mubr.msk.f32.mxu1 %vm10371_vm0, %v11821_v1 }
 0x153   :  { %v1414_v23 = vpop.f32.mrb[16].mxu0 }
 0x154   :  { %v8953_v33 = vpop.f32.mrb[17].mxu0  ;;  %9072 = vmatpush3.msra.mxu0 %v1414_v23  ;;  %v1484_v39 = vpop.f32.mrb[16].mxu1 }
 0x155   :  { %v8964_v6 = vpop.f32.mrb[17].mxu1  ;;  %9077 = vmatpush3.msra.mxu1 %v1484_v39  ;;  %9081 = vmatprep.subr.mxu0 %v11821_v1 }
 0x156   :  { %9086 = vmatprep.subr.mxu1 %v11821_v1 }
 0x15b   :  { %v10940_v57 = vpop.f32.mrb[18].mxu0 }
 0x15c   :  { %v8975_v46 = vpop.f32.mrb[19].mxu0  ;;  %v10942_v0 = vpop.f32.mrb[18].mxu1 }
 0x15d   :  { %v8986_v54 = vpop.f32.mrb[19].mxu1 }
 0x163   :  { %v10944_v47 = vpop.f32.mrb[20].mxu0 }
 0x164   :  { %v8997_v29 = vpop.f32.mrb[21].mxu0  ;;  %v10946_v4 = vpop.f32.mrb[20].mxu1 }
 0x165   :  { %v9008_v51 = vpop.f32.mrb[21].mxu1 }
 0x16b   :  { %v10948_v58 = vpop.f32.mrb[22].mxu0 }
 0x16c   :  { %v9019_v59 = vpop.f32.mrb[23].mxu0  ;;  %v10950_v11 = vpop.f32.mrb[22].mxu1 }
 0x16d   :  { %v9030_v3 = vpop.f32.mrb[23].mxu1 }
 0x20a   :  { %v1980_v15 = vpop.f32.mrb[24].mxu0 }
 0x20b   :  { %v2516_v18 = vmul.f32 0.17677669, %v1980_v15  ;;  %v2056_v30 = vpop.f32.mrb[24].mxu1  ;;  %v9035_v23 = vpop.f32.mrb[25].mxu0 }
 0x20c   :  { %v9040_v33 = vpop.f32.mrb[25].mxu1  ;;  %v2517_v39 = vmul.f32 0.17677669, %v2056_v30 }
 0x20d   :  { %v2525_v6 = vsel %vm2524_vm2, %v2516_v18, -inf }
 0x20e   :  { %2526 = vmax.xlane.f32.xlu0 %v2525_v6  ;;  %v2528_v46 = vsel %vm2524_vm2, %v2517_v39, -inf }
 0x212   :  { %2529 = vmax.xlane.f32.xlu0 %v2528_v46  ;;  %v2132_v54 = vpop.f32.mrb[26].mxu0 }
 0x213   :  { %v2208_v29 = vpop.f32.mrb[26].mxu1  ;;  %v2518_v51 = vmul.f32 0.17677669, %v2132_v54  ;;  %v9045_v59 = vpop.f32.mrb[27].mxu0 }
 0x214   :  { %v9050_v1 = vpop.f32.mrb[27].mxu1  ;;  %v2519_v40 = vmul.f32 0.17677669, %v2208_v29 }
 0x215   :  { %v2531_v3 = vsel %vm2524_vm2, %v2518_v51, -inf }
 0x216   :  { %2532 = vmax.xlane.f32.xlu1 %v2531_v3  ;;  %v2534_v15 = vsel %vm2524_vm2, %v2519_v40, -inf }
 0x21a   :  { %2535 = vmax.xlane.f32.xlu1 %v2534_v15  ;;  %v2284_v23 = vpop.f32.mrb[28].mxu0 }
 0x21b   :  { %v2360_v30 = vpop.f32.mrb[28].mxu1  ;;  %v2520_v33 = vmul.f32 0.17677669, %v2284_v23  ;;  %v9055_v28 = vpop.f32.mrb[29].mxu0 }
 0x21c   :  { %v2521_v6 = vmul.f32 0.17677669, %v2360_v30  ;;  %v9060_v14 = vpop.f32.mrb[29].mxu1 }
 0x21d   :  { %v2537_v46 = vsel %vm2524_vm2, %v2520_v33, -inf }
 0x21e   :  { %v2540_v63 = vsel %vm2524_vm2, %v2521_v6, -inf  ;;  %2538 = vmax.xlane.f32.xlu0 %v2537_v46 }
 0x21f   :  { %2541 = vmax.xlane.f32.xlu1 %v2540_v63 }
 0x222   :  { %v2436_v1 = vpop.f32.mrb[30].mxu0 }
 0x223   :  { %v2522_v54 = vmul.f32 0.17677669, %v2436_v1  ;;  %v2512_v29 = vpop.f32.mrb[30].mxu1  ;;  %v9065_v59 = vpop.f32.mrb[31].mxu0 }
 0x224   :  { %v2523_v3 = vmul.f32 0.17677669, %v2512_v29  ;;  %v9070_v53 = vpop.f32.mrb[31].mxu1 }
 0x225   :  { %v2543_v15 = vsel %vm2524_vm2, %v2522_v54, -inf }
 0x226   :  { %v2546_v45 = vsel %vm2524_vm2, %v2523_v3, -inf  ;;  %2544 = vmax.xlane.f32.xlu0 %v2543_v15 }
 0x227   :  { %2547 = vmax.xlane.f32.xlu1 %v2546_v45 }
 0x29b   :  { %v2527_v28 = vpop.xlane.xlu0 %2526 }
 0x29c   :  { %v2549_v14 = vsub.f32 %v2516_v18, %v2527_v28 }
 0x29e   :  { %v2557_v23 = vmul.f32 1.442695, %v2549_v14 }
 0x29f   :  { %v2530_v30 = vpop.xlane.xlu0 %2529 }
 0x2a0   :  { %10116 = vpow2.f32 %v2557_v23  ;;  %v2550_v35 = vsub.f32 %v2517_v39, %v2530_v30 }
 0x2a2   :  { %v2559_v46 = vmul.f32 1.442695, %v2550_v35 }
 0x2a3   :  { %v2533_v63 = vpop.xlane.xlu1 %2532 }
 0x2a4   :  { %10118 = vpow2.f32 %v2559_v46  ;;  %v2551_v1 = vsub.f32 %v2518_v51, %v2533_v63 }
 0x2a6   :  { %v2561_v27 = vmul.f32 1.442695, %v2551_v1 }
 0x2a7   :  { %v2536_v59 = vpop.xlane.xlu1 %2535 }
 0x2a8   :  { %10120 = vpow2.f32 %v2561_v27  ;;  %v2552_v53 = vsub.f32 %v2519_v40, %v2536_v59 }
 0x2aa   :  { %v10117_v29 = vpop.eup %10116  ;;  %v2563_v17 = vmul.f32 1.442695, %v2552_v53 }
 0x2ab   :  { %v2539_v8 = vpop.xlane.xlu0 %2538  ;;  %v2573_v15 = vsel %vm2524_vm2, %v10117_v29, 0.0 }
 0x2ac   :  { %10122 = vpow2.f32 %v2563_v17  ;;  %v2542_v45 = vpop.xlane.xlu1 %2541  ;;  %v2553_v18 = vsub.f32 %v2520_v33, %v2539_v8  ;;  %2574 = vadd.xlane.f32.xlu0 %v2573_v15 }
 0x2ad   :  { %v2554_v28 = vsub.f32 %v2521_v6, %v2542_v45 }
 0x2ae   :  { %v10119_v14 = vpop.eup %10118  ;;  %v2565_v39 = vmul.f32 1.442695, %v2553_v18 }
 0x2af   :  { %v2567_v35 = vmul.f32 1.442695, %v2554_v28  ;;  %v2576_v23 = vsel %vm2524_vm2, %v10119_v14, 0.0 }
 0x2b0   :  { %10124 = vpow2.f32 %v2565_v39  ;;  %2577 = vadd.xlane.f32.xlu1 %v2576_v23 }
 0x2b1   :  { %10126 = vpow2.f32 %v2567_v35 }
 0x2b2   :  { %v10121_v27 = vpop.eup %10120 }
 0x2b3   :  { %v2545_v40 = vpop.xlane.xlu0 %2544  ;;  %v2579_v51 = vsel %vm2524_vm2, %v10121_v27, 0.0 }
 0x2b4   :  { %v2548_v30 = vpop.xlane.xlu1 %2547  ;;  %v2555_v46 = vsub.f32 %v2522_v54, %v2545_v40  ;;  %2580 = vadd.xlane.f32.xlu0 %v2579_v51 }
 0x2b5   :  { %v2556_v17 = vsub.f32 %v2523_v3, %v2548_v30 }
 0x2b6   :  { %v10123_v63 = vpop.eup %10122  ;;  %v2569_v8 = vmul.f32 1.442695, %v2555_v46  ;;  %v11847_v46 = vmov 0.0  }
 0x2b7   :  { %v2571_v33 = vmul.f32 1.442695, %v2556_v17  ;;  %v2582_v6 = vsel %vm2524_vm2, %v10123_v63, 0.0 }
 0x2b8   :  { %10128 = vpow2.f32 %v2569_v8  ;;  %2583 = vadd.xlane.f32.xlu1 %v2582_v6 }
 0x2b9   :  { %10130 = vpow2.f32 %v2571_v33 }
 0x2ba   :  { %v10125_v1 = vpop.eup %10124 }
 0x2bb   :  { %v10127_v59 = vpop.eup %10126  ;;  %v2585_v53 = vsel %vm2524_vm2, %v10125_v1, 0.0 }
 0x2bc   :  { %v2588_v15 = vsel %vm2524_vm2, %v10127_v59, 0.0  ;;  %2586 = vadd.xlane.f32.xlu0 %v2585_v53 }
 0x2bd   :  { %2589 = vadd.xlane.f32.xlu1 %v2588_v15 }
 0x2c2   :  { %v10966_v45 = vpop.eup %10128 }
 0x2c3   :  { %v10968_v54 = vpop.eup %10130  ;;  %v2591_v3 = vsel %vm2524_vm2, %v10966_v45, 0.0 }
 0x2c4   :  { %v2594_v18 = vsel %vm2524_vm2, %v10968_v54, 0.0  ;;  %2592 = vadd.xlane.f32.xlu0 %v2591_v3 }
 0x2c5   :  { %2595 = vadd.xlane.f32.xlu1 %v2594_v18  ;;  %v184_v18 = vld [vmem:[#allocation6 + $0x20] sm:$0xff] }
 0x339   :  { %v2575_v28 = vpop.xlane.xlu0 %2574 }
 0x33a   :  { %10132 = vrcp.f32 %v2575_v28 }
 0x33d   :  { %v2578_v39 = vpop.xlane.xlu1 %2577 }
 0x33e   :  { %10134 = vrcp.f32 %v2578_v39 }
 0x341   :  { %v2581_v35 = vpop.xlane.xlu0 %2580 }
 0x342   :  { %10136 = vrcp.f32 %v2581_v35 }
 0x344   :  { %v10133_v23 = vpop.eup %10132 }
 0x345   :  { %v2605_v40 = vmul.f32 %v10133_v23, %v10117_v29  ;;  %v2584_v51 = vpop.xlane.xlu1 %2583  ;;  %v182_v23 = vld [vmem:[#allocation6 + $0x10] sm:$0xff] }
 0x346   :  { %10138 = vrcp.f32 %v2584_v51 }
 0x347   :  { %9074 = vmatmul.mubr.msk.f32.vlgmr.msra.gmra.mrb[32].mxu0 %vm2524_vm2, %v2605_v40  ;;  %v183_v40 = vld [vmem:[#allocation6 + $0x18] sm:$0xff] }
 0x348   :  { %v10135_v30 = vpop.eup %10134  ;;  %9082 = vmatpush3.msra.mxu0 %v10940_v57  ;;  %9083 = vmatprep.mubr.msk.f32.mxu0 %vm10371_vm0, %v11847_v46 }
 0x349   :  { %v2606_v17 = vmul.f32 %v10135_v30, %v10119_v14  ;;  %v2587_v8 = vpop.xlane.xlu0 %2586  ;;  %9091 = vmatprep.subr.mxu0 %v11847_v46  ;;  %v11013_v30 = vpack.c.bf16 %v183_v40, %v182_v23  ;;  %v200_v23 = vld [vmem:[#allocation6 + $0xa0] sm:$0xff]  ;;  %v201_v40 = vld [vmem:[#allocation6 + $0xa8] sm:$0xff] }
 0x34a   :  { %v2590_v33 = vpop.xlane.xlu1 %2589  ;;  %10140 = vrcp.f32 %v2587_v8  ;;  %v188_v8 = vld [vmem:[#allocation6 + $0x40] sm:$0xff] }
 0x34b   :  { %10142 = vrcp.f32 %v2590_v33  ;;  %9079 = vmatmul.mubr.msk.f32.vlgmr.msra.gmra.mrb[32].mxu1 %vm2524_vm2, %v2606_v17  ;;  %v189_v33 = vld [vmem:[#allocation6 + $0x48] sm:$0xff] }
 0x34c   :  { %v10137_v29 = vpop.eup %10136  ;;  %9087 = vmatpush3.msra.mxu1 %v10942_v0  ;;  %9088 = vmatprep.mubr.msk.f32.mxu1 %vm10371_vm0, %v11847_v46 }
 0x34d   :  { %v2607_v6 = vmul.f32 %v10137_v29, %v10121_v27  ;;  %9096 = vmatprep.subr.mxu1 %v11847_v46  ;;  %v11028_v29 = vpack.c.bf16 %v189_v33, %v188_v8  ;;  %v11053_v33 = vpack.c.bf16 %v201_v40, %v200_v23  ;;  %v207_v23 = vld [vmem:[#allocation6 + $0xd8] sm:$0xff] }
 0x34f   :  { %9084 = vmatmul.mubr.msk.f32.vlgmr.msra.gmra.mrb[34].mxu0 %vm2524_vm2, %v2607_v6  ;;  %v192_v6 = vld [vmem:[#allocation6 + $0x60] sm:$0xff] }
 0x350   :  { %v10139_v57 = vpop.eup %10138  ;;  %9092 = vmatpush3.msra.mxu0 %v10944_v47  ;;  %9093 = vmatprep.mubr.msk.f32.mxu0 %vm10371_vm0, %v11847_v46 }
 0x351   :  { %v2608_v14 = vmul.f32 %v10139_v57, %v10123_v63  ;;  %v2593_v53 = vpop.xlane.xlu0 %2592  ;;  %9101 = vmatprep.subr.mxu0 %v11847_v46  ;;  %v181_v63 = vld [vmem:[#allocation6 + $0x8] sm:$0xff] }
 0x352   :  { %v2596_v15 = vpop.xlane.xlu1 %2595  ;;  %10144 = vrcp.f32 %v2593_v53  ;;  %v193_v57 = vld [vmem:[#allocation6 + $0x68] sm:$0xff]  ;;  %v191_v53 = vld [vmem:[#allocation6 + $0x58] sm:$0xff] }
 0x353   :  { %10146 = vrcp.f32 %v2596_v15  ;;  %9089 = vmatmul.mubr.msk.f32.vlgmr.msra.gmra.mrb[34].mxu1 %vm2524_vm2, %v2608_v14  ;;  %v190_v14 = vld [vmem:[#allocation6 + $0x50] sm:$0xff] }
 0x354   :  { %v10141_v0 = vpop.eup %10140  ;;  %9097 = vmatpush3.msra.mxu1 %v10946_v4  ;;  %9098 = vmatprep.mubr.msk.f32.mxu1 %vm10371_vm0, %v11847_v46  ;;  %v180_v4 = vld [vmem:[#allocation6] sm:$0xff] }
 0x355   :  { %v10143_v27 = vpop.eup %10142  ;;  %v2609_v47 = vmul.f32 %v10141_v0, %v10125_v1  ;;  %9106 = vmatprep.subr.mxu1 %v11847_v46  ;;  %v11848_v1 = vmov 0.0|0.0   ;;  %v11004_v39 = vpack.c.bf16 %v181_v63, %v180_v4  ;;  %v195_v4 = vld [vmem:[#allocation6 + $0x78] sm:$0xff]  ;;  %v196_v63 = vld [vmem:[#allocation6 + $0x80] sm:$0xff] }
 0x356   :  { %v2610_v3 = vmul.f32 %v10143_v27, %v10127_v59  ;;  %v185_v59 = vld [vmem:[#allocation6 + $0x28] sm:$0xff]  ;;  %v11032_v27 = vpack.c.bf16 %v193_v57, %v192_v6  ;;  %v202_v57 = vld [vmem:[#allocation6 + $0xb0] sm:$0xff] }
 0x357   :  { %9094 = vmatmul.mubr.msk.f32.vlgmr.msra.gmra.mrb[36].mxu0 %vm2524_vm2, %v2609_v47  ;;  %v11007_v35 = vpack.c.bf16 %v185_v59, %v184_v18  ;;  %v11034_v47 = vpack.c.bf16 %v191_v53, %v190_v14  ;;  %v197_v18 = vld [vmem:[#allocation6 + $0x88] sm:$0xff]  ;;  %v203_v14 = vld [vmem:[#allocation6 + $0xb8] sm:$0xff]  ;;  %v204_v53 = vld [vmem:[#allocation6 + $0xc0] sm:$0xff] }
 0x358   :  { %9099 = vmatmul.mubr.msk.f32.vlgmr.msra.gmra.mrb[36].mxu1 %vm2524_vm2, %v2610_v3  ;;  %9102 = vmatpush3.msra.mxu0 %v10948_v58  ;;  %v194_v3 = vld [vmem:[#allocation6 + $0x70] sm:$0xff] }
 0x359   :  { %9107 = vmatpush3.msra.mxu1 %v10950_v11  ;;  %9103 = vmatprep.mubr.msk.f32.mxu0 %vm10371_vm0, %v11847_v46 }
 0x35a   :  { %9108 = vmatprep.mubr.msk.f32.mxu1 %vm10371_vm0, %v11847_v46  ;;  %9807 = vmatprep.subr.bf16.mxu0 %v11848_v1 }
 0x35b   :  { %9813 = vmatprep.subr.bf16.mxu1 %v11848_v1 }
 0x35c   :  { %v10145_v28 = vpop.eup %10144 }
 0x35d   :  { %v10147_v58 = vpop.eup %10146  ;;  %v2611_v11 = vmul.f32 %v10145_v28, %v10966_v45  ;;  %v186_v45 = vld [vmem:[#allocation6 + $0x30] sm:$0xff] }
 0x35e   :  { %v2612_v51 = vmul.f32 %v10147_v58, %v10968_v54  ;;  %v187_v54 = vld [vmem:[#allocation6 + $0x38] sm:$0xff]  ;;  %v11042_v58 = vpack.c.bf16 %v195_v4, %v194_v3  ;;  %v11064_v4 = vpack.c.bf16 %v203_v14, %v202_v57  ;;  %v210_v14 = vld [vmem:[#allocation6 + $0xf0] sm:$0xff] }
 0x35f   :  { %9104 = vmatmul.mubr.msk.f32.vlgmr.msra.gmra.mrb[38].mxu0 %vm2524_vm2, %v2611_v11  ;;  %v11024_v17 = vpack.c.bf16 %v187_v54, %v186_v45  ;;  %v11044_v11 = vpack.c.bf16 %v197_v18, %v196_v63  ;;  %v199_v45 = vld [vmem:[#allocation6 + $0x98] sm:$0xff]  ;;  %v208_v18 = vld [vmem:[#allocation6 + $0xe0] sm:$0xff] }
 0x360   :  { %9109 = vmatmul.mubr.msk.f32.vlgmr.msra.gmra.mrb[38].mxu1 %vm2524_vm2, %v2612_v51  ;;  %9809 = vmatpush3.bf16.msra.mxu0 %v11004_v39  ;;  %v198_v51 = vld [vmem:[#allocation6 + $0x90] sm:$0xff] }
 0x361   :  { %9810 = vmatprep.subr.bf16.mxu0 %v11848_v1  ;;  %9815 = vmatpush3.bf16.msra.mxu1 %v11007_v35  ;;  %v11055_v6 = vpack.c.bf16 %v199_v45, %v198_v51 }
 0x362   :  { %9119 = vmatprep.mubr.msk.f32.mxu0 %vm10371_vm0, %v11847_v46  ;;  %9816 = vmatprep.subr.bf16.mxu1 %v11848_v1 }
 0x363   :  { %9130 = vmatprep.mubr.msk.f32.mxu1 %vm10371_vm0, %v11847_v46 }
 0x364   :  { %9812 = vmatpush3.bf16.msra.mxu0 %v11013_v30 }
 0x365   :  { %9819 = vmatprep.subr.bf16.mxu0 %v11848_v1  ;;  %9818 = vmatpush3.bf16.msra.mxu1 %v11024_v17 }
 0x366   :  { %9825 = vmatprep.subr.bf16.mxu1 %v11848_v1 }
 0x41a   :  { %v2682_v15 = vpop.f32.mrb[32].mxu0 }
 0x41b   :  { %v9075_v0 = vpop.f32.mrb[33].mxu0  ;;  %9120 = vmatmul.mubr.msk.f32.vlgmr.msra.gmra.mrb[40].mxu0 %vm221_vm1, %v2682_v15  ;;  %v205_v15 = vld [vmem:[#allocation6 + $0xc8] sm:$0xff] }
 0x41c   :  { %9821 = vmatpush3.bf16.msra.mxu0 %v11028_v29  ;;  %9141 = vmatprep.mubr.msk.f32.mxu0 %vm10371_vm0, %v11847_v46  ;;  %v11066_v63 = vpack.c.bf16 %v205_v15, %v204_v53  ;;  %v211_v53 = vld [vmem:[#allocation6 + $0xf8] sm:$0xff] }
 0x41d   :  { %9822 = vmatprep.subr.bf16.mxu0 %v11848_v1  ;;  %v11086_v15 = vpack.c.bf16 %v211_v53, %v210_v14 }
 0x41e   :  { %v2755_v59 = vpop.f32.mrb[32].mxu1 }
 0x41f   :  { %v9080_v28 = vpop.f32.mrb[33].mxu1  ;;  %9131 = vmatmul.mubr.msk.f32.vlgmr.msra.gmra.mrb[40].mxu1 %vm221_vm1, %v2755_v59  ;;  %v209_v59 = vld [vmem:[#allocation6 + $0xe8] sm:$0xff] }
 0x420   :  { %9827 = vmatpush3.bf16.msra.mxu1 %v11032_v27  ;;  %9824 = vmatpush3.bf16.msra.mxu0 %v11034_v47  ;;  %v206_v28 = vld [vmem:[#allocation6 + $0xd0] sm:$0xff] }
 0x421   :  { %9828 = vmatprep.subr.bf16.mxu1 %v11848_v1  ;;  %9831 = vmatprep.subr.bf16.mxu0 %v11848_v1  ;;  %v11077_v57 = vpack.c.bf16 %v207_v23, %v206_v28  ;;  %v11104_v28 = vld [vmem:[%s11801_s0 + $0x8] sm:$0xff] }
 0x422   :  { %v2828_v54 = vpop.f32.mrb[34].mxu0  ;;  %9152 = vmatprep.mubr.msk.f32.mxu1 %vm10371_vm0, %v11847_v46 }
 0x423   :  { %v9085_v8 = vpop.f32.mrb[35].mxu0  ;;  %9142 = vmatmul.mubr.msk.f32.vlgmr.msra.gmra.mrb[42].mxu0 %vm221_vm1, %v2828_v54 }
 0x424   :  { %9830 = vmatpush3.bf16.msra.mxu1 %v11042_v58  ;;  %9833 = vmatpush3.bf16.msra.mxu0 %v11044_v11  ;;  %v11075_v8 = vpack.c.bf16 %v209_v59, %v208_v18 }
 0x425   :  { %9837 = vmatprep.subr.bf16.mxu1 %v11848_v1  ;;  %9834 = vmatprep.subr.bf16.mxu0 %v11848_v1 }
 0x426   :  { %v2901_v0 = vpop.f32.mrb[34].mxu1  ;;  %9163 = vmatprep.mubr.msk.f32.mxu0 %vm10371_vm0, %v11847_v46 }
 0x427   :  { %v9090_v3 = vpop.f32.mrb[35].mxu1  ;;  %9153 = vmatmul.mubr.msk.f32.vlgmr.msra.gmra.mrb[42].mxu1 %vm221_vm1, %v2901_v0 }
 0x428   :  { %9839 = vmatpush3.bf16.msra.mxu1 %v11053_v33  ;;  %9836 = vmatpush3.bf16.msra.mxu0 %v11055_v6 }
 0x429   :  { %9840 = vmatprep.subr.bf16.mxu1 %v11848_v1  ;;  %9843 = vmatprep.subr.bf16.mxu0 %v11848_v1 }
 0x42a   :  { %v2974_v40 = vpop.f32.mrb[36].mxu0  ;;  %9174 = vmatprep.mubr.msk.f32.mxu1 %vm10371_vm0, %v11847_v46 }
 0x42b   :  { %v3047_v51 = vpop.f32.mrb[36].mxu1  ;;  %v9095_v45 = vpop.f32.mrb[37].mxu0  ;;  %9164 = vmatmul.mubr.msk.f32.vlgmr.msra.gmra.mrb[44].mxu0 %vm221_vm1, %v2974_v40 }
 0x42c   :  { %v9100_v54 = vpop.f32.mrb[37].mxu1  ;;  %9842 = vmatpush3.bf16.msra.mxu1 %v11064_v4  ;;  %9845 = vmatpush3.bf16.msra.mxu0 %v11066_v63 }
 0x42d   :  { %9849 = vmatprep.subr.bf16.mxu1 %v11848_v1  ;;  %9846 = vmatprep.subr.bf16.mxu0 %v11848_v1 }
 0x42e   :  { %9185 = vmatprep.mubr.msk.f32.mxu0 %vm10371_vm0, %v11847_v46 }
 0x42f   :  { %9175 = vmatmul.mubr.msk.f32.vlgmr.msra.gmra.mrb[44].mxu1 %vm221_vm1, %v3047_v51 }
 0x430   :  { %9851 = vmatpush3.bf16.msra.mxu1 %v11075_v8  ;;  %9848 = vmatpush3.bf16.msra.mxu0 %v11077_v57 }
 0x431   :  { %9852 = vmatprep.subr.bf16.mxu1 %v11848_v1  ;;  %9196 = vmatprep.mubr.msk.f32.mxu1 %vm10371_vm0, %v11847_v46 }
 0x432   :  { %v3120_v0 = vpop.f32.mrb[38].mxu0 }
 0x433   :  { %v3193_v3 = vpop.f32.mrb[38].mxu1  ;;  %v9105_v18 = vpop.f32.mrb[39].mxu0  ;;  %9186 = vmatmul.mubr.msk.f32.vlgmr.msra.gmra.mrb[46].mxu0 %vm221_vm1, %v3120_v0 }
 0x434   :  { %v9110_v59 = vpop.f32.mrb[39].mxu1  ;;  %9854 = vmatpush3.bf16.msra.mxu1 %v11086_v15 }
 0x435   :  { %9863 = vmatprep.subr.bf16.mxu1 %v11848_v1 }
 0x437   :  { %9197 = vmatmul.mubr.msk.f32.vlgmr.msra.gmra.mrb[46].mxu1 %vm221_vm1, %v3193_v3  ;;  %v10208_v3 = vld [vmem:[%s11801_s0] sm:$0xff] }
 0x438   :  { %9865 = vmatpush3.bf16.msra.mxu1 %v10513_v5  ;;  %9218 = vmatprep.mubr.msk.f32.mxu1 %vm10371_vm0, %v11847_v46  ;;  %v11140_v5 = vld [vmem:[%s11802_s1 + $0x8] sm:$0xff] }
 0x439   :  { %9866 = vmatprep.subr.bf16.mxu1 %v11848_v1 }
 0x43c   :  { %9868 = vmatpush3.bf16.msra.mxu1 %v10533_v12 }
 0x43d   :  { %9875 = vmatprep.subr.bf16.mxu1 %v11848_v1 }
 0x43f   :  { %9219 = vmatmul.mubr.msk.f32.vlgmr.msra.gmra.mrb[48].mxu1 %vm221_vm1, %v11104_v28 }
 0x440   :  { %9877 = vmatpush3.bf16.msra.mxu1 %v10558_v19  ;;  %9240 = vmatprep.mubr.msk.f32.mxu1 %vm10371_vm0, %v11847_v46 }
 0x441   :  { %9878 = vmatprep.subr.bf16.mxu1 %v11848_v1 }
 0x444   :  { %9880 = vmatpush3.bf16.msra.mxu1 %v10582_v25 }
 0x445   :  { %9887 = vmatprep.subr.bf16.mxu1 %v11848_v1 }
 0x447   :  { %9241 = vmatmul.mubr.msk.f32.vlgmr.msra.gmra.mrb[50].mxu1 %vm221_vm1, %v11104_v28 }
 0x448   :  { %9889 = vmatpush3.bf16.msra.mxu1 %v10606_v31  ;;  %9262 = vmatprep.mubr.msk.f32.mxu1 %vm10371_vm0, %v11847_v46 }
 0x449   :  { %9890 = vmatprep.subr.bf16.mxu1 %v11848_v1 }
 0x44c   :  { %9892 = vmatpush3.bf16.msra.mxu1 %v10630_v37 }
 0x44d   :  { %9899 = vmatprep.subr.bf16.mxu1 %v11848_v1 }
 0x44f   :  { %9263 = vmatmul.mubr.msk.f32.vlgmr.msra.gmra.mrb[52].mxu1 %vm221_vm1, %v11104_v28 }
 0x450   :  { %9901 = vmatpush3.bf16.msra.mxu1 %v10654_v43  ;;  %9284 = vmatprep.mubr.msk.f32.mxu1 %vm10371_vm0, %v11847_v46 }
 0x451   :  { %9902 = vmatprep.subr.bf16.mxu1 %v11848_v1 }
 0x454   :  { %9904 = vmatpush3.bf16.msra.mxu1 %v10678_v49 }
 0x455   :  { %9911 = vmatprep.subr.bf16.mxu1 %v11848_v1 }
 0x457   :  { %9285 = vmatmul.mubr.msk.f32.vlgmr.msra.gmra.mrb[54].mxu1 %vm221_vm1, %v11104_v28 }
 0x458   :  { %9913 = vmatpush3.bf16.msra.mxu1 %v10690_v55  ;;  %9306 = vmatprep.mubr.msk.f32.mxu1 %vm10371_vm0, %v11847_v46 }
 0x459   :  { %9914 = vmatprep.subr.bf16.mxu1 %v11848_v1 }
 0x45c   :  { %9916 = vmatpush3.bf16.msra.mxu1 %v10702_v61 }
 0x45d   :  { %9923 = vmatprep.subr.bf16.mxu1 %v11848_v1 }
 0x45f   :  { %9307 = vmatmul.mubr.msk.f32.vlgmr.msra.gmra.mrb[56].mxu1 %vm221_vm1, %v11140_v5 }
 0x460   :  { %9925 = vmatpush3.bf16.msra.mxu1 %v10719_v7  ;;  %9328 = vmatprep.mubr.msk.f32.mxu1 %vm10371_vm0, %v11847_v46 }
 0x461   :  { %9926 = vmatprep.subr.bf16.mxu1 %v11848_v1 }
 0x464   :  { %9928 = vmatpush3.bf16.msra.mxu1 %v10731_v16 }
 0x465   :  { %9935 = vmatprep.subr.bf16.mxu1 %v11848_v1 }
 0x467   :  { %9329 = vmatmul.mubr.msk.f32.vlgmr.msra.gmra.mrb[58].mxu1 %vm221_vm1, %v11140_v5 }
 0x468   :  { %9937 = vmatpush3.bf16.msra.mxu1 %v10743_v24  ;;  %9350 = vmatprep.mubr.msk.f32.mxu1 %vm10371_vm0, %v11847_v46 }
 0x469   :  { %9938 = vmatprep.subr.bf16.mxu1 %v11848_v1 }
 0x46c   :  { %9940 = vmatpush3.bf16.msra.mxu1 %v10755_v34 }
 0x46d   :  { %9947 = vmatprep.subr.bf16.mxu1 %v11848_v1 }
 0x46f   :  { %9351 = vmatmul.mubr.msk.f32.vlgmr.msra.gmra.mrb[60].mxu1 %vm221_vm1, %v11140_v5 }
 0x470   :  { %9949 = vmatpush3.bf16.msra.mxu1 %v10767_v42  ;;  %9372 = vmatprep.mubr.msk.f32.mxu1 %vm10371_vm0, %v11847_v46 }
 0x471   :  { %9950 = vmatprep.subr.bf16.mxu1 %v11848_v1 }
 0x474   :  { %9952 = vmatpush3.bf16.msra.mxu1 %v10779_v52 }
 0x475   :  { %9959 = vmatprep.subr.bf16.mxu1 %v11848_v1 }
 0x477   :  { %9373 = vmatmul.mubr.msk.f32.vlgmr.msra.gmra.mrb[62].mxu1 %vm221_vm1, %v11140_v5 }
 0x478   :  { %9961 = vmatpush3.bf16.msra.mxu1 %v10791_v60  ;;  %9394 = vmatprep.mubr.msk.f32.mxu1 %vm10371_vm0, %v11847_v46 }
 0x479   :  { %9962 = vmatprep.subr.bf16.mxu1 %v11848_v1 }
 0x47c   :  { %9964 = vmatpush3.bf16.msra.mxu1 %v10810_v10 }
 0x47d   :  { %9971 = vmatprep.subr.bf16.mxu1 %v11848_v1 }
 0x47f   :  { %9395 = vmatmul.mubr.msk.f32.vlgmr.msra.gmra.mrb[64].mxu1 %vm221_vm1, %v11140_v5 }
 0x480   :  { %9973 = vmatpush3.bf16.msra.mxu1 %v10818_v22  ;;  %9416 = vmatprep.mubr.msk.f32.mxu1 %vm10371_vm0, %v11847_v46 }
 0x481   :  { %9974 = vmatprep.subr.bf16.mxu1 %v11848_v1 }
 0x484   :  { %9976 = vmatpush3.bf16.msra.mxu1 %v10830_v36 }
 0x485   :  { %9983 = vmatprep.subr.bf16.mxu1 %v11848_v1 }
 0x487   :  { %9417 = vmatmul.mubr.msk.f32.vlgmr.msra.gmra.mrb[66].mxu1 %vm221_vm1, %v11140_v5 }
 0x488   :  { %9985 = vmatpush3.bf16.msra.mxu1 %v10842_v48  ;;  %9438 = vmatprep.mubr.msk.f32.mxu1 %vm10371_vm0, %v11847_v46 }
 0x489   :  { %9986 = vmatprep.subr.bf16.mxu1 %v11848_v1 }
 0x48c   :  { %9988 = vmatpush3.bf16.msra.mxu1 %v10854_v2 }
 0x48d   :  { %9995 = vmatprep.subr.bf16.mxu1 %v11848_v1 }
 0x48f   :  { %9439 = vmatmul.mubr.msk.f32.vlgmr.msra.gmra.mrb[68].mxu1 %vm221_vm1, %v11140_v5 }
 0x490   :  { %9997 = vmatpush3.bf16.msra.mxu1 %v10866_v21  ;;  %9460 = vmatprep.mubr.msk.f32.mxu1 %vm10371_vm0, %v11847_v46 }
 0x491   :  { %9998 = vmatprep.subr.bf16.mxu1 %v11848_v1 }
 0x494   :  { %10000 = vmatpush3.bf16.msra.mxu1 %v10878_v41 }
 0x495   :  { %9474 = vmatprep.subr.mxu1 %v11847_v46 }
 0x497   :  { %9461 = vmatmul.mubr.msk.f32.vlgmr.msra.gmra.mrb[70].mxu1 %vm221_vm1, %v11140_v5 }
 0x498   :  { %9476 = vmatprep.mubr.msk.f32.mxu1 %vm10371_vm0, %v11847_v46 }
 0x4ee   :  { %v3266_v12 = vpop.f32.mrb[40].mxu0 }
 0x4ef   :  { %v9121_v19 = vpop.f32.mrb[41].mxu0  ;;  %v3781_v31 = vsel %vm221_vm1, %v3266_v12, 0.0 }
 0x4f2   :  { %v3339_v25 = vpop.f32.mrb[40].mxu1 }
 0x4f3   :  { %v3782_v37 = vsel %vm221_vm1, %v3339_v25, 0.0  ;;  %v9132_v43 = vpop.f32.mrb[41].mxu1 }
 0x4f4   :  { %v3783_v49 = vadd.f32 %v3782_v37, %v3781_v31 }
 0x4f6   :  { %v3412_v55 = vpop.f32.mrb[42].mxu0 }
 0x4f7   :  { %v3784_v61 = vsel %vm221_vm1, %v3412_v55, 0.0  ;;  %v9143_v7 = vpop.f32.mrb[43].mxu0 }
 0x4f8   :  { %v3785_v16 = vadd.f32 %v3784_v61, %v3783_v49 }
 0x4fa   :  { %v3485_v24 = vpop.f32.mrb[42].mxu1 }
 0x4fb   :  { %v3786_v34 = vsel %vm221_vm1, %v3485_v24, 0.0  ;;  %v9154_v42 = vpop.f32.mrb[43].mxu1 }
 0x4fc   :  { %v3787_v52 = vadd.f32 %v3786_v34, %v3785_v16 }
 0x4fe   :  { %v3558_v60 = vpop.f32.mrb[44].mxu0 }
 0x4ff   :  { %v3788_v10 = vsel %vm221_vm1, %v3558_v60, 0.0  ;;  %v9165_v22 = vpop.f32.mrb[45].mxu0  ;;  %v214_v60 = vld [vmem:[%s11811_s10] sm:$0xff] }
 0x500   :  { %v3789_v36 = vadd.f32 %v3788_v10, %v3787_v52  ;;  %v215_v10 = vld [vmem:[%s11811_s10 + $0x8] sm:$0xff]  ;;  %v216_v22 = vld [vmem:[%s11811_s10 + $0x10] sm:$0xff] }
 0x502   :  { %v3631_v48 = vpop.f32.mrb[44].mxu1 }
 0x503   :  { %v3790_v2 = vsel %vm221_vm1, %v3631_v48, 0.0  ;;  %v9176_v21 = vpop.f32.mrb[45].mxu1  ;;  %v217_v48 = vld [vmem:[%s11811_s10 + $0x18] sm:$0xff] }
 0x504   :  { %v3791_v41 = vadd.f32 %v3790_v2, %v3789_v36  ;;  %v11236_v36 = vpack.c.bf16 %v215_v10, %v214_v60  ;;  %v11241_v2 = vpack.c.bf16 %v217_v48, %v216_v22  ;;  %v11858_v60 = vld [vmem:[#allocation18_spill] sm:$0xff]  ;;  %v11859_v10 = vld [vmem:[#allocation19_spill] sm:$0xff]  ;;  %v11860_v22 = vld [vmem:[#allocation20_spill] sm:$0xff] }
 0x505   :  { %v11861_v48 = vld [vmem:[#allocation21_spill] sm:$0xff] }
 0x506   :  { %v3704_v23 = vpop.f32.mrb[46].mxu0  ;;  %9856 = vmatprep.subr.bf16.mxu0 %v11236_v36 }
 0x507   :  { %v3792_v40 = vsel %vm221_vm1, %v3704_v23, 0.0  ;;  %v9187_v51 = vpop.f32.mrb[47].mxu0  ;;  %9858 = vmatpush3.bf16.msra.mxu0 %v11236_v36 }
 0x508   :  { %v3793_v45 = vadd.f32 %v3792_v40, %v3791_v41  ;;  %9860 = vmatprep.subr.bf16.mxu0 %v11241_v2 }
 0x50a   :  { %v3777_v54 = vpop.f32.mrb[46].mxu1 }
 0x50b   :  { %v3794_v14 = vsel %vm221_vm1, %v3777_v54, 0.0  ;;  %v9198_v53 = vpop.f32.mrb[47].mxu1  ;;  %9862 = vmatpush3.bf16.msra.mxu0 %v11241_v2 }
 0x50c   :  { %v3795_v0 = vadd.f32 %v3794_v14, %v3793_v45  ;;  %9869 = vmatprep.subr.bf16.mxu0 %v11848_v1 }
 0x50e   :  { %v3796_v18 = vadd.f32 %v10208_v3, %v3795_v0 }
 0x510   :  { %v3797_v59 = vsel %vm221_vm1, %v3796_v18, 0.0 }
 0x511   :  { %3798 = vadd.xlane.f32.xlu0 %v3797_v59 }
 0x512   :  { %v3984_v12 = vpop.f32.mrb[48].mxu1 }
 0x513   :  { %v9220_v19 = vpop.f32.mrb[49].mxu1 }
 0x51a   :  { %v11215_v25 = vpop.f32.mrb[50].mxu1 }
 0x51b   :  { %v9242_v31 = vpop.f32.mrb[51].mxu1 }
 0x522   :  { %v11217_v37 = vpop.f32.mrb[52].mxu1 }
 0x523   :  { %v9264_v43 = vpop.f32.mrb[53].mxu1 }
 0x52a   :  { %v11219_v49 = vpop.f32.mrb[54].mxu1 }
 0x52b   :  { %v9286_v55 = vpop.f32.mrb[55].mxu1 }
 0x532   :  { %v4547_v61 = vpop.f32.mrb[56].mxu1 }
 0x533   :  { %9475 = vmatpush3.xpose.msk.msra.mxu1 %vm221_vm1, %v4547_v61  ;;  %v9308_v7 = vpop.f32.mrb[57].mxu1  ;;  %v8296_v61 = vld [vmem:[%s11809_s8] ss:$0 sm:$0xff] }
 0x534   :  { %9479 = vmatprep.subr.mxu1 %v11847_v46 }
 0x536   :  { %9477 = vmatmul.mubr.msk.f32.vlgmr.msra.gmra.mrb[72].mxu1 %vm221_vm1, %v3984_v12 }
 0x537   :  { %9481 = vmatprep.mubr.msk.f32.mxu1 %vm10371_vm0, %v11847_v46 }
 0x53a   :  { %v11248_v21 = vpop.f32.mrb[58].mxu1 }
 0x53b   :  { %v9330_v41 = vpop.f32.mrb[59].mxu1 }
 0x53c   :  { %v11862_v41 = vld [vmem:[#allocation22_spill] sm:$0xff] }
 0x542   :  { %v11250_v23 = vpop.f32.mrb[60].mxu1 }
 0x543   :  { %v9352_v40 = vpop.f32.mrb[61].mxu1 }
 0x54a   :  { %v11252_v54 = vpop.f32.mrb[62].mxu1 }
 0x54b   :  { %v9374_v14 = vpop.f32.mrb[63].mxu1 }
 0x552   :  { %v11254_v0 = vpop.f32.mrb[64].mxu1 }
 0x59e   :  { %v3799_v16 = vpop.xlane.xlu0 %3798 }
 0x59f   :  { %v3801_v24 = vmul.f32 0.03125, %v3799_v16 }
 0x5a1   :  { %v3802_v34 = vsub.f32 %v3796_v18, %v3801_v24  ;;  %v9396_v18 = vpop.f32.mrb[65].mxu1  ;;  %v8297_v24 = vld [vmem:[%s11810_s9] ss:$0 sm:$0xff] }
 0x5a2   :  { %v11256_v59 = vpop.f32.mrb[66].mxu1 }
 0x5a3   :  { %v3803_v42 = vmul.f32 %v3802_v34, %v3802_v34  ;;  %v9418_v12 = vpop.f32.mrb[67].mxu1 }
 0x5a4   :  { %v11258_v19 = vpop.f32.mrb[68].mxu1 }
 0x5a5   :  { %v3804_v52 = vsel %vm221_vm1, %v3803_v42, 0.0  ;;  %v9440_v31 = vpop.f32.mrb[69].mxu1 }
 0x5a6   :  { %3805 = vadd.xlane.f32.xlu1 %v3804_v52  ;;  %v11260_v43 = vpop.f32.mrb[70].mxu1 }
 0x5a7   :  { %v9462_v7 = vpop.f32.mrb[71].mxu1 }
 0x633   :  { %v3806_v51 = vpop.xlane.xlu1 %3805 }
 0x634   :  { %v3807_v45 = vmul.f32 0.03125, %v3806_v51 }
 0x636   :  { %v3808_v53 = vadd.f32 1e-05, %v3807_v45 }
 0x638   :  { %10148 = vrsqrt.f32 %v3808_v53 }
 0x642   :  { %v10149_v55 = vpop.eup %10148 }
 0x643   :  { %v3810_v16 = vmul.f32 %v10149_v55, %v3802_v34  ;;  %v11857_v34 = vld [vmem:[#allocation17_spill] sm:$0xff] }
 0x645   :  { %v3817_v42 = vmul.f32 %v8296_v61, %v3810_v16 }
 0x647   :  { %v3824_v52 = vadd.f32 %v8297_v24, %v3817_v42 }
 0x649   :  { %9207 = vmatprep.mubr.msk.f32.mxu0 %vm221_vm1, %v3824_v52 }
 0x64a   :  { %9208 = vmatmul.mubr.msk.f32.vlgmr.msra.gmra.mrb[48].mxu0 %vm221_vm1, %v10208_v3  ;;  %v11856_v3 = vld [vmem:[#allocation16_spill] sm:$0xff] }
 0x64b   :  { %9871 = vmatpush3.bf16.msra.mxu0 %v10524_v9  ;;  %9229 = vmatprep.mubr.msk.f32.mxu0 %vm10371_vm0, %v11847_v46  ;;  %v5673_v9 = vpop.f32.mrb[72].mxu1 }
 0x64c   :  { %9872 = vmatprep.subr.bf16.mxu0 %v11848_v1 }
 0x64f   :  { %9874 = vmatpush3.bf16.msra.mxu0 %v10537_v13  ;;  %v11290_v13 = vmul.f32 0.17677669, %v5673_v9 }
 0x650   :  { %9881 = vmatprep.subr.bf16.mxu0 %v11848_v1 }
 0x652   :  { %9230 = vmatmul.mubr.msk.f32.vlgmr.msra.gmra.mrb[50].mxu0 %vm221_vm1, %v11104_v28 }
 0x653   :  { %9883 = vmatpush3.bf16.msra.mxu0 %v10562_v20  ;;  %9251 = vmatprep.mubr.msk.f32.mxu0 %vm10371_vm0, %v11847_v46  ;;  %v9478_v20 = vpop.f32.mrb[73].mxu1 }
 0x654   :  { %9884 = vmatprep.subr.bf16.mxu0 %v11848_v1 }
 0x657   :  { %9886 = vmatpush3.bf16.msra.mxu0 %v10586_v26  ;;  %v6217_v26 = vsel %vm2524_vm2, %v11290_v13, -inf }
 0x658   :  { %9893 = vmatprep.subr.bf16.mxu0 %v11848_v1  ;;  %6218 = vmax.xlane.f32.xlu0 %v6217_v26 }
 0x65a   :  { %9252 = vmatmul.mubr.msk.f32.vlgmr.msra.gmra.mrb[52].mxu0 %vm221_vm1, %v11104_v28 }
 0x65b   :  { %9895 = vmatpush3.bf16.msra.mxu0 %v10610_v32  ;;  %9273 = vmatprep.mubr.msk.f32.mxu0 %vm10371_vm0, %v11847_v46  ;;  %v11849_v32 = vld [vmem:[#allocation9_spill] sm:$0xff] }
 0x65c   :  { %9896 = vmatprep.subr.bf16.mxu0 %v11848_v1 }
 0x65f   :  { %9898 = vmatpush3.bf16.msra.mxu0 %v10634_v38  ;;  %v11850_v38 = vld [vmem:[#allocation10_spill] sm:$0xff] }
 0x660   :  { %9905 = vmatprep.subr.bf16.mxu0 %v11848_v1 }
 0x662   :  { %9274 = vmatmul.mubr.msk.f32.vlgmr.msra.gmra.mrb[54].mxu0 %vm221_vm1, %v11104_v28 }
 0x663   :  { %9907 = vmatpush3.bf16.msra.mxu0 %v10658_v44  ;;  %9295 = vmatprep.mubr.msk.f32.mxu0 %vm10371_vm0, %v11847_v46  ;;  %v11851_v44 = vld [vmem:[#allocation11_spill] sm:$0xff] }
 0x664   :  { %9908 = vmatprep.subr.bf16.mxu0 %v11848_v1 }
 0x667   :  { %9910 = vmatpush3.bf16.msra.mxu0 %v10682_v50  ;;  %v11852_v50 = vld [vmem:[#allocation12_spill] sm:$0xff] }
 0x668   :  { %9917 = vmatprep.subr.bf16.mxu0 %v11848_v1 }
 0x66a   :  { %9296 = vmatmul.mubr.msk.f32.vlgmr.msra.gmra.mrb[56].mxu0 %vm221_vm1, %v11104_v28  ;;  %v11855_v28 = vld [vmem:[#allocation15_spill] sm:$0xff] }
 0x66b   :  { %9919 = vmatpush3.bf16.msra.mxu0 %v10694_v56  ;;  %9317 = vmatprep.mubr.msk.f32.mxu0 %vm10371_vm0, %v11847_v46  ;;  %v11853_v56 = vld [vmem:[#allocation13_spill] sm:$0xff] }
 0x66c   :  { %9920 = vmatprep.subr.bf16.mxu0 %v11848_v1 }
 0x66f   :  { %9922 = vmatpush3.bf16.msra.mxu0 %v10706_v62  ;;  %v11854_v62 = vld [vmem:[#allocation14_spill] sm:$0xff] }
 0x670   :  { %9929 = vmatprep.subr.bf16.mxu0 %v11848_v1 }
 0x672   :  { %9318 = vmatmul.mubr.msk.f32.vlgmr.msra.gmra.mrb[58].mxu0 %vm221_vm1, %v11140_v5 }
 0x673   :  { %9931 = vmatpush3.bf16.msra.mxu0 %v11849_v32  ;;  %9339 = vmatprep.mubr.msk.f32.mxu0 %vm10371_vm0, %v11847_v46 }
 0x674   :  { %9932 = vmatprep.subr.bf16.mxu0 %v11848_v1 }
 0x677   :  { %9934 = vmatpush3.bf16.msra.mxu0 %v11850_v38 }
 0x678   :  { %9941 = vmatprep.subr.bf16.mxu0 %v11848_v1 }
 0x67a   :  { %9340 = vmatmul.mubr.msk.f32.vlgmr.msra.gmra.mrb[60].mxu0 %vm221_vm1, %v11140_v5 }
 0x67b   :  { %9943 = vmatpush3.bf16.msra.mxu0 %v11851_v44  ;;  %9361 = vmatprep.mubr.msk.f32.mxu0 %vm10371_vm0, %v11847_v46 }
 0x67c   :  { %9944 = vmatprep.subr.bf16.mxu0 %v11848_v1 }
 0x67f   :  { %9946 = vmatpush3.bf16.msra.mxu0 %v11852_v50 }
 0x680   :  { %9953 = vmatprep.subr.bf16.mxu0 %v11848_v1 }
 0x682   :  { %9362 = vmatmul.mubr.msk.f32.vlgmr.msra.gmra.mrb[62].mxu0 %vm221_vm1, %v11140_v5 }
 0x683   :  { %9955 = vmatpush3.bf16.msra.mxu0 %v11853_v56  ;;  %9383 = vmatprep.mubr.msk.f32.mxu0 %vm10371_vm0, %v11847_v46 }
 0x684   :  { %9956 = vmatprep.subr.bf16.mxu0 %v11848_v1 }
 0x687   :  { %9958 = vmatpush3.bf16.msra.mxu0 %v11854_v62 }
 0x688   :  { %9965 = vmatprep.subr.bf16.mxu0 %v11848_v1 }
 0x68a   :  { %9384 = vmatmul.mubr.msk.f32.vlgmr.msra.gmra.mrb[64].mxu0 %vm221_vm1, %v11140_v5 }
 0x68b   :  { %9967 = vmatpush3.bf16.msra.mxu0 %v11855_v28  ;;  %9405 = vmatprep.mubr.msk.f32.mxu0 %vm10371_vm0, %v11847_v46 }
 0x68c   :  { %9968 = vmatprep.subr.bf16.mxu0 %v11848_v1 }
 0x68f   :  { %9970 = vmatpush3.bf16.msra.mxu0 %v11856_v3 }
 0x690   :  { %9977 = vmatprep.subr.bf16.mxu0 %v11848_v1 }
 0x692   :  { %9406 = vmatmul.mubr.msk.f32.vlgmr.msra.gmra.mrb[66].mxu0 %vm221_vm1, %v11140_v5 }
 0x693   :  { %9979 = vmatpush3.bf16.msra.mxu0 %v11857_v34  ;;  %9427 = vmatprep.mubr.msk.f32.mxu0 %vm10371_vm0, %v11847_v46 }
 0x694   :  { %9980 = vmatprep.subr.bf16.mxu0 %v11848_v1 }
 0x697   :  { %9982 = vmatpush3.bf16.msra.mxu0 %v11858_v60 }
 0x698   :  { %9989 = vmatprep.subr.bf16.mxu0 %v11848_v1 }
 0x69a   :  { %9428 = vmatmul.mubr.msk.f32.vlgmr.msra.gmra.mrb[68].mxu0 %vm221_vm1, %v11140_v5 }
 0x69b   :  { %9991 = vmatpush3.bf16.msra.mxu0 %v11859_v10  ;;  %9449 = vmatprep.mubr.msk.f32.mxu0 %vm10371_vm0, %v11847_v46 }
 0x69c   :  { %9992 = vmatprep.subr.bf16.mxu0 %v11848_v1 }
 0x69f   :  { %9994 = vmatpush3.bf16.msra.mxu0 %v11860_v22 }
 0x6a0   :  { %10001 = vmatprep.subr.bf16.mxu0 %v11848_v1 }
 0x6a2   :  { %9450 = vmatmul.mubr.msk.f32.vlgmr.msra.gmra.mrb[70].mxu0 %vm221_vm1, %v11140_v5 }
 0x6a3   :  { %10003 = vmatpush3.bf16.msra.mxu0 %v11861_v48  ;;  %9471 = vmatprep.mubr.msk.f32.mxu0 %vm10371_vm0, %v11847_v46 }
 0x6a4   :  { %10004 = vmatprep.subr.bf16.mxu0 %v11848_v1 }
 0x6a7   :  { %10006 = vmatpush3.bf16.msra.mxu0 %v11862_v41 }
 0x6a8   :  { %9484 = vmatprep.subr.mxu0 %v11847_v46 }
 0x6aa   :  { %9472 = vmatmul.mubr.msk.f32.vlgmr.msra.gmra.mrb[72].mxu0 %vm221_vm1, %v11140_v5  ;;  %v11398_v5 = vld [vmem:[%s11812_s11] ss:$0 sm:$0xff] }
 0x6ab   :  { %9486 = vmatprep.mubr.msk.f32.mxu0 %vm10371_vm0, %v11847_v46 }
 0x6b0   :  { %9485 = vmatpush3.xpose.msk.msra.mxu0 %vm221_vm1, %v11248_v21 }
 0x6b1   :  { %9494 = vmatprep.subr.mxu0 %v11847_v46 }
 0x6b3   :  { %9487 = vmatmul.mubr.msk.f32.vlgmr.msra.gmra.mrb[74].mxu0 %vm221_vm1, %v11215_v25 }
 0x6b4   :  { %9495 = vmatpush3.xpose.msk.msra.mxu0 %vm221_vm1, %v11250_v23  ;;  %9496 = vmatprep.mubr.msk.f32.mxu0 %vm10371_vm0, %v11847_v46 }
 0x6b5   :  { %9504 = vmatprep.subr.mxu0 %v11847_v46 }
 0x6b7   :  { %9497 = vmatmul.mubr.msk.f32.vlgmr.msra.gmra.mrb[76].mxu0 %vm221_vm1, %v11217_v37 }
 0x6b8   :  { %9505 = vmatpush3.xpose.msk.msra.mxu0 %vm221_vm1, %v11252_v54  ;;  %9506 = vmatprep.mubr.msk.f32.mxu0 %vm10371_vm0, %v11847_v46 }
 0x6b9   :  { %9514 = vmatprep.subr.mxu0 %v11847_v46 }
 0x6bb   :  { %9507 = vmatmul.mubr.msk.f32.vlgmr.msra.gmra.mrb[78].mxu0 %vm221_vm1, %v11219_v49 }
 0x6bc   :  { %9515 = vmatpush3.msra.mxu0 %v11254_v0  ;;  %9516 = vmatprep.mubr.msk.f32.mxu0 %vm10371_vm0, %v11847_v46 }
 0x6bd   :  { %9524 = vmatprep.subr.mxu0 %v11847_v46 }
 0x6e5   :  { %v6219_v38 = vpop.xlane.xlu0 %6218 }
 0x6e6   :  { %v6241_v50 = vsub.f32 %v11290_v13, %v6219_v38 }
 0x6e8   :  { %v6249_v62 = vmul.f32 1.442695, %v6241_v50 }
 0x6ea   :  { %10150 = vpow2.f32 %v6249_v62 }
 0x71d   :  { %v9209_v25 = vpop.f32.mrb[48].mxu0 }
 0x71e   :  { %v3906_v37 = vadd.f32 %v9209_v25, %v11398_v5  ;;  %v3900_v21 = vpop.f32.mrb[49].mxu0 }
 0x71f   :  { %v3901_v23 = vadd.f32 %v11398_v5, %v3900_v21 }
 0x720   :  { %3910 = vst [vmem:[%s11813_s12 + $0x8] sm:$0xff] %v3906_v37 }
 0x721   :  { %3909 = vst [vmem:[%s11813_s12] sm:$0xff] %v3901_v23  ;;  %v10151_v23 = vpop.eup %10150 }
 0x725   :  { %v4054_v49 = vpop.f32.mrb[50].mxu0 }
 0x726   :  { %v9231_v40 = vpop.f32.mrb[51].mxu0 }
 0x72d   :  { %v4194_v51 = vpop.f32.mrb[52].mxu0 }
 0x72e   :  { %v9253_v45 = vpop.f32.mrb[53].mxu0 }
 0x735   :  { %v4334_v54 = vpop.f32.mrb[54].mxu0 }
 0x736   :  { %v9275_v14 = vpop.f32.mrb[55].mxu0 }
 0x73d   :  { %v4474_v53 = vpop.f32.mrb[56].mxu0 }
 0x73e   :  { %v9297_v0 = vpop.f32.mrb[57].mxu0 }
 0x745   :  { %v4617_v18 = vpop.f32.mrb[58].mxu0 }
 0x746   :  { %v9319_v12 = vpop.f32.mrb[59].mxu0  ;;  %9480 = vmatpush3.xpose.msk.msra.mxu1 %vm221_vm1, %v4617_v18 }
 0x747   :  { %9489 = vmatprep.subr.mxu1 %v11847_v46 }
 0x749   :  { %9482 = vmatmul.mubr.msk.f32.vlgmr.msra.gmra.mrb[74].mxu1 %vm221_vm1, %v4054_v49  ;;  %v6265_v49 = vsel %vm2524_vm2, %v10151_v23, 0.0 }
 0x74a   :  { %9491 = vmatprep.mubr.msk.f32.mxu1 %vm10371_vm0, %v11847_v46 }
 0x74d   :  { %v4757_v31 = vpop.f32.mrb[60].mxu0 }
 0x74e   :  { %v9341_v55 = vpop.f32.mrb[61].mxu0  ;;  %9490 = vmatpush3.xpose.msk.msra.mxu1 %vm221_vm1, %v4757_v31 }
 0x74f   :  { %9499 = vmatprep.subr.mxu1 %v11847_v46 }
 0x751   :  { %9492 = vmatmul.mubr.msk.f32.vlgmr.msra.gmra.mrb[76].mxu1 %vm221_vm1, %v4194_v51 }
 0x752   :  { %9501 = vmatprep.mubr.msk.f32.mxu1 %vm10371_vm0, %v11847_v46 }
 0x755   :  { %v4897_v61 = vpop.f32.mrb[62].mxu0 }
 0x756   :  { %v9363_v7 = vpop.f32.mrb[63].mxu0  ;;  %9500 = vmatpush3.xpose.msk.msra.mxu1 %vm221_vm1, %v4897_v61 }
 0x757   :  { %9509 = vmatprep.subr.mxu1 %v11847_v46 }
 0x759   :  { %9502 = vmatmul.mubr.msk.f32.vlgmr.msra.gmra.mrb[78].mxu1 %vm221_vm1, %v4334_v54 }
 0x75a   :  { %9511 = vmatprep.mubr.msk.f32.mxu1 %vm10371_vm0, %v11847_v46 }
 0x75d   :  { %v5037_v16 = vpop.f32.mrb[64].mxu0 }
 0x75e   :  { %v9385_v24 = vpop.f32.mrb[65].mxu0  ;;  %9510 = vmatpush3.xpose.msk.msra.mxu1 %vm221_vm1, %v5037_v16 }
 0x75f   :  { %9519 = vmatprep.subr.mxu1 %v11847_v46 }
 0x761   :  { %9512 = vmatmul.mubr.msk.f32.vlgmr.msra.gmra.mrb[80].mxu1 %vm221_vm1, %v4474_v53 }
 0x762   :  { %9521 = vmatprep.mubr.msk.f32.mxu1 %vm10371_vm0, %v11847_v46 }
 0x765   :  { %v5177_v42 = vpop.f32.mrb[66].mxu0 }
 0x766   :  { %v9407_v52 = vpop.f32.mrb[67].mxu0  ;;  %9520 = vmatpush3.msra.mxu1 %v5177_v42 }
 0x767   :  { %9529 = vmatprep.subr.mxu1 %v11847_v46 }
 0x76d   :  { %v11429_v9 = vpop.f32.mrb[68].mxu0 }
 0x76e   :  { %v9429_v20 = vpop.f32.mrb[69].mxu0 }
 0x775   :  { %v11431_v26 = vpop.f32.mrb[70].mxu0 }
 0x776   :  { %v9451_v32 = vpop.f32.mrb[71].mxu0 }
 0x77d   :  { %v11433_v44 = vpop.f32.mrb[72].mxu0 }
 0x77e   :  { %v9473_v56 = vpop.f32.mrb[73].mxu0 }
 0x786   :  { %v5825_v28 = vpop.f32.mrb[74].mxu0 }
 0x787   :  { %v6211_v3 = vmul.f32 0.17677669, %v5825_v28  ;;  %v9488_v34 = vpop.f32.mrb[75].mxu0 }
 0x789   :  { %v6223_v60 = vsel %vm2524_vm2, %v6211_v3, -inf }
 0x78a   :  { %6224 = vmax.xlane.f32.xlu0 %v6223_v60  ;;  %v5977_v10 = vpop.f32.mrb[76].mxu0 }
 0x78b   :  { %v6213_v22 = vmul.f32 0.17677669, %v5977_v10  ;;  %v9498_v48 = vpop.f32.mrb[77].mxu0 }
 0x78d   :  { %v6229_v41 = vsel %vm2524_vm2, %v6213_v22, -inf }
 0x78e   :  { %6230 = vmax.xlane.f32.xlu0 %v6229_v41  ;;  %v6129_v25 = vpop.f32.mrb[78].mxu0 }
 0x78f   :  { %v6215_v37 = vmul.f32 0.17677669, %v6129_v25  ;;  %v9508_v21 = vpop.f32.mrb[79].mxu0 }
 0x791   :  { %v6235_v13 = vsel %vm2524_vm2, %v6215_v37, -inf }
 0x792   :  { %6236 = vmax.xlane.f32.xlu0 %v6235_v13 }
 0x796   :  { %6266 = vadd.xlane.f32.xlu0 %v6265_v49 }
 0x817   :  { %v6225_v40 = vpop.xlane.xlu0 %6224 }
 0x818   :  { %v6243_v51 = vsub.f32 %v6211_v3, %v6225_v40 }
 0x81a   :  { %v6253_v45 = vmul.f32 1.442695, %v6243_v51 }
 0x81b   :  { %v6231_v54 = vpop.xlane.xlu0 %6230 }
 0x81c   :  { %10152 = vpow2.f32 %v6253_v45  ;;  %v6245_v14 = vsub.f32 %v6213_v22, %v6231_v54  ;;  %v5749_v53 = vpop.f32.mrb[74].mxu1 }
 0x81d   :  { %v6210_v0 = vmul.f32 0.17677669, %v5749_v53  ;;  %v9483_v18 = vpop.f32.mrb[75].mxu1 }
 0x81e   :  { %v6257_v12 = vmul.f32 1.442695, %v6245_v14 }
 0x81f   :  { %v6237_v31 = vpop.xlane.xlu0 %6236  ;;  %v6220_v55 = vsel %vm2524_vm2, %v6210_v0, -inf }
 0x820   :  { %10154 = vpow2.f32 %v6257_v12  ;;  %v6247_v61 = vsub.f32 %v6215_v37, %v6237_v31  ;;  %6221 = vmax.xlane.f32.xlu1 %v6220_v55 }
 0x822   :  { %v6261_v7 = vmul.f32 1.442695, %v6247_v61 }
 0x823   :  { %v6267_v16 = vpop.xlane.xlu0 %6266 }
 0x824   :  { %10156 = vpow2.f32 %v6261_v7  ;;  %v5901_v24 = vpop.f32.mrb[76].mxu1 }
 0x825   :  { %10158 = vrcp.f32 %v6267_v16  ;;  %v6212_v42 = vmul.f32 0.17677669, %v5901_v24  ;;  %v9493_v52 = vpop.f32.mrb[77].mxu1 }
 0x826   :  { %v10153_v20 = vpop.eup %10152 }
 0x827   :  { %v6226_v32 = vsel %vm2524_vm2, %v6212_v42, -inf  ;;  %v6271_v38 = vsel %vm2524_vm2, %v10153_v20, 0.0 }
 0x828   :  { %6227 = vmax.xlane.f32.xlu1 %v6226_v32  ;;  %6272 = vadd.xlane.f32.xlu0 %v6271_v38 }
 0x82a   :  { %v10155_v50 = vpop.eup %10154 }
 0x82b   :  { %v6277_v56 = vsel %vm2524_vm2, %v10155_v50, 0.0 }
 0x82c   :  { %v6053_v62 = vpop.f32.mrb[78].mxu1  ;;  %6278 = vadd.xlane.f32.xlu0 %v6277_v56 }
 0x82d   :  { %v6214_v28 = vmul.f32 0.17677669, %v6053_v62  ;;  %v9503_v3 = vpop.f32.mrb[79].mxu1 }
 0x82e   :  { %v10157_v34 = vpop.eup %10156 }
 0x82f   :  { %v10159_v60 = vpop.eup %10158  ;;  %v6232_v10 = vsel %vm2524_vm2, %v6214_v28, -inf  ;;  %v6283_v22 = vsel %vm2524_vm2, %v10157_v34, 0.0 }
 0x830   :  { %v6297_v48 = vmul.f32 %v10159_v60, %v10151_v23  ;;  %6233 = vmax.xlane.f32.xlu1 %v6232_v10  ;;  %6284 = vadd.xlane.f32.xlu0 %v6283_v22 }
 0x832   :  { %9517 = vmatmul.mubr.msk.f32.vlgmr.msra.gmra.mrb[80].mxu0 %vm2524_vm2, %v6297_v48 }
 0x833   :  { %9525 = vmatpush3.msra.mxu0 %v11256_v59  ;;  %9526 = vmatprep.mubr.msk.f32.mxu0 %vm10371_vm0, %v11847_v46 }
 0x834   :  { %v6205_v41 = vpop.f32.mrb[80].mxu1  ;;  %9534 = vmatprep.subr.mxu0 %v11847_v46 }
 0x835   :  { %v6216_v25 = vmul.f32 0.17677669, %v6205_v41  ;;  %v9513_v37 = vpop.f32.mrb[81].mxu1 }
 0x837   :  { %v6238_v21 = vsel %vm2524_vm2, %v6216_v25, -inf }
 0x838   :  { %6239 = vmax.xlane.f32.xlu1 %v6238_v21 }
 0x8ad   :  { %v6222_v13 = vpop.xlane.xlu1 %6221 }
 0x8ae   :  { %v6242_v49 = vsub.f32 %v6210_v0, %v6222_v13 }
 0x8b0   :  { %v6251_v23 = vmul.f32 1.442695, %v6242_v49 }
 0x8b2   :  { %10160 = vpow2.f32 %v6251_v23 }
 0x8b5   :  { %v6228_v40 = vpop.xlane.xlu1 %6227  ;;  %v6273_v51 = vpop.xlane.xlu0 %6272 }
 0x8b6   :  { %v6244_v45 = vsub.f32 %v6212_v42, %v6228_v40  ;;  %10162 = vrcp.f32 %v6273_v51 }
 0x8b8   :  { %v6255_v59 = vmul.f32 1.442695, %v6244_v45 }
 0x8b9   :  { %v6279_v54 = vpop.xlane.xlu0 %6278 }
 0x8ba   :  { %10164 = vpow2.f32 %v6255_v59  ;;  %v11551_v59 = vld [vmem:[%s11801_s0 + $0x8] sm:$0xff] }
 0x8bb   :  { %10166 = vrcp.f32 %v6279_v54  ;;  %v7594_v54 = vmul.f32 %v11551_v59, %v11551_v59 }
 0x8bc   :  { %v10161_v14 = vpop.eup %10160 }
 0x8bd   :  { %v6234_v53 = vpop.xlane.xlu1 %6233  ;;  %v6285_v18 = vpop.xlane.xlu0 %6284  ;;  %v6268_v12 = vsel %vm2524_vm2, %v10161_v14, 0.0 }
 0x8be   :  { %v6246_v31 = vsub.f32 %v6214_v28, %v6234_v53  ;;  %10168 = vrcp.f32 %v6285_v18  ;;  %6269 = vadd.xlane.f32.xlu1 %v6268_v12 }
 0x8c0   :  { %v10163_v55 = vpop.eup %10162  ;;  %v6259_v0 = vmul.f32 1.442695, %v6246_v31 }
 0x8c1   :  { %v6299_v61 = vmul.f32 %v10163_v55, %v10153_v20 }
 0x8c2   :  { %10170 = vpow2.f32 %v6259_v0 }
 0x8c3   :  { %9527 = vmatmul.mubr.msk.f32.vlgmr.msra.gmra.mrb[82].mxu0 %vm2524_vm2, %v6299_v61 }
 0x8c4   :  { %v10165_v7 = vpop.eup %10164  ;;  %9535 = vmatpush3.msra.mxu0 %v11258_v19  ;;  %9536 = vmatprep.mubr.msk.f32.mxu0 %vm10371_vm0, %v11847_v46 }
 0x8c5   :  { %v10167_v16 = vpop.eup %10166  ;;  %v6240_v24 = vpop.xlane.xlu1 %6239  ;;  %v6274_v42 = vsel %vm2524_vm2, %v10165_v7, 0.0  ;;  %9544 = vmatprep.subr.mxu0 %v11847_v46 }
 0x8c6   :  { %v6301_v52 = vmul.f32 %v10167_v16, %v10155_v50  ;;  %v6248_v32 = vsub.f32 %v6216_v25, %v6240_v24  ;;  %6275 = vadd.xlane.f32.xlu1 %v6274_v42 }
 0x8c8   :  { %v10169_v38 = vpop.eup %10168  ;;  %v6263_v20 = vmul.f32 1.442695, %v6248_v32  ;;  %9537 = vmatmul.mubr.msk.f32.vlgmr.msra.gmra.mrb[84].mxu0 %vm2524_vm2, %v6301_v52 }
 0x8c9   :  { %v6303_v56 = vmul.f32 %v10169_v38, %v10157_v34  ;;  %9545 = vmatpush3.msra.mxu0 %v11260_v43  ;;  %9546 = vmatprep.mubr.msk.f32.mxu0 %vm10371_vm0, %v11847_v46 }
 0x8ca   :  { %10172 = vpow2.f32 %v6263_v20  ;;  %10007 = vmatprep.subr.bf16.mxu0 %v11848_v1 }
 0x8cc   :  { %v10171_v19 = vpop.eup %10170  ;;  %9547 = vmatmul.mubr.msk.f32.vlgmr.msra.gmra.mrb[86].mxu0 %vm2524_vm2, %v6303_v56 }
 0x8cd   :  { %v6280_v50 = vsel %vm2524_vm2, %v10171_v19, 0.0  ;;  %10009 = vmatpush3.bf16.msra.mxu0 %v11004_v39  ;;  %9562 = vmatprep.mubr.msk.f32.mxu0 %vm10371_vm0, %v11847_v46 }
 0x8ce   :  { %6281 = vadd.xlane.f32.xlu1 %v6280_v50  ;;  %10010 = vmatprep.subr.bf16.mxu0 %v11848_v1 }
 0x8d1   :  { %10012 = vmatpush3.bf16.msra.mxu0 %v11013_v30 }
 0x8d2   :  { %10019 = vmatprep.subr.bf16.mxu0 %v11848_v1 }
 0x8d4   :  { %v10173_v43 = vpop.eup %10172 }
 0x8d5   :  { %v6286_v62 = vsel %vm2524_vm2, %v10173_v43, 0.0 }
 0x8d6   :  { %6287 = vadd.xlane.f32.xlu1 %v6286_v62 }
 0x905   :  { %v6374_v28 = vpop.f32.mrb[80].mxu0 }
 0x906   :  { %v9518_v3 = vpop.f32.mrb[81].mxu0  ;;  %9563 = vmatmul.mubr.msk.f32.vlgmr.msra.gmra.mrb[88].mxu0 %vm221_vm1, %v6374_v28 }
 0x907   :  { %10021 = vmatpush3.bf16.msra.mxu0 %v11028_v29  ;;  %9584 = vmatprep.mubr.msk.f32.mxu0 %vm10371_vm0, %v11847_v46 }
 0x908   :  { %10022 = vmatprep.subr.bf16.mxu0 %v11848_v1 }
 0x90b   :  { %10024 = vmatpush3.bf16.msra.mxu0 %v11034_v47 }
 0x90c   :  { %10031 = vmatprep.subr.bf16.mxu0 %v11848_v1 }
 0x94b   :  { %v6270_v39 = vpop.xlane.xlu1 %6269 }
 0x94c   :  { %10174 = vrcp.f32 %v6270_v39  ;;  %v11567_v39 = vld [vmem:[%s11802_s1] sm:$0xff] }
 0x953   :  { %v6276_v30 = vpop.xlane.xlu1 %6275 }
 0x954   :  { %10176 = vrcp.f32 %v6276_v30 }
 0x956   :  { %v10175_v34 = vpop.eup %10174 }
 0x957   :  { %v6298_v60 = vmul.f32 %v10175_v34, %v10161_v14  ;;  %v7598_v14 = vsel %vm221_vm1, %v7594_v54, 0.0 }
 0x959   :  { %9522 = vmatmul.mubr.msk.f32.vlgmr.msra.gmra.mrb[82].mxu1 %vm2524_vm2, %v6298_v60  ;;  %v7621_v60 = vmul.f32 %v11567_v39, %v11567_v39 }
 0x95a   :  { %9530 = vmatpush3.msra.mxu1 %v11429_v9  ;;  %9531 = vmatprep.mubr.msk.f32.mxu1 %vm10371_vm0, %v11847_v46 }
 0x95b   :  { %v6282_v29 = vpop.xlane.xlu1 %6281  ;;  %9539 = vmatprep.subr.mxu1 %v11847_v46 }
 0x95c   :  { %10178 = vrcp.f32 %v6282_v29 }
 0x95e   :  { %v10177_v47 = vpop.eup %10176 }
 0x95f   :  { %v6300_v10 = vmul.f32 %v10177_v47, %v10165_v7  ;;  %v7623_v47 = vsel %vm221_vm1, %v7621_v60, 0.0 }
 0x961   :  { %9532 = vmatmul.mubr.msk.f32.vlgmr.msra.gmra.mrb[84].mxu1 %vm2524_vm2, %v6300_v10  ;;  %v11577_v10 = vld [vmem:[%s11802_s1 + $0x8] sm:$0xff] }
 0x962   :  { %9540 = vmatpush3.msra.mxu1 %v11431_v26  ;;  %9541 = vmatprep.mubr.msk.f32.mxu1 %vm10371_vm0, %v11847_v46 }
 0x963   :  { %v6288_v22 = vpop.xlane.xlu1 %6287  ;;  %9549 = vmatprep.subr.mxu1 %v11847_v46 }
 0x964   :  { %10180 = vrcp.f32 %v6288_v22  ;;  %v7622_v22 = vmul.f32 %v11577_v10, %v11577_v10 }
 0x966   :  { %v10179_v9 = vpop.eup %10178 }
 0x967   :  { %v6302_v48 = vmul.f32 %v10179_v9, %v10171_v19  ;;  %v7626_v9 = vsel %vm221_vm1, %v7622_v22, 0.0 }
 0x969   :  { %9542 = vmatmul.mubr.msk.f32.vlgmr.msra.gmra.mrb[86].mxu1 %vm2524_vm2, %v6302_v48 }
 0x96a   :  { %9550 = vmatpush3.msra.mxu1 %v11433_v44  ;;  %9551 = vmatprep.mubr.msk.f32.mxu1 %vm10371_vm0, %v11847_v46 }
 0x96b   :  { %10013 = vmatprep.subr.bf16.mxu1 %v11848_v1 }
 0x96e   :  { %v10181_v41 = vpop.eup %10180 }
 0x96f   :  { %v6304_v26 = vmul.f32 %v10181_v41, %v10173_v43 }
 0x971   :  { %9552 = vmatmul.mubr.msk.f32.vlgmr.msra.gmra.mrb[88].mxu1 %vm2524_vm2, %v6304_v26 }
 0x972   :  { %10015 = vmatpush3.bf16.msra.mxu1 %v11007_v35  ;;  %9573 = vmatprep.mubr.msk.f32.mxu1 %vm10371_vm0, %v11847_v46 }
 0x973   :  { %10016 = vmatprep.subr.bf16.mxu1 %v11848_v1 }
 0x976   :  { %10018 = vmatpush3.bf16.msra.mxu1 %v11024_v17 }
 0x977   :  { %10025 = vmatprep.subr.bf16.mxu1 %v11848_v1 }
 0x996   :  { %v6520_v44 = vpop.f32.mrb[82].mxu0 }
 0x997   :  { %v9528_v25 = vpop.f32.mrb[83].mxu0  ;;  %9585 = vmatmul.mubr.msk.f32.vlgmr.msra.gmra.mrb[90].mxu0 %vm221_vm1, %v6520_v44 }
 0x998   :  { %10033 = vmatpush3.bf16.msra.mxu0 %v11044_v11  ;;  %9606 = vmatprep.mubr.msk.f32.mxu0 %vm10371_vm0, %v11847_v46 }
 0x999   :  { %10034 = vmatprep.subr.bf16.mxu0 %v11848_v1 }
 0x99b   :  { %v6666_v35 = vpop.f32.mrb[84].mxu0 }
 0x99c   :  { %v9538_v37 = vpop.f32.mrb[85].mxu0  ;;  %10036 = vmatpush3.bf16.msra.mxu0 %v11055_v6 }
 0x99d   :  { %10043 = vmatprep.subr.bf16.mxu0 %v11848_v1 }
 0x99f   :  { %v6812_v17 = vpop.f32.mrb[86].mxu0  ;;  %9607 = vmatmul.mubr.msk.f32.vlgmr.msra.gmra.mrb[92].mxu0 %vm221_vm1, %v6666_v35 }
 0x9a0   :  { %v9548_v21 = vpop.f32.mrb[87].mxu0  ;;  %10045 = vmatpush3.bf16.msra.mxu0 %v11066_v63  ;;  %9628 = vmatprep.mubr.msk.f32.mxu0 %vm10371_vm0, %v11847_v46 }
 0x9a1   :  { %10046 = vmatprep.subr.bf16.mxu0 %v11848_v1 }
 0x9a4   :  { %10048 = vmatpush3.bf16.msra.mxu0 %v11077_v57 }
 0x9a5   :  { %10056 = vmatprep.subr.bf16.mxu0 %v11236_v36 }
 0x9a7   :  { %9629 = vmatmul.mubr.msk.f32.vlgmr.msra.gmra.mrb[94].mxu0 %vm221_vm1, %v6812_v17 }
 0x9a8   :  { %10058 = vmatpush3.bf16.msra.mxu0 %v11236_v36 }
 0x9a9   :  { %10060 = vmatprep.subr.bf16.mxu0 %v11241_v2 }
 0x9ac   :  { %10062 = vmatpush3.bf16.msra.mxu0 %v11241_v2 }
 0x9d9   :  { %v6958_v11 = vpop.f32.mrb[88].mxu0 }
 0x9da   :  { %v9564_v6 = vpop.f32.mrb[89].mxu0  ;;  %v7473_v18 = vsel %vm221_vm1, %v6958_v11, 0.0 }
 0xa2c   :  { %v6447_v63 = vpop.f32.mrb[82].mxu1 }
 0xa2d   :  { %v9523_v13 = vpop.f32.mrb[83].mxu1  ;;  %9574 = vmatmul.mubr.msk.f32.vlgmr.msra.gmra.mrb[90].mxu1 %vm221_vm1, %v6447_v63 }
 0xa2e   :  { %10027 = vmatpush3.bf16.msra.mxu1 %v11032_v27  ;;  %9595 = vmatprep.mubr.msk.f32.mxu1 %vm10371_vm0, %v11847_v46 }
 0xa2f   :  { %10028 = vmatprep.subr.bf16.mxu1 %v11848_v1 }
 0xa32   :  { %10030 = vmatpush3.bf16.msra.mxu1 %v11042_v58 }
 0xa33   :  { %10037 = vmatprep.subr.bf16.mxu1 %v11848_v1 }
 0xa34   :  { %v6593_v57 = vpop.f32.mrb[84].mxu1 }
 0xa35   :  { %v9533_v36 = vpop.f32.mrb[85].mxu1  ;;  %9596 = vmatmul.mubr.msk.f32.vlgmr.msra.gmra.mrb[92].mxu1 %vm221_vm1, %v6593_v57 }
 0xa36   :  { %10039 = vmatpush3.bf16.msra.mxu1 %v11053_v33  ;;  %9617 = vmatprep.mubr.msk.f32.mxu1 %vm10371_vm0, %v11847_v46 }
 0xa37   :  { %10040 = vmatprep.subr.bf16.mxu1 %v11848_v1 }
 0xa3a   :  { %10042 = vmatpush3.bf16.msra.mxu1 %v11064_v4 }
 0xa3b   :  { %10049 = vmatprep.subr.bf16.mxu1 %v11848_v1 }
 0xa3c   :  { %v6739_v27 = vpop.f32.mrb[86].mxu1 }
 0xa3d   :  { %v9543_v2 = vpop.f32.mrb[87].mxu1  ;;  %9618 = vmatmul.mubr.msk.f32.vlgmr.msra.gmra.mrb[94].mxu1 %vm221_vm1, %v6739_v27 }
 0xa3e   :  { %10051 = vmatpush3.bf16.msra.mxu1 %v11075_v8  ;;  %9639 = vmatprep.mubr.msk.f32.mxu1 %vm10371_vm0, %v11847_v46 }
 0xa3f   :  { %10052 = vmatprep.subr.bf16.mxu1 %v11848_v1  ;;  %v7585_v1 = vld [vmem:[%s11801_s0] sm:$0xff] }
 0xa42   :  { %10054 = vmatpush3.bf16.msra.mxu1 %v11086_v15  ;;  %v7593_v15 = vmul.f32 %v7585_v1, %v7585_v1 }
 0xa43   :  { %9653 = vmatprep.subr.mxu1 %v11847_v46 }
 0xa44   :  { %v6885_v58 = vpop.f32.mrb[88].mxu1  ;;  %v7595_v45 = vsel %vm221_vm1, %v7593_v15, 0.0 }
 0xa45   :  { %v9553_v33 = vpop.f32.mrb[89].mxu1  ;;  %9640 = vmatmul.mubr.msk.f32.vlgmr.msra.gmra.mrb[96].mxu1 %vm221_vm1, %v6885_v58  ;;  %7596 = vadd.xlane.f32.xlu1 %v7595_v45 }
 0xa46   :  { %9655 = vmatprep.mubr.msk.f32.mxu1 %vm10371_vm0, %v11847_v46 }
 0xa49   :  { %7599 = vadd.xlane.f32.xlu1 %v7598_v14 }
 0xa6a   :  { %v7104_v4 = vpop.f32.mrb[90].mxu0 }
 0xa6b   :  { %v9586_v49 = vpop.f32.mrb[91].mxu0  ;;  %v7476_v0 = vsel %vm221_vm1, %v7104_v4, 0.0 }
 0xa72   :  { %v7250_v23 = vpop.f32.mrb[92].mxu0 }
 0xa73   :  { %v9608_v8 = vpop.f32.mrb[93].mxu0  ;;  %v7480_v52 = vsel %vm221_vm1, %v7250_v23, 0.0 }
 0xa7a   :  { %v7396_v40 = vpop.f32.mrb[94].mxu0 }
 0xa7b   :  { %v9630_v51 = vpop.f32.mrb[95].mxu0  ;;  %v7484_v50 = vsel %vm221_vm1, %v7396_v40, 0.0 }
 0xad2   :  { %v7597_v48 = vpop.xlane.xlu1 %7596 }
 0xad3   :  { %10182 = vrsqrt.f32 %v7597_v48  ;;  %vm7603_vm3 = vcmp.eq.f32.partialorder %v7597_v48, inf  ;;  %v7606_v26 = vand.u32 2147483648, %v7597_v48  ;;  %vm7605_vm4 = vcmp.eq.f32.partialorder %v7597_v48, 0.0 }
 0xad6   :  { %v7600_v11 = vpop.xlane.xlu1 %7599 }
 0xad7   :  { %vm7610_vm5 = vcmp.eq.f32.partialorder %v7600_v11, inf  ;;  %v7613_v33 = vand.u32 2147483648, %v7600_v11  ;;  %vm7612_vm6 = vcmp.eq.f32.partialorder %v7600_v11, 0.0 }
 0xadd   :  { %v10183_v41 = vpop.eup %10182 }
 0xade   :  { %v7602_v44 = vmul.f32 %v10183_v41, %v7597_v48 }
 0xae0   :  { %v7604_v25 = vsel %vm7603_vm3, %v7597_v48, %v7602_v44 }
 0xae1   :  { %v7607_v35 = vsel %vm7605_vm4, %v7606_v26, %v7604_v25 }
 0xae2   :  { %v7615_v37 = vmax.f32 %v7607_v35, 1e-05 }
 0xae4   :  { %10184 = vrcp.f32 %v7615_v37 }
 0xae5   :  { %10186 = vrsqrt.f32 %v7600_v11 }
 0xaee   :  { %v10185_v17 = vpop.eup %10184 }
 0xaef   :  { %v7618_v21 = vmul.f32 %v10185_v17, %v7585_v1  ;;  %v10187_v13 = vpop.eup %10186 }
 0xaf0   :  { %v7609_v2 = vmul.f32 %v10187_v13, %v7600_v11 }
 0xaf1   :  { %9654 = vmatpush3.xpose.msk.msra.mxu1 %vm221_vm1, %v7618_v21 }
 0xaf2   :  { %9658 = vmatprep.subr.mxu1 %v11847_v46  ;;  %v7611_v49 = vsel %vm7610_vm5, %v7600_v11, %v7609_v2  ;;  %v7815_v11 = vlaneseq }
 0xaf3   :  { %v7614_v23 = vsel %vm7612_vm6, %v7613_v33, %v7611_v49 }
 0xaf4   :  { %v7616_v51 = vmax.f32 %v7614_v23, 1e-05 }
 0xb00   :  { %v7031_v53 = vpop.f32.mrb[90].mxu1 }
 0xb01   :  { %v7474_v12 = vsel %vm221_vm1, %v7031_v53, 0.0  ;;  %v9575_v31 = vpop.f32.mrb[91].mxu1 }
 0xb02   :  { %v7475_v55 = vadd.f32 %v7474_v12, %v7473_v18 }
 0xb04   :  { %v7477_v61 = vadd.f32 %v7476_v0, %v7475_v55 }
 0xb08   :  { %v7177_v7 = vpop.f32.mrb[92].mxu1 }
 0xb09   :  { %v7478_v16 = vsel %vm221_vm1, %v7177_v7, 0.0  ;;  %v9597_v24 = vpop.f32.mrb[93].mxu1 }
 0xb0a   :  { %v7479_v42 = vadd.f32 %v7478_v16, %v7477_v61 }
 0xb0c   :  { %v7481_v32 = vadd.f32 %v7480_v52, %v7479_v42  ;;  %v7592_v52 = vld [vmem:[%s11804_s3 + $0x8] sm:$0xff] }
 0xb10   :  { %v7323_v38 = vpop.f32.mrb[94].mxu1 }
 0xb11   :  { %v7482_v20 = vsel %vm221_vm1, %v7323_v38, 0.0  ;;  %v9619_v56 = vpop.f32.mrb[95].mxu1  ;;  %v10373_v38 = vmov 0  }
 0xb12   :  { %v7483_v19 = vadd.f32 %v7482_v20, %v7481_v32  ;;  %v7591_v32 = vld [vmem:[%s11804_s3] sm:$0xff]  ;;  %10115 = vset.pattern.permute.xlu1 %v10373_v38  ;;  %v7848_v20 = vsel %vm7840_vm11, %v7592_v52, 0.0  ;;  %v11603_v56 = vmul.f32 10000.0, %v7592_v52  ;;  %10114 = vset.pattern.permute.xlu0 %v10373_v38 }
 0xb14   :  { %v7485_v43 = vadd.f32 %v7484_v50, %v7483_v19  ;;  %v11605_v19 = vmul.f32 10000.0, %v7591_v32  ;;  %v7849_v50 = vrot.slane %v7848_v20, 4 }
 0xb18   :  { %v7469_v62 = vpop.f32.mrb[96].mxu1 }
 0xb19   :  { %v7486_v28 = vsel %vm221_vm1, %v7469_v62, 0.0  ;;  %v9641_v3 = vpop.f32.mrb[97].mxu1  ;;  %v7590_v62 = vld [vmem:[%s11803_s2 + $0x1] sm:$0x1] }
 0xb1a   :  { %v7487_v30 = vadd.f32 %v7486_v28, %v7485_v43  ;;  %v11610_v28 = vmul.f32 10000.0, %v7590_v62  ;;  %v7589_v3 = vld [vmem:[%s11803_s2] sm:$0x1]  ;;  %v7835_v25 = vsel %vm7831_vm12, %v7590_v62, 0.0  ;;  %vm7870_vm15 = vcmp.gt.f32.partialorder %v7590_v62, 0.0 }
 0xb1b   :  { %v7832_v35 = vsel %vm7831_vm12, %v7589_v3, 0.0 }
 0xb1c   :  { %v7488_v34 = vadd.f32 %v11551_v59, %v7487_v30 }
 0xb1e   :  { %v7489_v29 = vsel %vm221_vm1, %v7488_v34, 0.0 }
 0xb1f   :  { %7490 = vadd.xlane.f32.xlu0 %v7489_v29 }
 0xb23   :  { %7624 = vadd.xlane.f32.xlu0 %v7623_v47 }
 0xb27   :  { %7627 = vadd.xlane.f32.xlu0 %v7626_v9 }
 0xb3d   :  { %7805 = vperm.xlu0 %10114, %v7591_v32  }
 0xb5c   :  { %7836 = vadd.xlane.f32.xlu0 %v7835_v25 }
 0xbac   :  { %v7491_v6 = vpop.xlane.xlu0 %7490 }
 0xbad   :  { %v7492_v63 = vmul.f32 0.03125, %v7491_v6  ;;  %v7816_v6 = vshrl.u32 %v7815_v11, 7 }
 0xbaf   :  { %v11584_v57 = vsub.f32 %v7488_v34, %v7492_v63  ;;  %v11615_v34 = vmul.f32 10000.0, %v7589_v3 }
 0xbb0   :  { %v7625_v36 = vpop.xlane.xlu0 %7624 }
 0xbb1   :  { %v7494_v27 = vmul.f32 %v11584_v57, %v11584_v57  ;;  %10188 = vrsqrt.f32 %v7625_v36  ;;  %vm7631_vm7 = vcmp.eq.f32.partialorder %v7625_v36, inf  ;;  %v7634_v40 = vand.u32 2147483648, %v7625_v36 }
 0xbb2   :  { %vm7633_vm8 = vcmp.eq.f32.partialorder %v7625_v36, 0.0 }
 0xbb3   :  { %v7495_v58 = vsel %vm221_vm1, %v7494_v27, 0.0  ;;  %v10211_v27 = vld [vmem:[%s11809_s8] ss:$0 sm:$0xff] }
 0xbb4   :  { %7496 = vadd.xlane.f32.xlu1 %v7495_v58  ;;  %v7628_v4 = vpop.xlane.xlu0 %7627  ;;  %v10212_v58 = vld [vmem:[%s11810_s9] ss:$0 sm:$0xff] }
 0xbb5   :  { %10190 = vrsqrt.f32 %v7628_v4  ;;  %vm7638_vm9 = vcmp.eq.f32.partialorder %v7628_v4, inf  ;;  %v7641_v14 = vand.u32 2147483648, %v7628_v4  ;;  %vm7640_vm10 = vcmp.eq.f32.partialorder %v7628_v4, 0.0 }
 0xbb6   :  { %10192 = vrcp.f32 %v7616_v51  ;;  %v10374_v51 = vmov 1.0  }
 0xbbb   :  { %v10189_v8 = vpop.eup %10188 }
 0xbbc   :  { %v7630_v1 = vmul.f32 %v10189_v8, %v7625_v36  ;;  %v7806_v23 = vpop.permute.xlu0 %7805 }
 0xbbe   :  { %v7632_v15 = vsel %vm7631_vm7, %v7625_v36, %v7630_v1  ;;  %v11622_v36 = vsub.s32 0, %v7816_v6 }
 0xbbf   :  { %v10191_v45 = vpop.eup %10190  ;;  %v7635_v54 = vsel %vm7633_vm8, %v7634_v40, %v7632_v15 }
 0xbc0   :  { %v7643_v53 = vmax.f32 %v7635_v54, 1e-05  ;;  %v7637_v18 = vmul.f32 %v10191_v45, %v7628_v4  ;;  %v10193_v0 = vpop.eup %10192  ;;  %v7818_v49 = vrot.slane %v7589_v3, %v11622_v36 }
 0xbc1   :  { %v7620_v7 = vmul.f32 %v11551_v59, %v10193_v0 }
 0xbc2   :  { %10194 = vrcp.f32 %v7643_v53  ;;  %v7639_v12 = vsel %vm7638_vm9, %v7628_v4, %v7637_v18  ;;  %v7822_v4 = vrot.slane %v7590_v62, %v11622_v36  ;;  %v11637_v40 = vmax.f32 %v7806_v23, %v7818_v49 }
 0xbc3   :  { %v7642_v31 = vsel %vm7640_vm10, %v7641_v14, %v7639_v12 }
 0xbc4   :  { %v7644_v55 = vmax.f32 %v7642_v31, 1e-05  ;;  %vm7827_vm14 = vcmp.gt.f32.partialorder %v11637_v40, 0.0 }
 0xbc5   :  { %7810 = vperm.xlu1 %10115, %v7592_v52   ;;  %v7867_v15 = vsel %vm7827_vm14, 0.0, %v10374_v51  }
 0xbc6   :  { %10196 = vrcp.f32 %v7644_v55 }
 0xbcc   :  { %v10195_v61 = vpop.eup %10194 }
 0xbcd   :  { %v7646_v16 = vmul.f32 %v10195_v61, %v11567_v39  ;;  %v7850_v39 = vadd.f32 %v7849_v50, %v7848_v20 }
 0xbcf   :  { %9656 = vmatmul.mubr.msk.f32.vlgmr.msra.gmra.mrb[98].mxu1 %vm221_vm1, %v7646_v16  ;;  %v7851_v60 = vrot.slane %v7850_v39, 2 }
 0xbd0   :  { %v10197_v24 = vpop.eup %10196  ;;  %9659 = vmatpush3.xpose.msk.msra.mxu1 %vm221_vm1, %v7620_v7  ;;  %9660 = vmatprep.mubr.msk.f32.mxu1 %vm10371_vm0, %v11847_v46  ;;  %v7841_v46 = vsel %vm7840_vm11, %v7591_v32, 0.0  ;;  %vm7869_vm0 = vcmp.gt.f32.partialorder %v7589_v3, 0.0 }
 0xbd1   :  { %v7648_v42 = vmul.f32 %v11577_v10, %v10197_v24  ;;  %v7842_v43 = vrot.slane %v7841_v46, 4  ;;  %v7852_v47 = vadd.f32 %v7851_v60, %v7850_v39 }
 0xbd3   :  { %9661 = vmatmul.mubr.msk.f32.vlgmr.msra.gmra.mrb[100].mxu1 %vm221_vm1, %v7648_v42  ;;  %v7843_v30 = vadd.f32 %v7842_v43, %v7841_v46  ;;  %v7853_v22 = vrot.slane %v7852_v47, 1 }
 0xbd5   :  { %v7844_v29 = vrot.slane %v7843_v30, 2  ;;  %v7854_v48 = vadd.f32 %v7853_v22, %v7852_v47 }
 0xbd7   :  { %v7845_v10 = vadd.f32 %v7844_v29, %v7843_v30  ;;  %v11617_v26 = vsub.f32 8.0, %v7854_v48 }
 0xbd9   :  { %v7846_v9 = vrot.slane %v7845_v10, 1 }
 0xbdb   :  { %v7847_v41 = vadd.f32 %v7846_v9, %v7845_v10 }
 0xbdd   :  { %v11619_v44 = vsub.f32 8.0, %v7847_v41 }
 0xbe9   :  { %7833 = vadd.xlane.f32.xlu1 %v7832_v35  ;;  %v7837_v45 = vpop.xlane.xlu0 %7836 }
 0xbea   :  { %v11645_v54 = vsub.f32 8.0, %v7837_v45 }
 0xc41   :  { %v7497_v37 = vpop.xlane.xlu1 %7496 }
 0xc42   :  { %v7498_v17 = vmul.f32 0.03125, %v7497_v37 }
 0xc44   :  { %v7499_v21 = vadd.f32 1e-05, %v7498_v17 }
 0xc46   :  { %10198 = vrsqrt.f32 %v7499_v21 }
 0xc47   :  { %10200 = vrcp.f32 %v11645_v54 }
 0xc50   :  { %v10199_v63 = vpop.eup %10198 }
 0xc51   :  { %v7501_v13 = vmul.f32 %v10199_v63, %v11584_v57  ;;  %v7811_v57 = vpop.permute.xlu1 %7810  ;;  %v10201_v53 = vpop.eup %10200 }
 0xc52   :  { %v11635_v8 = vmax.f32 %v7811_v57, %v7822_v4  ;;  %v7876_v18 = vsel %vm7870_vm15, 0.0, %v10201_v53  }
 0xc53   :  { %v7502_v2 = vmul.f32 %v10211_v27, %v7501_v13 }
 0xc54   :  { %vm7828_vm13 = vcmp.gt.f32.partialorder %v11635_v8, 0.0 }
 0xc55   :  { %v7503_v33 = vadd.f32 %v10212_v58, %v7502_v2  ;;  %v7868_v1 = vsel %vm7828_vm13, 0.0, %v10374_v51  }
 0xc57   :  { %9650 = vmatprep.mubr.msk.f32.mxu0 %vm221_vm1, %v7503_v33 }
 0xc58   :  { %9651 = vmatmul.mubr.msk.f32.vlgmr.msra.gmra.mrb[96].mxu0 %vm221_vm1, %v11551_v59 }
 0xc76   :  { %v7834_v59 = vpop.xlane.xlu1 %7833 }
 0xc77   :  { %v11648_v14 = vsub.f32 8.0, %v7834_v59 }
 0xc79   :  { %10202 = vrcp.f32 %v11648_v14 }
 0xc83   :  { %v10203_v12 = vpop.eup %10202 }
 0xc84   :  { %v7875_v31 = vsel %vm7869_vm0, 0.0, %v10203_v12  }
 0xca2   :  { %v7721_v55 = vpop.f32.mrb[98].mxu1 }
 0xca3   :  { %v7801_v0 = vsub.f32 1.0, %v7721_v55  ;;  %v9657_v61 = vpop.f32.mrb[99].mxu1 }
 0xca5   :  { %v11653_v7 = vsel %vm7827_vm14, 0.0, %v7801_v0 }
 0xca6   :  { %v7797_v16 = vpop.f32.mrb[100].mxu1  ;;  %v7857_v24 = vsub.f32 0.0, %v11653_v7 }
 0xca7   :  { %v7802_v42 = vsub.f32 1.0, %v7797_v16  ;;  %v9662_v52 = vpop.f32.mrb[101].mxu1 }
 0xca8   :  { %v7859_v32 = vmul.f32 2.0, %v7857_v24 }
 0xca9   :  { %v11658_v38 = vsel %vm7828_vm13, 0.0, %v7802_v42 }
 0xcaa   :  { %v7858_v20 = vsub.f32 0.0, %v11658_v38  ;;  %v7861_v46 = vmul.f32 1.442695, %v7859_v32 }
 0xcac   :  { %v7860_v50 = vmul.f32 2.0, %v7858_v20  ;;  %10204 = vpow2.f32 %v7861_v46 }
 0xcae   :  { %v7863_v43 = vmul.f32 1.442695, %v7860_v50 }
 0xcb0   :  { %10206 = vpow2.f32 %v7863_v43 }
 0xcb6   :  { %v10205_v62 = vpop.eup %10204 }
 0xcb7   :  { %v11663_v3 = vsel %vm7827_vm14, 0.0, %v10205_v62 }
 0xcba   :  { %v10207_v39 = vpop.eup %10206 }
 0xcbb   :  { %v11667_v30 = vsel %vm7828_vm13, 0.0, %v10207_v39 }
 0xd2b   :  { %v9652_v60 = vpop.f32.mrb[96].mxu0 }
 0xd2c   :  { %v7579_v29 = vadd.f32 %v9652_v60, %v11398_v5  ;;  %v7573_v47 = vpop.f32.mrb[97].mxu0 }
 0xd2d   :  { %v7574_v10 = vadd.f32 %v11398_v5, %v7573_v47 }
 0xd2e   :  { %8362 = vst [vmem:[%s11813_s12 + $0x18] sm:$0xff] %v7579_v29 }
 0xd2f   :  { %8361 = vst [vmem:[%s11813_s12 + $0x10] sm:$0xff] %v7574_v10 }
 0xd30 LB: > { %v7891_v5 = vmul.f32 %v10359_v15, %v11663_v3  ;;  %v7896_v22 = vrot.slane %v10351_v31, %v11622_v36  ;;  %v7892_v9 = vmul.f32 %v10355_v1, %v11667_v30  ;;  %v7900_v48 = vrot.slane %v10347_v18, %v11622_v36  ;;  %s7886_s16 = sadd.s32 1, %s10363_s16   ;;  %s10363_s16 = sphi %s11685_s16, %s7886_s16   ;;  %v10359_v15 = vphi %v7867_v15, %v11864_v15   ;;  %v10355_v1 = vphi %v7868_v1, %v11863_v1   ;;  %v10351_v31 = vphi %v7875_v31, %v10252_v31   ;;  %v10347_v18 = vphi %v7876_v18, %v10254_v18  }
 0xd31   : > { %v10375_v17 = vmov 0   ;;  %p7883_p10 = scmp.ge.s32.totalorder %s7886_s16, 10  }
 0xd32   : > { %v7901_v41 = vmul.f32 %v7896_v22, %v7891_v5  ;;  %v7902_v25 = vmul.f32 %v7900_v48, %v7892_v9  ;;  %10213 = vset.pattern.permute.xlu1 %v10375_v17  ;;  %10214 = vset.pattern.permute.xlu0 %v10375_v17 }
 0xd34   : > { %v7903_v35 = vsel %vm2524_vm2, %v7901_v41, 0.0  ;;  %v7906_v37 = vsel %vm2524_vm2, %v7902_v25, 0.0 }
 0xd35   : > { %7904 = vadd.xlane.f32.xlu0 %v7903_v35 }
 0xd39   : > { %7907 = vadd.xlane.f32.xlu0 %v7906_v37 }
 0xdc2   : > { %v7905_v21 = vpop.xlane.xlu0 %7904 }
 0xdc3   : > { %v7909_v11 = vmul.f32 %v7905_v21, %v11619_v44 }
 0xdc5   : > { %v7911_v6 = vadd.f32 %v7909_v11, %v11605_v19 }
 0xdc6   : > { %v7908_v63 = vpop.xlane.xlu0 %7907 }
 0xdc7   : > { %10215 = vrcp.f32 %v7911_v6  ;;  %v7910_v13 = vmul.f32 %v7908_v63, %v11617_v26 }
 0xdc9   : > { %v7912_v27 = vadd.f32 %v7910_v13, %v11603_v56 }
 0xdcb   : > { %10217 = vrcp.f32 %v7912_v27 }
 0xdd1   : > { %v10216_v2 = vpop.eup %10215 }
 0xdd2   : > { %7917 = vperm.xlu1 %10213, %v10216_v2  }
 0xdd5   : > { %v10218_v58 = vpop.eup %10217 }
 0xdd6   : > { %7922 = vperm.xlu1 %10213, %v10218_v58  }
 0xe51   : > { %v7918_v33 = vpop.permute.xlu1 %7917 }
 0xe52   : > { %v7925_v4 = vmul.f32 %v7918_v33, %v7891_v5 }
 0xe54   : > { %v7927_v49 = vsel %vm2524_vm2, %v7925_v4, 0.0 }
 0xe55   : > { %v7928_v57 = vrot.slane %v7927_v49, 4  ;;  %v7923_v23 = vpop.permute.xlu1 %7922 }
 0xe56   : > { %v7926_v51 = vmul.f32 %v7923_v23, %v7892_v9 }
 0xe57   : > { %v7929_v1 = vadd.f32 %v7928_v57, %v7927_v49 }
 0xe58   : > { %v7934_v15 = vsel %vm2524_vm2, %v7926_v51, 0.0 }
 0xe59   : > { %v7930_v45 = vrot.slane %v7929_v1, 2  ;;  %v7935_v59 = vrot.slane %v7934_v15, 4 }
 0xe5b   : > { %v7931_v53 = vadd.f32 %v7930_v45, %v7929_v1  ;;  %v7936_v18 = vadd.f32 %v7935_v59, %v7934_v15 }
 0xe5d   : > { %v7932_v12 = vrot.slane %v7931_v53, 1  ;;  %v7937_v31 = vrot.slane %v7936_v18, 2 }
 0xe5f   : > { %v7933_v55 = vadd.f32 %v7932_v12, %v7931_v53  ;;  %v7938_v0 = vadd.f32 %v7937_v31, %v7936_v18 }
 0xe61   : > { %v7941_v61 = vmul.f32 %v7933_v55, %v11648_v14  ;;  %v7939_v16 = vrot.slane %v7938_v0, 1 }
 0xe63   : > { %v7943_v24 = vadd.f32 %v7941_v61, %v11615_v34  ;;  %v7940_v42 = vadd.f32 %v7939_v16, %v7938_v0 }
 0xe65   : > { %10219 = vrcp.f32 %v7943_v24  ;;  %v7942_v52 = vmul.f32 %v7940_v42, %v11645_v54 }
 0xe67   : > { %v7944_v32 = vadd.f32 %v7942_v52, %v11610_v28 }
 0xe69   : > { %10221 = vrcp.f32 %v7944_v32 }
 0xe6f   : > { %v10220_v20 = vpop.eup %10219 }
 0xe70   : > { %v7950_v46 = vrot.slane %v10220_v20, %v11622_v36 }
 0xe72   : > { %v7955_v50 = vmul.f32 %v7950_v46, %v7925_v4 }
 0xe73   : > { %v10222_v43 = vpop.eup %10221 }
 0xe74   : > { %v7954_v62 = vrot.slane %v10222_v43, %v11622_v36  ;;  %v7957_v39 = vmul.f32 %v7955_v50, %v11663_v3 }
 0xe76   : > { %v7956_v60 = vmul.f32 %v7954_v62, %v7926_v51  ;;  %v7959_v29 = vmul.f32 %v7957_v39, %v7950_v46 }
 0xe78   : > { %v7961_v47 = vsel %vm2524_vm2, %v7959_v29, 0.0  ;;  %v7958_v10 = vmul.f32 %v7956_v60, %v11667_v30 }
 0xe79   : > { %7962 = vadd.xlane.f32.xlu0 %v7961_v47 }
 0xe7a   : > { %v7960_v5 = vmul.f32 %v7958_v10, %v7954_v62 }
 0xe7c   : > { %v7964_v22 = vsel %vm2524_vm2, %v7960_v5, 0.0 }
 0xe7d   : > { %7965 = vadd.xlane.f32.xlu1 %v7964_v22 }
 0xf06   : > { %v7963_v9 = vpop.xlane.xlu0 %7962 }
 0xf07   : > { %v7967_v48 = vmul.f32 %v7963_v9, %v11619_v44 }
 0xf09   : > { %v7969_v41 = vadd.f32 %v7967_v48, %v11605_v19 }
 0xf0a   : > { %v7966_v25 = vpop.xlane.xlu1 %7965 }
 0xf0b   : > { %10223 = vrcp.f32 %v7969_v41  ;;  %v7968_v35 = vmul.f32 %v7966_v25, %v11617_v26 }
 0xf0d   : > { %v7970_v37 = vadd.f32 %v7968_v35, %v11603_v56 }
 0xf0f   : > { %10225 = vrcp.f32 %v7970_v37 }
 0xf15   : > { %v10224_v17 = vpop.eup %10223 }
 0xf16   : > { %7975 = vperm.xlu0 %10214, %v10224_v17  }
 0xf19   : > { %v10226_v21 = vpop.eup %10225 }
 0xf1a   : > { %7980 = vperm.xlu1 %10213, %v10226_v21  }
 0xf95   : > { %v7976_v11 = vpop.permute.xlu0 %7975 }
 0xf96   : > { %v7983_v6 = vmul.f32 %v7976_v11, %v7957_v39 }
 0xf98   : > { %v7985_v63 = vsel %vm2524_vm2, %v7983_v6, 0.0 }
 0xf99   : > { %v7986_v13 = vrot.slane %v7985_v63, 4  ;;  %v7981_v27 = vpop.permute.xlu1 %7980 }
 0xf9a   : > { %v7984_v2 = vmul.f32 %v7981_v27, %v7958_v10 }
 0xf9b   : > { %v7987_v58 = vadd.f32 %v7986_v13, %v7985_v63 }
 0xf9c   : > { %v7992_v33 = vsel %vm2524_vm2, %v7984_v2, 0.0 }
 0xf9d   : > { %v7988_v4 = vrot.slane %v7987_v58, 2  ;;  %v7993_v49 = vrot.slane %v7992_v33, 4 }
 0xf9f   : > { %v7989_v57 = vadd.f32 %v7988_v4, %v7987_v58  ;;  %v7994_v23 = vadd.f32 %v7993_v49, %v7992_v33 }
 0xfa1   : > { %v7990_v51 = vrot.slane %v7989_v57, 1  ;;  %v7995_v1 = vrot.slane %v7994_v23, 2 }
 0xfa3   : > { %v7991_v15 = vadd.f32 %v7990_v51, %v7989_v57  ;;  %v7996_v45 = vadd.f32 %v7995_v1, %v7994_v23 }
 0xfa5   : > { %v7999_v59 = vmul.f32 %v7991_v15, %v11648_v14  ;;  %v7997_v53 = vrot.slane %v7996_v45, 1 }
 0xfa7   : > { %v8001_v18 = vadd.f32 %v7999_v59, %v11615_v34  ;;  %v7998_v12 = vadd.f32 %v7997_v53, %v7996_v45 }
 0xfa9   : > { %10227 = vrcp.f32 %v8001_v18  ;;  %v8000_v31 = vmul.f32 %v7998_v12, %v11645_v54 }
 0xfab   : > { %v8002_v55 = vadd.f32 %v8000_v31, %v11610_v28 }
 0xfad   : > { %10229 = vrcp.f32 %v8002_v55 }
 0xfb3   : > { %v10228_v0 = vpop.eup %10227 }
 0xfb4   : > { %v8008_v61 = vrot.slane %v10228_v0, %v11622_v36 }
 0xfb6   : > { %v8013_v16 = vmul.f32 %v8008_v61, %v7983_v6 }
 0xfb7   : > { %v10230_v24 = vpop.eup %10229 }
 0xfb8   : > { %v8012_v42 = vrot.slane %v10230_v24, %v11622_v36  ;;  %v8015_v52 = vmul.f32 %v8013_v16, %v11663_v3 }
 0xfba   : > { %v8014_v32 = vmul.f32 %v8012_v42, %v7984_v2  ;;  %v8017_v20 = vmul.f32 %v8015_v52, %v8008_v61 }
 0xfbc   : > { %v8019_v46 = vsel %vm2524_vm2, %v8017_v20, 0.0  ;;  %v8016_v50 = vmul.f32 %v8014_v32, %v11667_v30 }
 0xfbd   : > { %8020 = vadd.xlane.f32.xlu0 %v8019_v46 }
 0xfbe   : > { %v8018_v43 = vmul.f32 %v8016_v50, %v8012_v42 }
 0xfc0   : > { %v8022_v62 = vsel %vm2524_vm2, %v8018_v43, 0.0 }
 0xfc1   : > { %8023 = vadd.xlane.f32.xlu1 %v8022_v62 }
0x104a   : > { %v8021_v39 = vpop.xlane.xlu0 %8020 }
0x104b   : > { %v8025_v60 = vmul.f32 %v8021_v39, %v11619_v44 }
0x104d   : > { %v8027_v29 = vadd.f32 %v8025_v60, %v11605_v19 }
0x104e   : > { %v8024_v47 = vpop.xlane.xlu1 %8023 }
0x104f   : > { %10231 = vrcp.f32 %v8027_v29  ;;  %v8026_v10 = vmul.f32 %v8024_v47, %v11617_v26 }
0x1051   : > { %v8028_v5 = vadd.f32 %v8026_v10, %v11603_v56 }
0x1053   : > { %10233 = vrcp.f32 %v8028_v5 }
0x1059   : > { %v10232_v22 = vpop.eup %10231 }
0x105a   : > { %8033 = vperm.xlu0 %10214, %v10232_v22  }
0x105d   : > { %v10234_v9 = vpop.eup %10233 }
0x105e   : > { %8038 = vperm.xlu1 %10213, %v10234_v9  }
0x10d9   : > { %v8034_v48 = vpop.permute.xlu0 %8033 }
0x10da   : > { %v8041_v41 = vmul.f32 %v8034_v48, %v8015_v52 }
0x10dc   : > { %v8043_v25 = vsel %vm2524_vm2, %v8041_v41, 0.0 }
0x10dd   : > { %v8044_v35 = vrot.slane %v8043_v25, 4  ;;  %v8039_v37 = vpop.permute.xlu1 %8038 }
0x10de   : > { %v8042_v17 = vmul.f32 %v8039_v37, %v8016_v50 }
0x10df   : > { %v8045_v21 = vadd.f32 %v8044_v35, %v8043_v25 }
0x10e0   : > { %v8050_v11 = vsel %vm2524_vm2, %v8042_v17, 0.0 }
0x10e1   : > { %v8046_v6 = vrot.slane %v8045_v21, 2  ;;  %v8051_v63 = vrot.slane %v8050_v11, 4 }
0x10e3   : > { %v8047_v13 = vadd.f32 %v8046_v6, %v8045_v21  ;;  %v8052_v27 = vadd.f32 %v8051_v63, %v8050_v11 }
0x10e5   : > { %v8048_v2 = vrot.slane %v8047_v13, 1  ;;  %v8053_v58 = vrot.slane %v8052_v27, 2 }
0x10e7   : > { %v8049_v33 = vadd.f32 %v8048_v2, %v8047_v13  ;;  %v8054_v4 = vadd.f32 %v8053_v58, %v8052_v27 }
0x10e9   : > { %v8057_v49 = vmul.f32 %v8049_v33, %v11648_v14  ;;  %v8055_v57 = vrot.slane %v8054_v4, 1 }
0x10eb   : > { %v8059_v23 = vadd.f32 %v8057_v49, %v11615_v34  ;;  %v8056_v51 = vadd.f32 %v8055_v57, %v8054_v4 }
0x10ed   : > { %10235 = vrcp.f32 %v8059_v23  ;;  %v8058_v1 = vmul.f32 %v8056_v51, %v11645_v54 }
0x10ef   : > { %v8060_v15 = vadd.f32 %v8058_v1, %v11610_v28 }
0x10f1   : > { %10237 = vrcp.f32 %v8060_v15 }
0x10f7   : > { %v10236_v45 = vpop.eup %10235 }
0x10f8   : > { %v8066_v59 = vrot.slane %v10236_v45, %v11622_v36 }
0x10fa   : > { %v8071_v53 = vmul.f32 %v8066_v59, %v8041_v41 }
0x10fb   : > { %v10238_v18 = vpop.eup %10237 }
0x10fc   : > { %v8070_v12 = vrot.slane %v10238_v18, %v11622_v36  ;;  %v8073_v31 = vmul.f32 %v8071_v53, %v11663_v3 }
0x10fe   : > { %v8072_v55 = vmul.f32 %v8070_v12, %v8042_v17  ;;  %v8075_v0 = vmul.f32 %v8073_v31, %v8066_v59 }
0x1100   : > { %v8077_v61 = vsel %vm2524_vm2, %v8075_v0, 0.0  ;;  %v8074_v16 = vmul.f32 %v8072_v55, %v11667_v30 }
0x1101   : > { %8078 = vadd.xlane.f32.xlu0 %v8077_v61 }
0x1102   : > { %v8076_v24 = vmul.f32 %v8074_v16, %v8070_v12 }
0x1104   : > { %v8080_v42 = vsel %vm2524_vm2, %v8076_v24, 0.0 }
0x1105   : > { %8081 = vadd.xlane.f32.xlu1 %v8080_v42 }
0x118e   : > { %v8079_v52 = vpop.xlane.xlu0 %8078 }
0x118f   : > { %v8083_v32 = vmul.f32 %v8079_v52, %v11619_v44 }
0x1191   : > { %v8085_v20 = vadd.f32 %v8083_v32, %v11605_v19 }
0x1192   : > { %v8082_v46 = vpop.xlane.xlu1 %8081 }
0x1193   : > { %10239 = vrcp.f32 %v8085_v20  ;;  %v8084_v50 = vmul.f32 %v8082_v46, %v11617_v26 }
0x1195   : > { %v8086_v43 = vadd.f32 %v8084_v50, %v11603_v56 }
0x1197   : > { %10241 = vrcp.f32 %v8086_v43 }
0x119d   : > { %v10240_v62 = vpop.eup %10239 }
0x119e   : > { %8091 = vperm.xlu0 %10214, %v10240_v62  }
0x11a1   : > { %v10242_v39 = vpop.eup %10241 }
0x11a2   : > { %8096 = vperm.xlu1 %10213, %v10242_v39  }
0x121d   : > { %v8092_v60 = vpop.permute.xlu0 %8091 }
0x121e   : > { %v8099_v29 = vmul.f32 %v8092_v60, %v8073_v31 }
0x1220   : > { %v8101_v47 = vsel %vm2524_vm2, %v8099_v29, 0.0 }
0x1221   : > { %v8102_v10 = vrot.slane %v8101_v47, 4  ;;  %v8097_v5 = vpop.permute.xlu1 %8096 }
0x1222   : > { %v8100_v22 = vmul.f32 %v8097_v5, %v8074_v16 }
0x1223   : > { %v8103_v9 = vadd.f32 %v8102_v10, %v8101_v47 }
0x1224   : > { %v8108_v48 = vsel %vm2524_vm2, %v8100_v22, 0.0 }
0x1225   : > { %v8104_v41 = vrot.slane %v8103_v9, 2  ;;  %v8109_v25 = vrot.slane %v8108_v48, 4 }
0x1227   : > { %v8105_v35 = vadd.f32 %v8104_v41, %v8103_v9  ;;  %v8110_v37 = vadd.f32 %v8109_v25, %v8108_v48 }
0x1229   : > { %v8106_v17 = vrot.slane %v8105_v35, 1  ;;  %v8111_v21 = vrot.slane %v8110_v37, 2 }
0x122b   : > { %v8107_v11 = vadd.f32 %v8106_v17, %v8105_v35  ;;  %v8112_v6 = vadd.f32 %v8111_v21, %v8110_v37 }
0x122d   : > { %v8115_v63 = vmul.f32 %v8107_v11, %v11648_v14  ;;  %v8113_v13 = vrot.slane %v8112_v6, 1 }
0x122f   : > { %v8117_v27 = vadd.f32 %v8115_v63, %v11615_v34  ;;  %v8114_v2 = vadd.f32 %v8113_v13, %v8112_v6 }
0x1231   : > { %10243 = vrcp.f32 %v8117_v27  ;;  %v8116_v58 = vmul.f32 %v8114_v2, %v11645_v54 }
0x1233   : > { %v8118_v33 = vadd.f32 %v8116_v58, %v11610_v28 }
0x1235   : > { %10245 = vrcp.f32 %v8118_v33 }
0x123b   : > { %v10244_v4 = vpop.eup %10243 }
0x123c   : > { %v8124_v49 = vrot.slane %v10244_v4, %v11622_v36 }
0x123e   : > { %v8129_v57 = vmul.f32 %v8124_v49, %v8099_v29 }
0x123f   : > { %v10246_v23 = vpop.eup %10245 }
0x1240   : > { %v8128_v51 = vrot.slane %v10246_v23, %v11622_v36  ;;  %v8131_v1 = vmul.f32 %v8129_v57, %v11663_v3 }
0x1242   : > { %v8130_v15 = vmul.f32 %v8128_v51, %v8100_v22  ;;  %v8133_v45 = vmul.f32 %v8131_v1, %v8124_v49 }
0x1244   : > { %v8135_v59 = vsel %vm2524_vm2, %v8133_v45, 0.0  ;;  %v8132_v53 = vmul.f32 %v8130_v15, %v11667_v30 }
0x1245   : > { %8136 = vadd.xlane.f32.xlu0 %v8135_v59 }
0x1246   : > { %v8134_v18 = vmul.f32 %v8132_v53, %v8128_v51 }
0x1248   : > { %v8138_v12 = vsel %vm2524_vm2, %v8134_v18, 0.0 }
0x1249   : > { %8139 = vadd.xlane.f32.xlu1 %v8138_v12 }
0x12d2   : > { %v8137_v31 = vpop.xlane.xlu0 %8136 }
0x12d3   : > { %v8141_v55 = vmul.f32 %v8137_v31, %v11619_v44 }
0x12d5   : > { %v8143_v0 = vadd.f32 %v8141_v55, %v11605_v19 }
0x12d6   : > { %v8140_v61 = vpop.xlane.xlu1 %8139 }
0x12d7   : > { %10247 = vrcp.f32 %v8143_v0  ;;  %v8142_v16 = vmul.f32 %v8140_v61, %v11617_v26 }
0x12d9   : > { %v8144_v24 = vadd.f32 %v8142_v16, %v11603_v56 }
0x12db   : > { %10249 = vrcp.f32 %v8144_v24 }
0x12e1   : > { %v10248_v42 = vpop.eup %10247 }
0x12e2   : > { %8149 = vperm.xlu0 %10214, %v10248_v42  }
0x12e5   : > { %v10250_v52 = vpop.eup %10249 }
0x12e6   : > { %8154 = vperm.xlu1 %10213, %v10250_v52  }
0x1361   : > { %v8150_v32 = vpop.permute.xlu0 %8149 }
0x1362   : > { %v8157_v20 = vmul.f32 %v8150_v32, %v8131_v1 }
0x1364   : > { %v8159_v46 = vsel %vm2524_vm2, %v8157_v20, 0.0 }
0x1365   : > { %v8160_v50 = vrot.slane %v8159_v46, 4  ;;  %v8155_v43 = vpop.permute.xlu1 %8154 }
0x1366   : > { %v8158_v62 = vmul.f32 %v8155_v43, %v8132_v53 }
0x1367   : > { %v8161_v39 = vadd.f32 %v8160_v50, %v8159_v46 }
0x1368   : > { %v8166_v60 = vsel %vm2524_vm2, %v8158_v62, 0.0 }
0x1369   : > { %v8162_v29 = vrot.slane %v8161_v39, 2  ;;  %v8167_v47 = vrot.slane %v8166_v60, 4 }
0x136b   : > { %v8163_v10 = vadd.f32 %v8162_v29, %v8161_v39  ;;  %v8168_v5 = vadd.f32 %v8167_v47, %v8166_v60 }
0x136d   : > { %v8164_v22 = vrot.slane %v8163_v10, 1  ;;  %v8169_v9 = vrot.slane %v8168_v5, 2 }
0x136f   : > { %v8165_v48 = vadd.f32 %v8164_v22, %v8163_v10  ;;  %v8170_v41 = vadd.f32 %v8169_v9, %v8168_v5 }
0x1371   : > { %v8173_v25 = vmul.f32 %v8165_v48, %v11648_v14  ;;  %v8171_v35 = vrot.slane %v8170_v41, 1 }
0x1373   : > { %v8175_v37 = vadd.f32 %v8173_v25, %v11615_v34  ;;  %v8172_v17 = vadd.f32 %v8171_v35, %v8170_v41 }
0x1375   : > { %10251 = vrcp.f32 %v8175_v37  ;;  %v8174_v21 = vmul.f32 %v8172_v17, %v11645_v54 }
0x1377   : > { %v8176_v11 = vadd.f32 %v8174_v21, %v11610_v28 }
0x1379   : > { %10253 = vrcp.f32 %v8176_v11 }
0x137f   : > { %v10252_v31 = vpop.eup %10251  }
0x1380   : > { %v8182_v6 = vrot.slane %v10252_v31, %v11622_v36 }
0x1382   : > { %v8187_v63 = vmul.f32 %v8182_v6, %v8157_v20   ;;  %7885 = sbr.rel (!%p7883_p10) target bundleno = 3376 (0xd30), region = 98 }
0x1383   : > { %v10254_v18 = vpop.eup %10253  }
0x1384   : > { %v8186_v13 = vrot.slane %v10254_v18, %v11622_v36  ;;  %v11864_v15 = vmov %v8187_v63  ;;  %v8189_v2 = vsel (%p7883_p10), %vm7827_vm14, 0.0, %v8187_v63 }
0x1385   :  { %v8191_v33 = vmul.f32 (%p7883_p10), %v8189_v2, %v11653_v7 }
0x1386   : > { %v8188_v27 = vmul.f32 %v8186_v13, %v8158_v62  }
0x1387   :  { %v8193_v49 = vsel (%p7883_p10), %vm2524_vm2, %v8191_v33, 0.0 }
0x1388   : > { %v11863_v1 = vmov %v8188_v27  ;;  %v8190_v58 = vsel (%p7883_p10), %vm7828_vm13, 0.0, %v8188_v27  ;;  %8194 = vadd.xlane.f32.xlu0 (%p7883_p10), %v8193_v49 }
0x1389   :  { %v8192_v4 = vmul.f32 %v8190_v58, %v11658_v38 }
0x138b   :  { %v8196_v57 = vsel %vm2524_vm2, %v8192_v4, 0.0 }
0x138c   :  { %8197 = vadd.xlane.f32.xlu0 %v8196_v57 }
0x1415   :  { %v8195_v23 = vpop.xlane.xlu0 %8194 }
0x1416   :  { %v8199_v51 = vrot.slane %v8195_v23, 4 }
0x1418   :  { %v8200_v15 = vadd.f32 %v8199_v51, %v8195_v23 }
0x1419   :  { %v8198_v45 = vpop.xlane.xlu0 %8197 }
0x141a   :  { %v8201_v56 = vrot.slane %v8200_v15, 2  ;;  %v8205_v19 = vrot.slane %v8198_v45, 4 }
0x141c   :  { %v8202_v28 = vadd.f32 %v8201_v56, %v8200_v15  ;;  %v8206_v34 = vadd.f32 %v8205_v19, %v8198_v45 }
0x141e   :  { %v8203_v26 = vrot.slane %v8202_v28, 1  ;;  %v8207_v44 = vrot.slane %v8206_v34, 2 }
0x1420   :  { %v8204_v36 = vadd.f32 %v8203_v26, %v8202_v28  ;;  %v8208_v8 = vadd.f32 %v8207_v44, %v8206_v34 }
0x1422   :  { %8211 = vst [vmem:[%s11814_s13] sm:$0x1] %v8204_v36  ;;  %v8209_v40 = vrot.slane %v8208_v8, 1 }
0x1424   :  { %v8210_v54 = vadd.f32 %v8209_v40, %v8208_v8 }
0x1426   :  { %8212 = vst [vmem:[%s11814_s13 + $0x1] sm:$0x1] %v8210_v54 }
0x1427   :  { %8221 = vsyncpa [#allocation3], 1 }
0x1428   :  { %8222 = vsyncpa [#allocation5], 1 }

</bundles_post_ra>
